<compile_context>
chip_gen: v7x
topology: tpu7x:2x2x1
jax: 0.10.0
libtpu: 0.0.40
codegen_flags: <defaults>
</compile_context>

<pallas_src>
import math

import jax
import jax.numpy as jnp
import numpy as np
from jax import lax
from jax.experimental import pallas as pl
from jax.experimental.pallas import tpu as pltpu

# ---------------------------------------------------------------------------
# Model hyper-parameters (small, consistent with the module's forward).
# ---------------------------------------------------------------------------
B = 2          # batch
C_IN = 3       # image channels
H_ORI = 14     # original image height (not a multiple of patch -> exercises padding)
W_ORI = 14
PATCH = 8      # encoder.patch_size
D_MODEL = 32   # encoder hidden dim
N_HEADS = 2
D_HEAD = D_MODEL // N_HEADS
D_MLP = 64
N_LAYERS = 2
N_CLS = 4      # segmenter n_cls
LN_EPS = 1e-5

H_PAD = ((H_ORI + PATCH - 1) // PATCH) * PATCH   # 16
W_PAD = ((W_ORI + PATCH - 1) // PATCH) * PATCH   # 16
GH, GW = H_PAD // PATCH, W_PAD // PATCH          # 2, 2
N_PATCH = GH * GW                                # 4
N_TOK = N_PATCH + 1                              # + cls token (distilled = 0)
CPP = C_IN * PATCH * PATCH                       # 192
HW = H_PAD * W_PAD                               # 256


# ---------------------------------------------------------------------------
# In-kernel helpers
# ---------------------------------------------------------------------------
def _gelu(x):
    # TODO(synk): PyTorch nn.GELU defaults to exact erf; tanh approximation is
    # used here (erf has no guaranteed Mosaic lowering) -> ~1e-3 deviation.
    c = 0.7978845608028654  # sqrt(2/pi)
    return 0.5 * x * (1.0 + jnp.tanh(c * (x + 0.044715 * x * x * x)))


def _layernorm(x, g, b):
    inv_d = 1.0 / x.shape[-1]
    mu = jnp.sum(x, axis=-1, keepdims=True) * inv_d
    xc = x - mu
    var = jnp.sum(xc * xc, axis=-1, keepdims=True) * inv_d
    return xc * lax.rsqrt(var + LN_EPS) * g + b


def _dot(a, b):
    return jnp.dot(a, b, preferred_element_type=jnp.float32)


def _dot_nt(a, b):
    # a @ b.T without materializing a transpose (contract last dims of both).
    return lax.dot_general(a, b, (((1,), (1,)), ((), ())),
                           preferred_element_type=jnp.float32)


# ---------------------------------------------------------------------------
# The single fused kernel: whole Segmenter forward for all batches/layers.
# ---------------------------------------------------------------------------
def _segmenter_kernel(patches_ref, patch_w_ref, add_tok_ref,
                      ln1_g_ref, ln1_b_ref,
                      q_w_ref, q_b_ref, k_w_ref, k_b_ref, v_w_ref, v_b_ref,
                      proj_w_ref, proj_b_ref,
                      ln2_g_ref, ln2_b_ref,
                      fc1_w_ref, fc1_b_ref, fc2_w_ref, fc2_b_ref,
                      lnf_g_ref, lnf_b_ref,
                      dec_wt_ref, dec_b_ref, interp_ref,
                      out_ref):
    patch_w = patch_w_ref[...]       # (CPP, D)
    add_tok = add_tok_ref[...]       # (N_TOK, D)   cls+pos row 0, patch_b+pos rows 1..
    dec_wt = dec_wt_ref[...]         # (N_CLS, D)
    dec_b = dec_b_ref[...]           # (N_CLS, 1)
    interp = interp_ref[...]         # (N_TOK, HW)  cls row is all-zero

    for b in range(B):
        # Patch embedding (Conv2d k=s=patch as matmul).  The cls slot of
        # `patches` is zero, so concat(cls, tokens) + pos_embed reduces to the
        # single additive term `add_tok`.
        x = _dot(patches_ref[b], patch_w) + add_tok                 # (N_TOK, D)

        for l in range(N_LAYERS):
            # ---- MHSA (pre-LN) ----
            xn = _layernorm(x, ln1_g_ref[l], ln1_b_ref[l])
            attn = jnp.zeros((N_TOK, D_MODEL), jnp.float32)
            for h in range(N_HEADS):
                q = _dot(xn, q_w_ref[l, h]) + q_b_ref[l, h]         # scale folded in
                k = _dot(xn, k_w_ref[l, h]) + k_b_ref[l, h]
                v = _dot(xn, v_w_ref[l, h]) + v_b_ref[l, h]
                s = _dot_nt(q, k)                                   # (N_TOK, N_TOK)
                s = s - jnp.max(s, axis=-1, keepdims=True)
                p = jnp.exp(s)
                p = p * pl.reciprocal(jnp.sum(p, axis=-1, keepdims=True),
                                      approx=True)
                o = _dot(p, v)                                      # (N_TOK, D_HEAD)
                attn = attn + _dot(o, proj_w_ref[l, h])             # head-concat folded
            x = x + attn + proj_b_ref[l]

            # ---- MLP (pre-LN) ----
            xn2 = _layernorm(x, ln2_g_ref[l], ln2_b_ref[l])
            h1 = _gelu(_dot(xn2, fc1_w_ref[l]) + fc1_b_ref[l])
            x = x + _dot(h1, fc2_w_ref[l]) + fc2_b_ref[l]

        # ---- final LN, linear decoder head, bilinear upsample as matmuls ----
        xf = _layernorm(x, lnf_g_ref[...], lnf_b_ref[...])
        logits_t = _dot_nt(dec_wt, xf)                              # (N_CLS, N_TOK)
        out_ref[b] = _dot(logits_t, interp) + dec_b                 # (N_CLS, H*W)


_VMEM = pl.BlockSpec(memory_space=pltpu.MemorySpace.VMEM)
_N_KERNEL_INPUTS = 24

_fused_segmenter = pl.pallas_call(
    _segmenter_kernel,
    out_shape=jax.ShapeDtypeStruct((B, N_CLS, HW), jnp.float32),
    in_specs=[_VMEM] * _N_KERNEL_INPUTS,
    out_specs=_VMEM,
)


# ---------------------------------------------------------------------------
# Host-side glue: padding / patchify / interpolation operator (plain JAX/numpy).
# ---------------------------------------------------------------------------
def padding(im, patch_size):
    _, _, h, w = im.shape
    pad_h = (patch_size - h % patch_size) % patch_size
    pad_w = (patch_size - w % patch_size) % patch_size
    if pad_h or pad_w:
        im = jnp.pad(im, ((0, 0), (0, 0), (0, pad_h), (0, pad_w)))
    return im


def patchify_with_cls(im, patch_size):
    """(B,C,H,W) -> (B, 1+Gh*Gw, C*ps*ps); row 0 per batch is a zero cls slot."""
    b, c, h, w = im.shape
    gh, gw = h // patch_size, w // patch_size
    x = im.reshape(b, c, gh, patch_size, gw, patch_size)
    x = x.transpose(0, 2, 4, 1, 3, 5).reshape(b, gh * gw, c * patch_size * patch_size)
    cls_slot = jnp.zeros((b, 1, x.shape[-1]), x.dtype)
    return jnp.concatenate([cls_slot, x], axis=1)


def interp_matrix(out_size, in_size):
    """F.interpolate(mode='bilinear', align_corners=False) as a matrix (numpy)."""
    scale = in_size / out_size
    i = np.arange(out_size, dtype=np.float64)
    src = np.maximum((i + 0.5) * scale - 0.5, 0.0)
    i0 = np.minimum(np.floor(src).astype(np.int64), in_size - 1)
    i1 = np.minimum(i0 + 1, in_size - 1)
    w1 = np.clip(src - i0, 0.0, 1.0)
    w0 = 1.0 - w1
    a = np.zeros((out_size, in_size), dtype=np.float32)
    a[np.arange(out_size), i0] += w0.astype(np.float32)
    a[np.arange(out_size), i1] += w1.astype(np.float32)
    return a


# ---------------------------------------------------------------------------
# Parameter initialization (deterministic, in-script) + one-time repack.
# ---------------------------------------------------------------------------
def init_params(key):
    ks = iter(jax.random.split(key, 64))
    p = {}
    s = 0.02
    p["patch_w"] = s * jax.random.normal(next(ks), (CPP, D_MODEL), jnp.float32)
    p["patch_b"] = jnp.zeros((D_MODEL,), jnp.float32)
    p["cls_token"] = s * jax.random.normal(next(ks), (1, 1, D_MODEL), jnp.float32)
    p["pos_embed"] = s * jax.random.normal(next(ks), (1, N_TOK, D_MODEL), jnp.float32)
    p["blocks"] = []
    for _ in range(N_LAYERS):
        blk = {
            "ln1_g": jnp.ones((D_MODEL,), jnp.float32),
            "ln1_b": jnp.zeros((D_MODEL,), jnp.float32),
            "qkv_w": s * jax.random.normal(next(ks), (D_MODEL, 3 * D_MODEL), jnp.float32),
            "qkv_b": jnp.zeros((3 * D_MODEL,), jnp.float32),
            "proj_w": s * jax.random.normal(next(ks), (D_MODEL, D_MODEL), jnp.float32),
            "proj_b": jnp.zeros((D_MODEL,), jnp.float32),
            "ln2_g": jnp.ones((D_MODEL,), jnp.float32),
            "ln2_b": jnp.zeros((D_MODEL,), jnp.float32),
            "fc1_w": s * jax.random.normal(next(ks), (D_MODEL, D_MLP), jnp.float32),
            "fc1_b": jnp.zeros((D_MLP,), jnp.float32),
            "fc2_w": s * jax.random.normal(next(ks), (D_MLP, D_MODEL), jnp.float32),
            "fc2_b": jnp.zeros((D_MODEL,), jnp.float32),
        }
        p["blocks"].append(blk)
    p["ln_f_g"] = jnp.ones((D_MODEL,), jnp.float32)
    p["ln_f_b"] = jnp.zeros((D_MODEL,), jnp.float32)
    # decoder (segm DecoderLinear): single nn.Linear(d_encoder, n_cls)
    p["dec_w"] = s * jax.random.normal(next(ks), (D_MODEL, N_CLS), jnp.float32)
    p["dec_b"] = jnp.zeros((N_CLS,), jnp.float32)
    return p


def prepare_inputs(params):
    """One-time host-side repack of parameters into the fused-kernel layout."""
    scale = 1.0 / math.sqrt(D_HEAD)
    ln1_g, ln1_b, ln2_g, ln2_b = [], [], [], []
    q_w, q_b, k_w, k_b, v_w, v_b = [], [], [], [], [], []
    proj_w, proj_b = [], []
    fc1_w, fc1_b, fc2_w, fc2_b = [], [], [], []
    for blk in params["blocks"]:
        ln1_g.append(blk["ln1_g"].reshape(1, D_MODEL))
        ln1_b.append(blk["ln1_b"].reshape(1, D_MODEL))
        ln2_g.append(blk["ln2_g"].reshape(1, D_MODEL))
        ln2_b.append(blk["ln2_b"].reshape(1, D_MODEL))
        w = blk["qkv_w"].reshape(D_MODEL, 3, N_HEADS, D_HEAD)     # (D, 3, nh, dh)
        bqkv = blk["qkv_b"].reshape(3, N_HEADS, 1, D_HEAD)
        q_w.append(w[:, 0].transpose(1, 0, 2) * scale)            # scale folded into Q
        k_w.append(w[:, 1].transpose(1, 0, 2))
        v_w.append(w[:, 2].transpose(1, 0, 2))
        q_b.append(bqkv[0] * scale)
        k_b.append(bqkv[1])
        v_b.append(bqkv[2])
        proj_w.append(blk["proj_w"].reshape(N_HEADS, D_HEAD, D_MODEL))
        proj_b.append(blk["proj_b"].reshape(1, D_MODEL))
        fc1_w.append(blk["fc1_w"])
        fc1_b.append(blk["fc1_b"].reshape(1, D_MLP))
        fc2_w.append(blk["fc2_w"])
        fc2_b.append(blk["fc2_b"].reshape(1, D_MODEL))
    stack = lambda xs: jnp.stack(xs, axis=0)

    # Token-wise additive term: cls_token + pos[0] for the (zero) cls slot,
    # conv bias + pos[1:] for the real patch rows.
    cls_row = params["cls_token"].reshape(1, D_MODEL) + params["pos_embed"][0, 0:1]
    patch_rows = params["pos_embed"][0, 1:] + params["patch_b"].reshape(1, D_MODEL)
    add_tok = jnp.concatenate([cls_row, patch_rows], axis=0)       # (N_TOK, D)

    # Bilinear-upsample operator (N_TOK, H*W): kron(a_h, a_w) with a zero row
    # for the cls token (implements `x = x[:, num_extra_tokens:]`).
    a_h = interp_matrix(H_PAD, GH)
    a_w = interp_matrix(W_PAD, GW)
    interp = np.zeros((N_TOK, HW), dtype=np.float32)
    interp[1:, :] = np.kron(a_h, a_w).T                            # (Gh*Gw, H*W)

    return (
        params["patch_w"], add_tok,
        stack(ln1_g), stack(ln1_b),
        stack(q_w), stack(q_b), stack(k_w), stack(k_b), stack(v_w), stack(v_b),
        stack(proj_w), stack(proj_b),
        stack(ln2_g), stack(ln2_b),
        stack(fc1_w), stack(fc1_b), stack(fc2_w), stack(fc2_b),
        params["ln_f_g"].reshape(1, D_MODEL), params["ln_f_b"].reshape(1, D_MODEL),
        params["dec_w"].T, params["dec_b"].reshape(N_CLS, 1),
        jnp.asarray(interp),
    )


# ---------------------------------------------------------------------------
# Forward pass (Segmenter.forward semantics).
# ---------------------------------------------------------------------------
@jax.jit
def segmenter_forward(prep, im):
    h_ori, w_ori = im.shape[2], im.shape[3]
    im = padding(im, PATCH)
    patches = patchify_with_cls(im, PATCH)          # (B, N_TOK, C*ps*ps)
    out = _fused_segmenter(patches, *prep)          # (B, n_cls, H*W) lane-dense slab
    masks = out.reshape(im.shape[0], N_CLS, H_PAD, W_PAD)
    return masks[:, :, :h_ori, :w_ori]              # unpadding
    # TODO(synk): return_hidden_states / encoder._turbo_info['source'] paths not
    # modeled (source is None for the linear decoder; hidden states pass-through).


# ---------------------------------------------------------------------------
if __name__ == "__main__":
    key = jax.random.PRNGKey(0)
    k_im, k_par = jax.random.split(key)
    im = jax.random.normal(k_im, (B, C_IN, H_ORI, W_ORI), jnp.float32)
    params = init_params(k_par)
    prep = prepare_inputs(params)

    masks = segmenter_forward(prep, im)
    masks = jax.block_until_ready(masks)
    assert masks.shape == (B, N_CLS, H_ORI, W_ORI), masks.shape
    assert masks.dtype == jnp.float32
    assert bool(jnp.all(jnp.isfinite(masks)))
    print("KERNEL_OK")
</pallas_src>

<mosaic_0001>
module attributes {stable_mosaic.version = 11 : i64} {
  func.func @_segmenter_kernel(%arg0: memref<2x5x192xf32, #tpu.memory_space<vmem>>, %arg1: memref<192x32xf32, #tpu.memory_space<vmem>>, %arg2: memref<5x32xf32, #tpu.memory_space<vmem>>, %arg3: memref<2x1x32xf32, #tpu.memory_space<vmem>>, %arg4: memref<2x1x32xf32, #tpu.memory_space<vmem>>, %arg5: memref<2x2x32x16xf32, #tpu.memory_space<vmem>>, %arg6: memref<2x2x1x16xf32, #tpu.memory_space<vmem>>, %arg7: memref<2x2x32x16xf32, #tpu.memory_space<vmem>>, %arg8: memref<2x2x1x16xf32, #tpu.memory_space<vmem>>, %arg9: memref<2x2x32x16xf32, #tpu.memory_space<vmem>>, %arg10: memref<2x2x1x16xf32, #tpu.memory_space<vmem>>, %arg11: memref<2x2x16x32xf32, #tpu.memory_space<vmem>>, %arg12: memref<2x1x32xf32, #tpu.memory_space<vmem>>, %arg13: memref<2x1x32xf32, #tpu.memory_space<vmem>>, %arg14: memref<2x1x32xf32, #tpu.memory_space<vmem>>, %arg15: memref<2x32x64xf32, #tpu.memory_space<vmem>>, %arg16: memref<2x1x64xf32, #tpu.memory_space<vmem>>, %arg17: memref<2x64x32xf32, #tpu.memory_space<vmem>>, %arg18: memref<2x1x32xf32, #tpu.memory_space<vmem>>, %arg19: memref<1x32xf32, #tpu.memory_space<vmem>>, %arg20: memref<1x32xf32, #tpu.memory_space<vmem>>, %arg21: memref<4x32xf32, #tpu.memory_space<vmem>>, %arg22: memref<4x1xf32, #tpu.memory_space<vmem>>, %arg23: memref<5x256xf32, #tpu.memory_space<vmem>>, %arg24: memref<2x4x256xf32, #tpu.memory_space<vmem>>) attributes {dimension_semantics = [], scalar_prefetch = 0 : i64, scratch_operands = 0 : i64, tpu.core_type = #tpu.core_type<tc>} {
    %c0 = arith.constant 0 : index
    %c0_0 = arith.constant 0 : index
    %0 = vector.load %arg1[%c0, %c0_0] : memref<192x32xf32, #tpu.memory_space<vmem>>, vector<192x32xf32>
    %c0_1 = arith.constant 0 : index
    %c0_2 = arith.constant 0 : index
    %1 = vector.load %arg2[%c0_1, %c0_2] : memref<5x32xf32, #tpu.memory_space<vmem>>, vector<5x32xf32>
    %c0_3 = arith.constant 0 : index
    %c0_4 = arith.constant 0 : index
    %2 = vector.load %arg21[%c0_3, %c0_4] : memref<4x32xf32, #tpu.memory_space<vmem>>, vector<4x32xf32>
    %c0_5 = arith.constant 0 : index
    %c0_6 = arith.constant 0 : index
    %3 = vector.load %arg22[%c0_5, %c0_6] : memref<4x1xf32, #tpu.memory_space<vmem>>, vector<4x1xf32>
    %c0_7 = arith.constant 0 : index
    %c0_8 = arith.constant 0 : index
    %4 = vector.load %arg23[%c0_7, %c0_8] : memref<5x256xf32, #tpu.memory_space<vmem>>, vector<5x256xf32>
    %c0_9 = arith.constant 0 : index
    %c0_10 = arith.constant 0 : index
    %c0_11 = arith.constant 0 : index
    %5 = vector.load %arg0[%c0_9, %c0_10, %c0_11] : memref<2x5x192xf32, #tpu.memory_space<vmem>>, vector<1x5x192xf32>
    %6 = vector.shape_cast %5 : vector<1x5x192xf32> to vector<5x192xf32>
    %cst = arith.constant dense<0.000000e+00> : vector<5x32xf32>
    %7 = tpu.matmul %6, %0, %cst {dimension_numbers = #tpu.dot_dimension_numbers<[1], [0], [0], [1], [0, 0, 1, 1], [], []>} : vector<5x192xf32>, vector<192x32xf32>, vector<5x32xf32> -> vector<5x32xf32>
    %8 = arith.addf %7, %1 : vector<5x32xf32>
    %c0_12 = arith.constant 0 : index
    %c0_13 = arith.constant 0 : index
    %c0_14 = arith.constant 0 : index
    %9 = vector.load %arg3[%c0_12, %c0_13, %c0_14] : memref<2x1x32xf32, #tpu.memory_space<vmem>>, vector<1x1x32xf32>
    %10 = vector.shape_cast %9 : vector<1x1x32xf32> to vector<1x32xf32>
    %c0_15 = arith.constant 0 : index
    %c0_16 = arith.constant 0 : index
    %c0_17 = arith.constant 0 : index
    %11 = vector.load %arg4[%c0_15, %c0_16, %c0_17] : memref<2x1x32xf32, #tpu.memory_space<vmem>>, vector<1x1x32xf32>
    %12 = vector.shape_cast %11 : vector<1x1x32xf32> to vector<1x32xf32>
    %cst_18 = arith.constant dense<0.000000e+00> : vector<5xf32>
    %13 = vector.multi_reduction <add>, %8, %cst_18 [1] : vector<5x32xf32> to vector<5xf32>
    %14 = vector.shape_cast %13 : vector<5xf32> to vector<5x1xf32>
    %cst_19 = arith.constant 3.125000e-02 : f32
    %15 = vector.broadcast %cst_19 : f32 to vector<5x1xf32>
    %16 = arith.mulf %14, %15 : vector<5x1xf32>
    %17 = vector.broadcast %16 : vector<5x1xf32> to vector<5x32xf32>
    %18 = arith.subf %8, %17 : vector<5x32xf32>
    %19 = arith.mulf %18, %18 : vector<5x32xf32>
    %cst_20 = arith.constant dense<0.000000e+00> : vector<5xf32>
    %20 = vector.multi_reduction <add>, %19, %cst_20 [1] : vector<5x32xf32> to vector<5xf32>
    %21 = vector.shape_cast %20 : vector<5xf32> to vector<5x1xf32>
    %cst_21 = arith.constant 3.125000e-02 : f32
    %22 = vector.broadcast %cst_21 : f32 to vector<5x1xf32>
    %23 = arith.mulf %21, %22 : vector<5x1xf32>
    %cst_22 = arith.constant 9.99999974E-6 : f32
    %24 = vector.broadcast %cst_22 : f32 to vector<5x1xf32>
    %25 = arith.addf %23, %24 : vector<5x1xf32>
    %26 = math.rsqrt %25 : vector<5x1xf32>
    %27 = vector.broadcast %26 : vector<5x1xf32> to vector<5x32xf32>
    %28 = arith.mulf %18, %27 : vector<5x32xf32>
    %29 = vector.broadcast %10 : vector<1x32xf32> to vector<5x32xf32>
    %30 = arith.mulf %28, %29 : vector<5x32xf32>
    %31 = vector.broadcast %12 : vector<1x32xf32> to vector<5x32xf32>
    %32 = arith.addf %30, %31 : vector<5x32xf32>
    %cst_23 = arith.constant 0.000000e+00 : f32
    %33 = vector.broadcast %cst_23 : f32 to vector<5x32xf32>
    %c0_24 = arith.constant 0 : index
    %c0_25 = arith.constant 0 : index
    %c0_26 = arith.constant 0 : index
    %c0_27 = arith.constant 0 : index
    %34 = vector.load %arg5[%c0_24, %c0_25, %c0_26, %c0_27] : memref<2x2x32x16xf32, #tpu.memory_space<vmem>>, vector<1x1x32x16xf32>
    %35 = vector.shape_cast %34 : vector<1x1x32x16xf32> to vector<32x16xf32>
    %cst_28 = arith.constant dense<0.000000e+00> : vector<5x16xf32>
    %36 = tpu.matmul %32, %35, %cst_28 {dimension_numbers = #tpu.dot_dimension_numbers<[1], [0], [0], [1], [0, 0, 1, 1], [], []>} : vector<5x32xf32>, vector<32x16xf32>, vector<5x16xf32> -> vector<5x16xf32>
    %c0_29 = arith.constant 0 : index
    %c0_30 = arith.constant 0 : index
    %c0_31 = arith.constant 0 : index
    %c0_32 = arith.constant 0 : index
    %37 = vector.load %arg6[%c0_29, %c0_30, %c0_31, %c0_32] : memref<2x2x1x16xf32, #tpu.memory_space<vmem>>, vector<1x1x1x16xf32>
    %38 = vector.shape_cast %37 : vector<1x1x1x16xf32> to vector<1x16xf32>
    %39 = vector.broadcast %38 : vector<1x16xf32> to vector<5x16xf32>
    %40 = arith.addf %36, %39 : vector<5x16xf32>
    %c0_33 = arith.constant 0 : index
    %c0_34 = arith.constant 0 : index
    %c0_35 = arith.constant 0 : index
    %c0_36 = arith.constant 0 : index
    %41 = vector.load %arg7[%c0_33, %c0_34, %c0_35, %c0_36] : memref<2x2x32x16xf32, #tpu.memory_space<vmem>>, vector<1x1x32x16xf32>
    %42 = vector.shape_cast %41 : vector<1x1x32x16xf32> to vector<32x16xf32>
    %cst_37 = arith.constant dense<0.000000e+00> : vector<5x16xf32>
    %43 = tpu.matmul %32, %42, %cst_37 {dimension_numbers = #tpu.dot_dimension_numbers<[1], [0], [0], [1], [0, 0, 1, 1], [], []>} : vector<5x32xf32>, vector<32x16xf32>, vector<5x16xf32> -> vector<5x16xf32>
    %c0_38 = arith.constant 0 : index
    %c0_39 = arith.constant 0 : index
    %c0_40 = arith.constant 0 : index
    %c0_41 = arith.constant 0 : index
    %44 = vector.load %arg8[%c0_38, %c0_39, %c0_40, %c0_41] : memref<2x2x1x16xf32, #tpu.memory_space<vmem>>, vector<1x1x1x16xf32>
    %45 = vector.shape_cast %44 : vector<1x1x1x16xf32> to vector<1x16xf32>
    %46 = vector.broadcast %45 : vector<1x16xf32> to vector<5x16xf32>
    %47 = arith.addf %43, %46 : vector<5x16xf32>
    %c0_42 = arith.constant 0 : index
    %c0_43 = arith.constant 0 : index
    %c0_44 = arith.constant 0 : index
    %c0_45 = arith.constant 0 : index
    %48 = vector.load %arg9[%c0_42, %c0_43, %c0_44, %c0_45] : memref<2x2x32x16xf32, #tpu.memory_space<vmem>>, vector<1x1x32x16xf32>
    %49 = vector.shape_cast %48 : vector<1x1x32x16xf32> to vector<32x16xf32>
    %cst_46 = arith.constant dense<0.000000e+00> : vector<5x16xf32>
    %50 = tpu.matmul %32, %49, %cst_46 {dimension_numbers = #tpu.dot_dimension_numbers<[1], [0], [0], [1], [0, 0, 1, 1], [], []>} : vector<5x32xf32>, vector<32x16xf32>, vector<5x16xf32> -> vector<5x16xf32>
    %c0_47 = arith.constant 0 : index
    %c0_48 = arith.constant 0 : index
    %c0_49 = arith.constant 0 : index
    %c0_50 = arith.constant 0 : index
    %51 = vector.load %arg10[%c0_47, %c0_48, %c0_49, %c0_50] : memref<2x2x1x16xf32, #tpu.memory_space<vmem>>, vector<1x1x1x16xf32>
    %52 = vector.shape_cast %51 : vector<1x1x1x16xf32> to vector<1x16xf32>
    %53 = vector.broadcast %52 : vector<1x16xf32> to vector<5x16xf32>
    %54 = arith.addf %50, %53 : vector<5x16xf32>
    %cst_51 = arith.constant dense<0.000000e+00> : vector<5x5xf32>
    %55 = tpu.matmul %40, %47, %cst_51 {dimension_numbers = #tpu.dot_dimension_numbers<[1], [1], [0], [0], [0, 0, 1, 0], [], []>} : vector<5x16xf32>, vector<5x16xf32>, vector<5x5xf32> -> vector<5x5xf32>
    %cst_52 = arith.constant dense<0xFF800000> : vector<5xf32>
    %56 = vector.multi_reduction <maximumf>, %55, %cst_52 [1] : vector<5x5xf32> to vector<5xf32>
    %57 = vector.shape_cast %56 : vector<5xf32> to vector<5x1xf32>
    %58 = vector.broadcast %57 : vector<5x1xf32> to vector<5x5xf32>
    %59 = arith.subf %55, %58 : vector<5x5xf32>
    %60 = math.exp %59 : vector<5x5xf32>
    %cst_53 = arith.constant dense<0.000000e+00> : vector<5xf32>
    %61 = vector.multi_reduction <add>, %60, %cst_53 [1] : vector<5x5xf32> to vector<5xf32>
    %62 = vector.shape_cast %61 : vector<5xf32> to vector<5x1xf32>
    %63 = tpu.reciprocal %62 {approx = true} : vector<5x1xf32> -> vector<5x1xf32>
    %64 = vector.broadcast %63 : vector<5x1xf32> to vector<5x5xf32>
    %65 = arith.mulf %60, %64 : vector<5x5xf32>
    %cst_54 = arith.constant dense<0.000000e+00> : vector<5x16xf32>
    %66 = tpu.matmul %65, %54, %cst_54 {dimension_numbers = #tpu.dot_dimension_numbers<[1], [0], [0], [1], [0, 0, 1, 1], [], []>} : vector<5x5xf32>, vector<5x16xf32>, vector<5x16xf32> -> vector<5x16xf32>
    %c0_55 = arith.constant 0 : index
    %c0_56 = arith.constant 0 : index
    %c0_57 = arith.constant 0 : index
    %c0_58 = arith.constant 0 : index
    %67 = vector.load %arg11[%c0_55, %c0_56, %c0_57, %c0_58] : memref<2x2x16x32xf32, #tpu.memory_space<vmem>>, vector<1x1x16x32xf32>
    %68 = vector.shape_cast %67 : vector<1x1x16x32xf32> to vector<16x32xf32>
    %cst_59 = arith.constant dense<0.000000e+00> : vector<5x32xf32>
    %69 = tpu.matmul %66, %68, %cst_59 {dimension_numbers = #tpu.dot_dimension_numbers<[1], [0], [0], [1], [0, 0, 1, 1], [], []>} : vector<5x16xf32>, vector<16x32xf32>, vector<5x32xf32> -> vector<5x32xf32>
    %70 = arith.addf %33, %69 : vector<5x32xf32>
    %c0_60 = arith.constant 0 : index
    %c1 = arith.constant 1 : index
    %c0_61 = arith.constant 0 : index
    %c0_62 = arith.constant 0 : index
    %71 = vector.load %arg5[%c0_60, %c1, %c0_61, %c0_62] : memref<2x2x32x16xf32, #tpu.memory_space<vmem>>, vector<1x1x32x16xf32>
    %72 = vector.shape_cast %71 : vector<1x1x32x16xf32> to vector<32x16xf32>
    %cst_63 = arith.constant dense<0.000000e+00> : vector<5x16xf32>
    %73 = tpu.matmul %32, %72, %cst_63 {dimension_numbers = #tpu.dot_dimension_numbers<[1], [0], [0], [1], [0, 0, 1, 1], [], []>} : vector<5x32xf32>, vector<32x16xf32>, vector<5x16xf32> -> vector<5x16xf32>
    %c0_64 = arith.constant 0 : index
    %c1_65 = arith.constant 1 : index
    %c0_66 = arith.constant 0 : index
    %c0_67 = arith.constant 0 : index
    %74 = vector.load %arg6[%c0_64, %c1_65, %c0_66, %c0_67] : memref<2x2x1x16xf32, #tpu.memory_space<vmem>>, vector<1x1x1x16xf32>
    %75 = vector.shape_cast %74 : vector<1x1x1x16xf32> to vector<1x16xf32>
    %76 = vector.broadcast %75 : vector<1x16xf32> to vector<5x16xf32>
    %77 = arith.addf %73, %76 : vector<5x16xf32>
    %c0_68 = arith.constant 0 : index
    %c1_69 = arith.constant 1 : index
    %c0_70 = arith.constant 0 : index
    %c0_71 = arith.constant 0 : index
    %78 = vector.load %arg7[%c0_68, %c1_69, %c0_70, %c0_71] : memref<2x2x32x16xf32, #tpu.memory_space<vmem>>, vector<1x1x32x16xf32>
    %79 = vector.shape_cast %78 : vector<1x1x32x16xf32> to vector<32x16xf32>
    %cst_72 = arith.constant dense<0.000000e+00> : vector<5x16xf32>
    %80 = tpu.matmul %32, %79, %cst_72 {dimension_numbers = #tpu.dot_dimension_numbers<[1], [0], [0], [1], [0, 0, 1, 1], [], []>} : vector<5x32xf32>, vector<32x16xf32>, vector<5x16xf32> -> vector<5x16xf32>
    %c0_73 = arith.constant 0 : index
    %c1_74 = arith.constant 1 : index
    %c0_75 = arith.constant 0 : index
    %c0_76 = arith.constant 0 : index
    %81 = vector.load %arg8[%c0_73, %c1_74, %c0_75, %c0_76] : memref<2x2x1x16xf32, #tpu.memory_space<vmem>>, vector<1x1x1x16xf32>
    %82 = vector.shape_cast %81 : vector<1x1x1x16xf32> to vector<1x16xf32>
    %83 = vector.broadcast %82 : vector<1x16xf32> to vector<5x16xf32>
    %84 = arith.addf %80, %83 : vector<5x16xf32>
    %c0_77 = arith.constant 0 : index
    %c1_78 = arith.constant 1 : index
    %c0_79 = arith.constant 0 : index
    %c0_80 = arith.constant 0 : index
    %85 = vector.load %arg9[%c0_77, %c1_78, %c0_79, %c0_80] : memref<2x2x32x16xf32, #tpu.memory_space<vmem>>, vector<1x1x32x16xf32>
    %86 = vector.shape_cast %85 : vector<1x1x32x16xf32> to vector<32x16xf32>
    %cst_81 = arith.constant dense<0.000000e+00> : vector<5x16xf32>
    %87 = tpu.matmul %32, %86, %cst_81 {dimension_numbers = #tpu.dot_dimension_numbers<[1], [0], [0], [1], [0, 0, 1, 1], [], []>} : vector<5x32xf32>, vector<32x16xf32>, vector<5x16xf32> -> vector<5x16xf32>
    %c0_82 = arith.constant 0 : index
    %c1_83 = arith.constant 1 : index
    %c0_84 = arith.constant 0 : index
    %c0_85 = arith.constant 0 : index
    %88 = vector.load %arg10[%c0_82, %c1_83, %c0_84, %c0_85] : memref<2x2x1x16xf32, #tpu.memory_space<vmem>>, vector<1x1x1x16xf32>
    %89 = vector.shape_cast %88 : vector<1x1x1x16xf32> to vector<1x16xf32>
    %90 = vector.broadcast %89 : vector<1x16xf32> to vector<5x16xf32>
    %91 = arith.addf %87, %90 : vector<5x16xf32>
    %cst_86 = arith.constant dense<0.000000e+00> : vector<5x5xf32>
    %92 = tpu.matmul %77, %84, %cst_86 {dimension_numbers = #tpu.dot_dimension_numbers<[1], [1], [0], [0], [0, 0, 1, 0], [], []>} : vector<5x16xf32>, vector<5x16xf32>, vector<5x5xf32> -> vector<5x5xf32>
    %cst_87 = arith.constant dense<0xFF800000> : vector<5xf32>
    %93 = vector.multi_reduction <maximumf>, %92, %cst_87 [1] : vector<5x5xf32> to vector<5xf32>
    %94 = vector.shape_cast %93 : vector<5xf32> to vector<5x1xf32>
    %95 = vector.broadcast %94 : vector<5x1xf32> to vector<5x5xf32>
    %96 = arith.subf %92, %95 : vector<5x5xf32>
    %97 = math.exp %96 : vector<5x5xf32>
    %cst_88 = arith.constant dense<0.000000e+00> : vector<5xf32>
    %98 = vector.multi_reduction <add>, %97, %cst_88 [1] : vector<5x5xf32> to vector<5xf32>
    %99 = vector.shape_cast %98 : vector<5xf32> to vector<5x1xf32>
    %100 = tpu.reciprocal %99 {approx = true} : vector<5x1xf32> -> vector<5x1xf32>
    %101 = vector.broadcast %100 : vector<5x1xf32> to vector<5x5xf32>
    %102 = arith.mulf %97, %101 : vector<5x5xf32>
    %cst_89 = arith.constant dense<0.000000e+00> : vector<5x16xf32>
    %103 = tpu.matmul %102, %91, %cst_89 {dimension_numbers = #tpu.dot_dimension_numbers<[1], [0], [0], [1], [0, 0, 1, 1], [], []>} : vector<5x5xf32>, vector<5x16xf32>, vector<5x16xf32> -> vector<5x16xf32>
    %c0_90 = arith.constant 0 : index
    %c1_91 = arith.constant 1 : index
    %c0_92 = arith.constant 0 : index
    %c0_93 = arith.constant 0 : index
    %104 = vector.load %arg11[%c0_90, %c1_91, %c0_92, %c0_93] : memref<2x2x16x32xf32, #tpu.memory_space<vmem>>, vector<1x1x16x32xf32>
    %105 = vector.shape_cast %104 : vector<1x1x16x32xf32> to vector<16x32xf32>
    %cst_94 = arith.constant dense<0.000000e+00> : vector<5x32xf32>
    %106 = tpu.matmul %103, %105, %cst_94 {dimension_numbers = #tpu.dot_dimension_numbers<[1], [0], [0], [1], [0, 0, 1, 1], [], []>} : vector<5x16xf32>, vector<16x32xf32>, vector<5x32xf32> -> vector<5x32xf32>
    %107 = arith.addf %70, %106 : vector<5x32xf32>
    %108 = arith.addf %8, %107 : vector<5x32xf32>
    %c0_95 = arith.constant 0 : index
    %c0_96 = arith.constant 0 : index
    %c0_97 = arith.constant 0 : index
    %109 = vector.load %arg12[%c0_95, %c0_96, %c0_97] : memref<2x1x32xf32, #tpu.memory_space<vmem>>, vector<1x1x32xf32>
    %110 = vector.shape_cast %109 : vector<1x1x32xf32> to vector<1x32xf32>
    %111 = vector.broadcast %110 : vector<1x32xf32> to vector<5x32xf32>
    %112 = arith.addf %108, %111 : vector<5x32xf32>
    %c0_98 = arith.constant 0 : index
    %c0_99 = arith.constant 0 : index
    %c0_100 = arith.constant 0 : index
    %113 = vector.load %arg13[%c0_98, %c0_99, %c0_100] : memref<2x1x32xf32, #tpu.memory_space<vmem>>, vector<1x1x32xf32>
    %114 = vector.shape_cast %113 : vector<1x1x32xf32> to vector<1x32xf32>
    %c0_101 = arith.constant 0 : index
    %c0_102 = arith.constant 0 : index
    %c0_103 = arith.constant 0 : index
    %115 = vector.load %arg14[%c0_101, %c0_102, %c0_103] : memref<2x1x32xf32, #tpu.memory_space<vmem>>, vector<1x1x32xf32>
    %116 = vector.shape_cast %115 : vector<1x1x32xf32> to vector<1x32xf32>
    %cst_104 = arith.constant dense<0.000000e+00> : vector<5xf32>
    %117 = vector.multi_reduction <add>, %112, %cst_104 [1] : vector<5x32xf32> to vector<5xf32>
    %118 = vector.shape_cast %117 : vector<5xf32> to vector<5x1xf32>
    %cst_105 = arith.constant 3.125000e-02 : f32
    %119 = vector.broadcast %cst_105 : f32 to vector<5x1xf32>
    %120 = arith.mulf %118, %119 : vector<5x1xf32>
    %121 = vector.broadcast %120 : vector<5x1xf32> to vector<5x32xf32>
    %122 = arith.subf %112, %121 : vector<5x32xf32>
    %123 = arith.mulf %122, %122 : vector<5x32xf32>
    %cst_106 = arith.constant dense<0.000000e+00> : vector<5xf32>
    %124 = vector.multi_reduction <add>, %123, %cst_106 [1] : vector<5x32xf32> to vector<5xf32>
    %125 = vector.shape_cast %124 : vector<5xf32> to vector<5x1xf32>
    %cst_107 = arith.constant 3.125000e-02 : f32
    %126 = vector.broadcast %cst_107 : f32 to vector<5x1xf32>
    %127 = arith.mulf %125, %126 : vector<5x1xf32>
    %cst_108 = arith.constant 9.99999974E-6 : f32
    %128 = vector.broadcast %cst_108 : f32 to vector<5x1xf32>
    %129 = arith.addf %127, %128 : vector<5x1xf32>
    %130 = math.rsqrt %129 : vector<5x1xf32>
    %131 = vector.broadcast %130 : vector<5x1xf32> to vector<5x32xf32>
    %132 = arith.mulf %122, %131 : vector<5x32xf32>
    %133 = vector.broadcast %114 : vector<1x32xf32> to vector<5x32xf32>
    %134 = arith.mulf %132, %133 : vector<5x32xf32>
    %135 = vector.broadcast %116 : vector<1x32xf32> to vector<5x32xf32>
    %136 = arith.addf %134, %135 : vector<5x32xf32>
    %c0_109 = arith.constant 0 : index
    %c0_110 = arith.constant 0 : index
    %c0_111 = arith.constant 0 : index
    %137 = vector.load %arg15[%c0_109, %c0_110, %c0_111] : memref<2x32x64xf32, #tpu.memory_space<vmem>>, vector<1x32x64xf32>
    %138 = vector.shape_cast %137 : vector<1x32x64xf32> to vector<32x64xf32>
    %cst_112 = arith.constant dense<0.000000e+00> : vector<5x64xf32>
    %139 = tpu.matmul %136, %138, %cst_112 {dimension_numbers = #tpu.dot_dimension_numbers<[1], [0], [0], [1], [0, 0, 1, 1], [], []>} : vector<5x32xf32>, vector<32x64xf32>, vector<5x64xf32> -> vector<5x64xf32>
    %c0_113 = arith.constant 0 : index
    %c0_114 = arith.constant 0 : index
    %c0_115 = arith.constant 0 : index
    %140 = vector.load %arg16[%c0_113, %c0_114, %c0_115] : memref<2x1x64xf32, #tpu.memory_space<vmem>>, vector<1x1x64xf32>
    %141 = vector.shape_cast %140 : vector<1x1x64xf32> to vector<1x64xf32>
    %142 = vector.broadcast %141 : vector<1x64xf32> to vector<5x64xf32>
    %143 = arith.addf %139, %142 : vector<5x64xf32>
    %cst_116 = arith.constant 5.000000e-01 : f32
    %144 = vector.broadcast %cst_116 : f32 to vector<5x64xf32>
    %145 = arith.mulf %144, %143 : vector<5x64xf32>
    %cst_117 = arith.constant 4.471500e-02 : f32
    %146 = vector.broadcast %cst_117 : f32 to vector<5x64xf32>
    %147 = arith.mulf %146, %143 : vector<5x64xf32>
    %148 = arith.mulf %147, %143 : vector<5x64xf32>
    %149 = arith.mulf %148, %143 : vector<5x64xf32>
    %150 = arith.addf %143, %149 : vector<5x64xf32>
    %cst_118 = arith.constant 0.797884583 : f32
    %151 = vector.broadcast %cst_118 : f32 to vector<5x64xf32>
    %152 = arith.mulf %151, %150 : vector<5x64xf32>
    %153 = math.tanh %152 : vector<5x64xf32>
    %cst_119 = arith.constant 1.000000e+00 : f32
    %154 = vector.broadcast %cst_119 : f32 to vector<5x64xf32>
    %155 = arith.addf %154, %153 : vector<5x64xf32>
    %156 = arith.mulf %145, %155 : vector<5x64xf32>
    %c0_120 = arith.constant 0 : index
    %c0_121 = arith.constant 0 : index
    %c0_122 = arith.constant 0 : index
    %157 = vector.load %arg17[%c0_120, %c0_121, %c0_122] : memref<2x64x32xf32, #tpu.memory_space<vmem>>, vector<1x64x32xf32>
    %158 = vector.shape_cast %157 : vector<1x64x32xf32> to vector<64x32xf32>
    %cst_123 = arith.constant dense<0.000000e+00> : vector<5x32xf32>
    %159 = tpu.matmul %156, %158, %cst_123 {dimension_numbers = #tpu.dot_dimension_numbers<[1], [0], [0], [1], [0, 0, 1, 1], [], []>} : vector<5x64xf32>, vector<64x32xf32>, vector<5x32xf32> -> vector<5x32xf32>
    %160 = arith.addf %112, %159 : vector<5x32xf32>
    %c0_124 = arith.constant 0 : index
    %c0_125 = arith.constant 0 : index
    %c0_126 = arith.constant 0 : index
    %161 = vector.load %arg18[%c0_124, %c0_125, %c0_126] : memref<2x1x32xf32, #tpu.memory_space<vmem>>, vector<1x1x32xf32>
    %162 = vector.shape_cast %161 : vector<1x1x32xf32> to vector<1x32xf32>
    %163 = vector.broadcast %162 : vector<1x32xf32> to vector<5x32xf32>
    %164 = arith.addf %160, %163 : vector<5x32xf32>
    %c1_127 = arith.constant 1 : index
    %c0_128 = arith.constant 0 : index
    %c0_129 = arith.constant 0 : index
    %165 = vector.load %arg3[%c1_127, %c0_128, %c0_129] : memref<2x1x32xf32, #tpu.memory_space<vmem>>, vector<1x1x32xf32>
    %166 = vector.shape_cast %165 : vector<1x1x32xf32> to vector<1x32xf32>
    %c1_130 = arith.constant 1 : index
    %c0_131 = arith.constant 0 : index
    %c0_132 = arith.constant 0 : index
    %167 = vector.load %arg4[%c1_130, %c0_131, %c0_132] : memref<2x1x32xf32, #tpu.memory_space<vmem>>, vector<1x1x32xf32>
    %168 = vector.shape_cast %167 : vector<1x1x32xf32> to vector<1x32xf32>
    %cst_133 = arith.constant dense<0.000000e+00> : vector<5xf32>
    %169 = vector.multi_reduction <add>, %164, %cst_133 [1] : vector<5x32xf32> to vector<5xf32>
    %170 = vector.shape_cast %169 : vector<5xf32> to vector<5x1xf32>
    %cst_134 = arith.constant 3.125000e-02 : f32
    %171 = vector.broadcast %cst_134 : f32 to vector<5x1xf32>
    %172 = arith.mulf %170, %171 : vector<5x1xf32>
    %173 = vector.broadcast %172 : vector<5x1xf32> to vector<5x32xf32>
    %174 = arith.subf %164, %173 : vector<5x32xf32>
    %175 = arith.mulf %174, %174 : vector<5x32xf32>
    %cst_135 = arith.constant dense<0.000000e+00> : vector<5xf32>
    %176 = vector.multi_reduction <add>, %175, %cst_135 [1] : vector<5x32xf32> to vector<5xf32>
    %177 = vector.shape_cast %176 : vector<5xf32> to vector<5x1xf32>
    %cst_136 = arith.constant 3.125000e-02 : f32
    %178 = vector.broadcast %cst_136 : f32 to vector<5x1xf32>
    %179 = arith.mulf %177, %178 : vector<5x1xf32>
    %cst_137 = arith.constant 9.99999974E-6 : f32
    %180 = vector.broadcast %cst_137 : f32 to vector<5x1xf32>
    %181 = arith.addf %179, %180 : vector<5x1xf32>
    %182 = math.rsqrt %181 : vector<5x1xf32>
    %183 = vector.broadcast %182 : vector<5x1xf32> to vector<5x32xf32>
    %184 = arith.mulf %174, %183 : vector<5x32xf32>
    %185 = vector.broadcast %166 : vector<1x32xf32> to vector<5x32xf32>
    %186 = arith.mulf %184, %185 : vector<5x32xf32>
    %187 = vector.broadcast %168 : vector<1x32xf32> to vector<5x32xf32>
    %188 = arith.addf %186, %187 : vector<5x32xf32>
    %cst_138 = arith.constant 0.000000e+00 : f32
    %189 = vector.broadcast %cst_138 : f32 to vector<5x32xf32>
    %c1_139 = arith.constant 1 : index
    %c0_140 = arith.constant 0 : index
    %c0_141 = arith.constant 0 : index
    %c0_142 = arith.constant 0 : index
    %190 = vector.load %arg5[%c1_139, %c0_140, %c0_141, %c0_142] : memref<2x2x32x16xf32, #tpu.memory_space<vmem>>, vector<1x1x32x16xf32>
    %191 = vector.shape_cast %190 : vector<1x1x32x16xf32> to vector<32x16xf32>
    %cst_143 = arith.constant dense<0.000000e+00> : vector<5x16xf32>
    %192 = tpu.matmul %188, %191, %cst_143 {dimension_numbers = #tpu.dot_dimension_numbers<[1], [0], [0], [1], [0, 0, 1, 1], [], []>} : vector<5x32xf32>, vector<32x16xf32>, vector<5x16xf32> -> vector<5x16xf32>
    %c1_144 = arith.constant 1 : index
    %c0_145 = arith.constant 0 : index
    %c0_146 = arith.constant 0 : index
    %c0_147 = arith.constant 0 : index
    %193 = vector.load %arg6[%c1_144, %c0_145, %c0_146, %c0_147] : memref<2x2x1x16xf32, #tpu.memory_space<vmem>>, vector<1x1x1x16xf32>
    %194 = vector.shape_cast %193 : vector<1x1x1x16xf32> to vector<1x16xf32>
    %195 = vector.broadcast %194 : vector<1x16xf32> to vector<5x16xf32>
    %196 = arith.addf %192, %195 : vector<5x16xf32>
    %c1_148 = arith.constant 1 : index
    %c0_149 = arith.constant 0 : index
    %c0_150 = arith.constant 0 : index
    %c0_151 = arith.constant 0 : index
    %197 = vector.load %arg7[%c1_148, %c0_149, %c0_150, %c0_151] : memref<2x2x32x16xf32, #tpu.memory_space<vmem>>, vector<1x1x32x16xf32>
    %198 = vector.shape_cast %197 : vector<1x1x32x16xf32> to vector<32x16xf32>
    %cst_152 = arith.constant dense<0.000000e+00> : vector<5x16xf32>
    %199 = tpu.matmul %188, %198, %cst_152 {dimension_numbers = #tpu.dot_dimension_numbers<[1], [0], [0], [1], [0, 0, 1, 1], [], []>} : vector<5x32xf32>, vector<32x16xf32>, vector<5x16xf32> -> vector<5x16xf32>
    %c1_153 = arith.constant 1 : index
    %c0_154 = arith.constant 0 : index
    %c0_155 = arith.constant 0 : index
    %c0_156 = arith.constant 0 : index
    %200 = vector.load %arg8[%c1_153, %c0_154, %c0_155, %c0_156] : memref<2x2x1x16xf32, #tpu.memory_space<vmem>>, vector<1x1x1x16xf32>
    %201 = vector.shape_cast %200 : vector<1x1x1x16xf32> to vector<1x16xf32>
    %202 = vector.broadcast %201 : vector<1x16xf32> to vector<5x16xf32>
    %203 = arith.addf %199, %202 : vector<5x16xf32>
    %c1_157 = arith.constant 1 : index
    %c0_158 = arith.constant 0 : index
    %c0_159 = arith.constant 0 : index
    %c0_160 = arith.constant 0 : index
    %204 = vector.load %arg9[%c1_157, %c0_158, %c0_159, %c0_160] : memref<2x2x32x16xf32, #tpu.memory_space<vmem>>, vector<1x1x32x16xf32>
    %205 = vector.shape_cast %204 : vector<1x1x32x16xf32> to vector<32x16xf32>
    %cst_161 = arith.constant dense<0.000000e+00> : vector<5x16xf32>
    %206 = tpu.matmul %188, %205, %cst_161 {dimension_numbers = #tpu.dot_dimension_numbers<[1], [0], [0], [1], [0, 0, 1, 1], [], []>} : vector<5x32xf32>, vector<32x16xf32>, vector<5x16xf32> -> vector<5x16xf32>
    %c1_162 = arith.constant 1 : index
    %c0_163 = arith.constant 0 : index
    %c0_164 = arith.constant 0 : index
    %c0_165 = arith.constant 0 : index
    %207 = vector.load %arg10[%c1_162, %c0_163, %c0_164, %c0_165] : memref<2x2x1x16xf32, #tpu.memory_space<vmem>>, vector<1x1x1x16xf32>
    %208 = vector.shape_cast %207 : vector<1x1x1x16xf32> to vector<1x16xf32>
    %209 = vector.broadcast %208 : vector<1x16xf32> to vector<5x16xf32>
    %210 = arith.addf %206, %209 : vector<5x16xf32>
    %cst_166 = arith.constant dense<0.000000e+00> : vector<5x5xf32>
    %211 = tpu.matmul %196, %203, %cst_166 {dimension_numbers = #tpu.dot_dimension_numbers<[1], [1], [0], [0], [0, 0, 1, 0], [], []>} : vector<5x16xf32>, vector<5x16xf32>, vector<5x5xf32> -> vector<5x5xf32>
    %cst_167 = arith.constant dense<0xFF800000> : vector<5xf32>
    %212 = vector.multi_reduction <maximumf>, %211, %cst_167 [1] : vector<5x5xf32> to vector<5xf32>
    %213 = vector.shape_cast %212 : vector<5xf32> to vector<5x1xf32>
    %214 = vector.broadcast %213 : vector<5x1xf32> to vector<5x5xf32>
    %215 = arith.subf %211, %214 : vector<5x5xf32>
    %216 = math.exp %215 : vector<5x5xf32>
    %cst_168 = arith.constant dense<0.000000e+00> : vector<5xf32>
    %217 = vector.multi_reduction <add>, %216, %cst_168 [1] : vector<5x5xf32> to vector<5xf32>
    %218 = vector.shape_cast %217 : vector<5xf32> to vector<5x1xf32>
    %219 = tpu.reciprocal %218 {approx = true} : vector<5x1xf32> -> vector<5x1xf32>
    %220 = vector.broadcast %219 : vector<5x1xf32> to vector<5x5xf32>
    %221 = arith.mulf %216, %220 : vector<5x5xf32>
    %cst_169 = arith.constant dense<0.000000e+00> : vector<5x16xf32>
    %222 = tpu.matmul %221, %210, %cst_169 {dimension_numbers = #tpu.dot_dimension_numbers<[1], [0], [0], [1], [0, 0, 1, 1], [], []>} : vector<5x5xf32>, vector<5x16xf32>, vector<5x16xf32> -> vector<5x16xf32>
    %c1_170 = arith.constant 1 : index
    %c0_171 = arith.constant 0 : index
    %c0_172 = arith.constant 0 : index
    %c0_173 = arith.constant 0 : index
    %223 = vector.load %arg11[%c1_170, %c0_171, %c0_172, %c0_173] : memref<2x2x16x32xf32, #tpu.memory_space<vmem>>, vector<1x1x16x32xf32>
    %224 = vector.shape_cast %223 : vector<1x1x16x32xf32> to vector<16x32xf32>
    %cst_174 = arith.constant dense<0.000000e+00> : vector<5x32xf32>
    %225 = tpu.matmul %222, %224, %cst_174 {dimension_numbers = #tpu.dot_dimension_numbers<[1], [0], [0], [1], [0, 0, 1, 1], [], []>} : vector<5x16xf32>, vector<16x32xf32>, vector<5x32xf32> -> vector<5x32xf32>
    %226 = arith.addf %189, %225 : vector<5x32xf32>
    %c1_175 = arith.constant 1 : index
    %c1_176 = arith.constant 1 : index
    %c0_177 = arith.constant 0 : index
    %c0_178 = arith.constant 0 : index
    %227 = vector.load %arg5[%c1_175, %c1_176, %c0_177, %c0_178] : memref<2x2x32x16xf32, #tpu.memory_space<vmem>>, vector<1x1x32x16xf32>
    %228 = vector.shape_cast %227 : vector<1x1x32x16xf32> to vector<32x16xf32>
    %cst_179 = arith.constant dense<0.000000e+00> : vector<5x16xf32>
    %229 = tpu.matmul %188, %228, %cst_179 {dimension_numbers = #tpu.dot_dimension_numbers<[1], [0], [0], [1], [0, 0, 1, 1], [], []>} : vector<5x32xf32>, vector<32x16xf32>, vector<5x16xf32> -> vector<5x16xf32>
    %c1_180 = arith.constant 1 : index
    %c1_181 = arith.constant 1 : index
    %c0_182 = arith.constant 0 : index
    %c0_183 = arith.constant 0 : index
    %230 = vector.load %arg6[%c1_180, %c1_181, %c0_182, %c0_183] : memref<2x2x1x16xf32, #tpu.memory_space<vmem>>, vector<1x1x1x16xf32>
    %231 = vector.shape_cast %230 : vector<1x1x1x16xf32> to vector<1x16xf32>
    %232 = vector.broadcast %231 : vector<1x16xf32> to vector<5x16xf32>
    %233 = arith.addf %229, %232 : vector<5x16xf32>
    %c1_184 = arith.constant 1 : index
    %c1_185 = arith.constant 1 : index
    %c0_186 = arith.constant 0 : index
    %c0_187 = arith.constant 0 : index
    %234 = vector.load %arg7[%c1_184, %c1_185, %c0_186, %c0_187] : memref<2x2x32x16xf32, #tpu.memory_space<vmem>>, vector<1x1x32x16xf32>
    %235 = vector.shape_cast %234 : vector<1x1x32x16xf32> to vector<32x16xf32>
    %cst_188 = arith.constant dense<0.000000e+00> : vector<5x16xf32>
    %236 = tpu.matmul %188, %235, %cst_188 {dimension_numbers = #tpu.dot_dimension_numbers<[1], [0], [0], [1], [0, 0, 1, 1], [], []>} : vector<5x32xf32>, vector<32x16xf32>, vector<5x16xf32> -> vector<5x16xf32>
    %c1_189 = arith.constant 1 : index
    %c1_190 = arith.constant 1 : index
    %c0_191 = arith.constant 0 : index
    %c0_192 = arith.constant 0 : index
    %237 = vector.load %arg8[%c1_189, %c1_190, %c0_191, %c0_192] : memref<2x2x1x16xf32, #tpu.memory_space<vmem>>, vector<1x1x1x16xf32>
    %238 = vector.shape_cast %237 : vector<1x1x1x16xf32> to vector<1x16xf32>
    %239 = vector.broadcast %238 : vector<1x16xf32> to vector<5x16xf32>
    %240 = arith.addf %236, %239 : vector<5x16xf32>
    %c1_193 = arith.constant 1 : index
    %c1_194 = arith.constant 1 : index
    %c0_195 = arith.constant 0 : index
    %c0_196 = arith.constant 0 : index
    %241 = vector.load %arg9[%c1_193, %c1_194, %c0_195, %c0_196] : memref<2x2x32x16xf32, #tpu.memory_space<vmem>>, vector<1x1x32x16xf32>
    %242 = vector.shape_cast %241 : vector<1x1x32x16xf32> to vector<32x16xf32>
    %cst_197 = arith.constant dense<0.000000e+00> : vector<5x16xf32>
    %243 = tpu.matmul %188, %242, %cst_197 {dimension_numbers = #tpu.dot_dimension_numbers<[1], [0], [0], [1], [0, 0, 1, 1], [], []>} : vector<5x32xf32>, vector<32x16xf32>, vector<5x16xf32> -> vector<5x16xf32>
    %c1_198 = arith.constant 1 : index
    %c1_199 = arith.constant 1 : index
    %c0_200 = arith.constant 0 : index
    %c0_201 = arith.constant 0 : index
    %244 = vector.load %arg10[%c1_198, %c1_199, %c0_200, %c0_201] : memref<2x2x1x16xf32, #tpu.memory_space<vmem>>, vector<1x1x1x16xf32>
    %245 = vector.shape_cast %244 : vector<1x1x1x16xf32> to vector<1x16xf32>
    %246 = vector.broadcast %245 : vector<1x16xf32> to vector<5x16xf32>
    %247 = arith.addf %243, %246 : vector<5x16xf32>
    %cst_202 = arith.constant dense<0.000000e+00> : vector<5x5xf32>
    %248 = tpu.matmul %233, %240, %cst_202 {dimension_numbers = #tpu.dot_dimension_numbers<[1], [1], [0], [0], [0, 0, 1, 0], [], []>} : vector<5x16xf32>, vector<5x16xf32>, vector<5x5xf32> -> vector<5x5xf32>
    %cst_203 = arith.constant dense<0xFF800000> : vector<5xf32>
    %249 = vector.multi_reduction <maximumf>, %248, %cst_203 [1] : vector<5x5xf32> to vector<5xf32>
    %250 = vector.shape_cast %249 : vector<5xf32> to vector<5x1xf32>
    %251 = vector.broadcast %250 : vector<5x1xf32> to vector<5x5xf32>
    %252 = arith.subf %248, %251 : vector<5x5xf32>
    %253 = math.exp %252 : vector<5x5xf32>
    %cst_204 = arith.constant dense<0.000000e+00> : vector<5xf32>
    %254 = vector.multi_reduction <add>, %253, %cst_204 [1] : vector<5x5xf32> to vector<5xf32>
    %255 = vector.shape_cast %254 : vector<5xf32> to vector<5x1xf32>
    %256 = tpu.reciprocal %255 {approx = true} : vector<5x1xf32> -> vector<5x1xf32>
    %257 = vector.broadcast %256 : vector<5x1xf32> to vector<5x5xf32>
    %258 = arith.mulf %253, %257 : vector<5x5xf32>
    %cst_205 = arith.constant dense<0.000000e+00> : vector<5x16xf32>
    %259 = tpu.matmul %258, %247, %cst_205 {dimension_numbers = #tpu.dot_dimension_numbers<[1], [0], [0], [1], [0, 0, 1, 1], [], []>} : vector<5x5xf32>, vector<5x16xf32>, vector<5x16xf32> -> vector<5x16xf32>
    %c1_206 = arith.constant 1 : index
    %c1_207 = arith.constant 1 : index
    %c0_208 = arith.constant 0 : index
    %c0_209 = arith.constant 0 : index
    %260 = vector.load %arg11[%c1_206, %c1_207, %c0_208, %c0_209] : memref<2x2x16x32xf32, #tpu.memory_space<vmem>>, vector<1x1x16x32xf32>
    %261 = vector.shape_cast %260 : vector<1x1x16x32xf32> to vector<16x32xf32>
    %cst_210 = arith.constant dense<0.000000e+00> : vector<5x32xf32>
    %262 = tpu.matmul %259, %261, %cst_210 {dimension_numbers = #tpu.dot_dimension_numbers<[1], [0], [0], [1], [0, 0, 1, 1], [], []>} : vector<5x16xf32>, vector<16x32xf32>, vector<5x32xf32> -> vector<5x32xf32>
    %263 = arith.addf %226, %262 : vector<5x32xf32>
    %264 = arith.addf %164, %263 : vector<5x32xf32>
    %c1_211 = arith.constant 1 : index
    %c0_212 = arith.constant 0 : index
    %c0_213 = arith.constant 0 : index
    %265 = vector.load %arg12[%c1_211, %c0_212, %c0_213] : memref<2x1x32xf32, #tpu.memory_space<vmem>>, vector<1x1x32xf32>
    %266 = vector.shape_cast %265 : vector<1x1x32xf32> to vector<1x32xf32>
    %267 = vector.broadcast %266 : vector<1x32xf32> to vector<5x32xf32>
    %268 = arith.addf %264, %267 : vector<5x32xf32>
    %c1_214 = arith.constant 1 : index
    %c0_215 = arith.constant 0 : index
    %c0_216 = arith.constant 0 : index
    %269 = vector.load %arg13[%c1_214, %c0_215, %c0_216] : memref<2x1x32xf32, #tpu.memory_space<vmem>>, vector<1x1x32xf32>
    %270 = vector.shape_cast %269 : vector<1x1x32xf32> to vector<1x32xf32>
    %c1_217 = arith.constant 1 : index
    %c0_218 = arith.constant 0 : index
    %c0_219 = arith.constant 0 : index
    %271 = vector.load %arg14[%c1_217, %c0_218, %c0_219] : memref<2x1x32xf32, #tpu.memory_space<vmem>>, vector<1x1x32xf32>
    %272 = vector.shape_cast %271 : vector<1x1x32xf32> to vector<1x32xf32>
    %cst_220 = arith.constant dense<0.000000e+00> : vector<5xf32>
    %273 = vector.multi_reduction <add>, %268, %cst_220 [1] : vector<5x32xf32> to vector<5xf32>
    %274 = vector.shape_cast %273 : vector<5xf32> to vector<5x1xf32>
    %cst_221 = arith.constant 3.125000e-02 : f32
    %275 = vector.broadcast %cst_221 : f32 to vector<5x1xf32>
    %276 = arith.mulf %274, %275 : vector<5x1xf32>
    %277 = vector.broadcast %276 : vector<5x1xf32> to vector<5x32xf32>
    %278 = arith.subf %268, %277 : vector<5x32xf32>
    %279 = arith.mulf %278, %278 : vector<5x32xf32>
    %cst_222 = arith.constant dense<0.000000e+00> : vector<5xf32>
    %280 = vector.multi_reduction <add>, %279, %cst_222 [1] : vector<5x32xf32> to vector<5xf32>
    %281 = vector.shape_cast %280 : vector<5xf32> to vector<5x1xf32>
    %cst_223 = arith.constant 3.125000e-02 : f32
    %282 = vector.broadcast %cst_223 : f32 to vector<5x1xf32>
    %283 = arith.mulf %281, %282 : vector<5x1xf32>
    %cst_224 = arith.constant 9.99999974E-6 : f32
    %284 = vector.broadcast %cst_224 : f32 to vector<5x1xf32>
    %285 = arith.addf %283, %284 : vector<5x1xf32>
    %286 = math.rsqrt %285 : vector<5x1xf32>
    %287 = vector.broadcast %286 : vector<5x1xf32> to vector<5x32xf32>
    %288 = arith.mulf %278, %287 : vector<5x32xf32>
    %289 = vector.broadcast %270 : vector<1x32xf32> to vector<5x32xf32>
    %290 = arith.mulf %288, %289 : vector<5x32xf32>
    %291 = vector.broadcast %272 : vector<1x32xf32> to vector<5x32xf32>
    %292 = arith.addf %290, %291 : vector<5x32xf32>
    %c1_225 = arith.constant 1 : index
    %c0_226 = arith.constant 0 : index
    %c0_227 = arith.constant 0 : index
    %293 = vector.load %arg15[%c1_225, %c0_226, %c0_227] : memref<2x32x64xf32, #tpu.memory_space<vmem>>, vector<1x32x64xf32>
    %294 = vector.shape_cast %293 : vector<1x32x64xf32> to vector<32x64xf32>
    %cst_228 = arith.constant dense<0.000000e+00> : vector<5x64xf32>
    %295 = tpu.matmul %292, %294, %cst_228 {dimension_numbers = #tpu.dot_dimension_numbers<[1], [0], [0], [1], [0, 0, 1, 1], [], []>} : vector<5x32xf32>, vector<32x64xf32>, vector<5x64xf32> -> vector<5x64xf32>
    %c1_229 = arith.constant 1 : index
    %c0_230 = arith.constant 0 : index
    %c0_231 = arith.constant 0 : index
    %296 = vector.load %arg16[%c1_229, %c0_230, %c0_231] : memref<2x1x64xf32, #tpu.memory_space<vmem>>, vector<1x1x64xf32>
    %297 = vector.shape_cast %296 : vector<1x1x64xf32> to vector<1x64xf32>
    %298 = vector.broadcast %297 : vector<1x64xf32> to vector<5x64xf32>
    %299 = arith.addf %295, %298 : vector<5x64xf32>
    %cst_232 = arith.constant 5.000000e-01 : f32
    %300 = vector.broadcast %cst_232 : f32 to vector<5x64xf32>
    %301 = arith.mulf %300, %299 : vector<5x64xf32>
    %cst_233 = arith.constant 4.471500e-02 : f32
    %302 = vector.broadcast %cst_233 : f32 to vector<5x64xf32>
    %303 = arith.mulf %302, %299 : vector<5x64xf32>
    %304 = arith.mulf %303, %299 : vector<5x64xf32>
    %305 = arith.mulf %304, %299 : vector<5x64xf32>
    %306 = arith.addf %299, %305 : vector<5x64xf32>
    %cst_234 = arith.constant 0.797884583 : f32
    %307 = vector.broadcast %cst_234 : f32 to vector<5x64xf32>
    %308 = arith.mulf %307, %306 : vector<5x64xf32>
    %309 = math.tanh %308 : vector<5x64xf32>
    %cst_235 = arith.constant 1.000000e+00 : f32
    %310 = vector.broadcast %cst_235 : f32 to vector<5x64xf32>
    %311 = arith.addf %310, %309 : vector<5x64xf32>
    %312 = arith.mulf %301, %311 : vector<5x64xf32>
    %c1_236 = arith.constant 1 : index
    %c0_237 = arith.constant 0 : index
    %c0_238 = arith.constant 0 : index
    %313 = vector.load %arg17[%c1_236, %c0_237, %c0_238] : memref<2x64x32xf32, #tpu.memory_space<vmem>>, vector<1x64x32xf32>
    %314 = vector.shape_cast %313 : vector<1x64x32xf32> to vector<64x32xf32>
    %cst_239 = arith.constant dense<0.000000e+00> : vector<5x32xf32>
    %315 = tpu.matmul %312, %314, %cst_239 {dimension_numbers = #tpu.dot_dimension_numbers<[1], [0], [0], [1], [0, 0, 1, 1], [], []>} : vector<5x64xf32>, vector<64x32xf32>, vector<5x32xf32> -> vector<5x32xf32>
    %316 = arith.addf %268, %315 : vector<5x32xf32>
    %c1_240 = arith.constant 1 : index
    %c0_241 = arith.constant 0 : index
    %c0_242 = arith.constant 0 : index
    %317 = vector.load %arg18[%c1_240, %c0_241, %c0_242] : memref<2x1x32xf32, #tpu.memory_space<vmem>>, vector<1x1x32xf32>
    %318 = vector.shape_cast %317 : vector<1x1x32xf32> to vector<1x32xf32>
    %319 = vector.broadcast %318 : vector<1x32xf32> to vector<5x32xf32>
    %320 = arith.addf %316, %319 : vector<5x32xf32>
    %c0_243 = arith.constant 0 : index
    %c0_244 = arith.constant 0 : index
    %321 = vector.load %arg19[%c0_243, %c0_244] : memref<1x32xf32, #tpu.memory_space<vmem>>, vector<1x32xf32>
    %c0_245 = arith.constant 0 : index
    %c0_246 = arith.constant 0 : index
    %322 = vector.load %arg20[%c0_245, %c0_246] : memref<1x32xf32, #tpu.memory_space<vmem>>, vector<1x32xf32>
    %cst_247 = arith.constant dense<0.000000e+00> : vector<5xf32>
    %323 = vector.multi_reduction <add>, %320, %cst_247 [1] : vector<5x32xf32> to vector<5xf32>
    %324 = vector.shape_cast %323 : vector<5xf32> to vector<5x1xf32>
    %cst_248 = arith.constant 3.125000e-02 : f32
    %325 = vector.broadcast %cst_248 : f32 to vector<5x1xf32>
    %326 = arith.mulf %324, %325 : vector<5x1xf32>
    %327 = vector.broadcast %326 : vector<5x1xf32> to vector<5x32xf32>
    %328 = arith.subf %320, %327 : vector<5x32xf32>
    %329 = arith.mulf %328, %328 : vector<5x32xf32>
    %cst_249 = arith.constant dense<0.000000e+00> : vector<5xf32>
    %330 = vector.multi_reduction <add>, %329, %cst_249 [1] : vector<5x32xf32> to vector<5xf32>
    %331 = vector.shape_cast %330 : vector<5xf32> to vector<5x1xf32>
    %cst_250 = arith.constant 3.125000e-02 : f32
    %332 = vector.broadcast %cst_250 : f32 to vector<5x1xf32>
    %333 = arith.mulf %331, %332 : vector<5x1xf32>
    %cst_251 = arith.constant 9.99999974E-6 : f32
    %334 = vector.broadcast %cst_251 : f32 to vector<5x1xf32>
    %335 = arith.addf %333, %334 : vector<5x1xf32>
    %336 = math.rsqrt %335 : vector<5x1xf32>
    %337 = vector.broadcast %336 : vector<5x1xf32> to vector<5x32xf32>
    %338 = arith.mulf %328, %337 : vector<5x32xf32>
    %339 = vector.broadcast %321 : vector<1x32xf32> to vector<5x32xf32>
    %340 = arith.mulf %338, %339 : vector<5x32xf32>
    %341 = vector.broadcast %322 : vector<1x32xf32> to vector<5x32xf32>
    %342 = arith.addf %340, %341 : vector<5x32xf32>
    %cst_252 = arith.constant dense<0.000000e+00> : vector<4x5xf32>
    %343 = tpu.matmul %2, %342, %cst_252 {dimension_numbers = #tpu.dot_dimension_numbers<[1], [1], [0], [0], [0, 0, 1, 0], [], []>} : vector<4x32xf32>, vector<5x32xf32>, vector<4x5xf32> -> vector<4x5xf32>
    %cst_253 = arith.constant dense<0.000000e+00> : vector<4x256xf32>
    %344 = tpu.matmul %343, %4, %cst_253 {dimension_numbers = #tpu.dot_dimension_numbers<[1], [0], [0], [1], [0, 0, 1, 1], [], []>} : vector<4x5xf32>, vector<5x256xf32>, vector<4x256xf32> -> vector<4x256xf32>
    %345 = vector.broadcast %3 : vector<4x1xf32> to vector<4x256xf32>
    %346 = arith.addf %344, %345 : vector<4x256xf32>
    %c0_254 = arith.constant 0 : index
    %c0_255 = arith.constant 0 : index
    %c0_256 = arith.constant 0 : index
    %347 = vector.load %arg24[%c0_254, %c0_255, %c0_256] : memref<2x4x256xf32, #tpu.memory_space<vmem>>, vector<1x4x256xf32>
    %348 = vector.shape_cast %347 : vector<1x4x256xf32> to vector<4x256xf32>
    %349 = vector.shape_cast %346 : vector<4x256xf32> to vector<1x4x256xf32>
    tpu.vector_store %arg24[%c0_254, %c0_255, %c0_256], %349 {strides = array<i32>} : memref<2x4x256xf32, #tpu.memory_space<vmem>>, vector<1x4x256xf32>,
    %c1_257 = arith.constant 1 : index
    %c0_258 = arith.constant 0 : index
    %c0_259 = arith.constant 0 : index
    %350 = vector.load %arg0[%c1_257, %c0_258, %c0_259] : memref<2x5x192xf32, #tpu.memory_space<vmem>>, vector<1x5x192xf32>
    %351 = vector.shape_cast %350 : vector<1x5x192xf32> to vector<5x192xf32>
    %cst_260 = arith.constant dense<0.000000e+00> : vector<5x32xf32>
    %352 = tpu.matmul %351, %0, %cst_260 {dimension_numbers = #tpu.dot_dimension_numbers<[1], [0], [0], [1], [0, 0, 1, 1], [], []>} : vector<5x192xf32>, vector<192x32xf32>, vector<5x32xf32> -> vector<5x32xf32>
    %353 = arith.addf %352, %1 : vector<5x32xf32>
    %c0_261 = arith.constant 0 : index
    %c0_262 = arith.constant 0 : index
    %c0_263 = arith.constant 0 : index
    %354 = vector.load %arg3[%c0_261, %c0_262, %c0_263] : memref<2x1x32xf32, #tpu.memory_space<vmem>>, vector<1x1x32xf32>
    %355 = vector.shape_cast %354 : vector<1x1x32xf32> to vector<1x32xf32>
    %c0_264 = arith.constant 0 : index
    %c0_265 = arith.constant 0 : index
    %c0_266 = arith.constant 0 : index
    %356 = vector.load %arg4[%c0_264, %c0_265, %c0_266] : memref<2x1x32xf32, #tpu.memory_space<vmem>>, vector<1x1x32xf32>
    %357 = vector.shape_cast %356 : vector<1x1x32xf32> to vector<1x32xf32>
    %cst_267 = arith.constant dense<0.000000e+00> : vector<5xf32>
    %358 = vector.multi_reduction <add>, %353, %cst_267 [1] : vector<5x32xf32> to vector<5xf32>
    %359 = vector.shape_cast %358 : vector<5xf32> to vector<5x1xf32>
    %cst_268 = arith.constant 3.125000e-02 : f32
    %360 = vector.broadcast %cst_268 : f32 to vector<5x1xf32>
    %361 = arith.mulf %359, %360 : vector<5x1xf32>
    %362 = vector.broadcast %361 : vector<5x1xf32> to vector<5x32xf32>
    %363 = arith.subf %353, %362 : vector<5x32xf32>
    %364 = arith.mulf %363, %363 : vector<5x32xf32>
    %cst_269 = arith.constant dense<0.000000e+00> : vector<5xf32>
    %365 = vector.multi_reduction <add>, %364, %cst_269 [1] : vector<5x32xf32> to vector<5xf32>
    %366 = vector.shape_cast %365 : vector<5xf32> to vector<5x1xf32>
    %cst_270 = arith.constant 3.125000e-02 : f32
    %367 = vector.broadcast %cst_270 : f32 to vector<5x1xf32>
    %368 = arith.mulf %366, %367 : vector<5x1xf32>
    %cst_271 = arith.constant 9.99999974E-6 : f32
    %369 = vector.broadcast %cst_271 : f32 to vector<5x1xf32>
    %370 = arith.addf %368, %369 : vector<5x1xf32>
    %371 = math.rsqrt %370 : vector<5x1xf32>
    %372 = vector.broadcast %371 : vector<5x1xf32> to vector<5x32xf32>
    %373 = arith.mulf %363, %372 : vector<5x32xf32>
    %374 = vector.broadcast %355 : vector<1x32xf32> to vector<5x32xf32>
    %375 = arith.mulf %373, %374 : vector<5x32xf32>
    %376 = vector.broadcast %357 : vector<1x32xf32> to vector<5x32xf32>
    %377 = arith.addf %375, %376 : vector<5x32xf32>
    %cst_272 = arith.constant 0.000000e+00 : f32
    %378 = vector.broadcast %cst_272 : f32 to vector<5x32xf32>
    %c0_273 = arith.constant 0 : index
    %c0_274 = arith.constant 0 : index
    %c0_275 = arith.constant 0 : index
    %c0_276 = arith.constant 0 : index
    %379 = vector.load %arg5[%c0_273, %c0_274, %c0_275, %c0_276] : memref<2x2x32x16xf32, #tpu.memory_space<vmem>>, vector<1x1x32x16xf32>
    %380 = vector.shape_cast %379 : vector<1x1x32x16xf32> to vector<32x16xf32>
    %cst_277 = arith.constant dense<0.000000e+00> : vector<5x16xf32>
    %381 = tpu.matmul %377, %380, %cst_277 {dimension_numbers = #tpu.dot_dimension_numbers<[1], [0], [0], [1], [0, 0, 1, 1], [], []>} : vector<5x32xf32>, vector<32x16xf32>, vector<5x16xf32> -> vector<5x16xf32>
    %c0_278 = arith.constant 0 : index
    %c0_279 = arith.constant 0 : index
    %c0_280 = arith.constant 0 : index
    %c0_281 = arith.constant 0 : index
    %382 = vector.load %arg6[%c0_278, %c0_279, %c0_280, %c0_281] : memref<2x2x1x16xf32, #tpu.memory_space<vmem>>, vector<1x1x1x16xf32>
    %383 = vector.shape_cast %382 : vector<1x1x1x16xf32> to vector<1x16xf32>
    %384 = vector.broadcast %383 : vector<1x16xf32> to vector<5x16xf32>
    %385 = arith.addf %381, %384 : vector<5x16xf32>
    %c0_282 = arith.constant 0 : index
    %c0_283 = arith.constant 0 : index
    %c0_284 = arith.constant 0 : index
    %c0_285 = arith.constant 0 : index
    %386 = vector.load %arg7[%c0_282, %c0_283, %c0_284, %c0_285] : memref<2x2x32x16xf32, #tpu.memory_space<vmem>>, vector<1x1x32x16xf32>
    %387 = vector.shape_cast %386 : vector<1x1x32x16xf32> to vector<32x16xf32>
    %cst_286 = arith.constant dense<0.000000e+00> : vector<5x16xf32>
    %388 = tpu.matmul %377, %387, %cst_286 {dimension_numbers = #tpu.dot_dimension_numbers<[1], [0], [0], [1], [0, 0, 1, 1], [], []>} : vector<5x32xf32>, vector<32x16xf32>, vector<5x16xf32> -> vector<5x16xf32>
    %c0_287 = arith.constant 0 : index
    %c0_288 = arith.constant 0 : index
    %c0_289 = arith.constant 0 : index
    %c0_290 = arith.constant 0 : index
    %389 = vector.load %arg8[%c0_287, %c0_288, %c0_289, %c0_290] : memref<2x2x1x16xf32, #tpu.memory_space<vmem>>, vector<1x1x1x16xf32>
    %390 = vector.shape_cast %389 : vector<1x1x1x16xf32> to vector<1x16xf32>
    %391 = vector.broadcast %390 : vector<1x16xf32> to vector<5x16xf32>
    %392 = arith.addf %388, %391 : vector<5x16xf32>
    %c0_291 = arith.constant 0 : index
    %c0_292 = arith.constant 0 : index
    %c0_293 = arith.constant 0 : index
    %c0_294 = arith.constant 0 : index
    %393 = vector.load %arg9[%c0_291, %c0_292, %c0_293, %c0_294] : memref<2x2x32x16xf32, #tpu.memory_space<vmem>>, vector<1x1x32x16xf32>
    %394 = vector.shape_cast %393 : vector<1x1x32x16xf32> to vector<32x16xf32>
    %cst_295 = arith.constant dense<0.000000e+00> : vector<5x16xf32>
    %395 = tpu.matmul %377, %394, %cst_295 {dimension_numbers = #tpu.dot_dimension_numbers<[1], [0], [0], [1], [0, 0, 1, 1], [], []>} : vector<5x32xf32>, vector<32x16xf32>, vector<5x16xf32> -> vector<5x16xf32>
    %c0_296 = arith.constant 0 : index
    %c0_297 = arith.constant 0 : index
    %c0_298 = arith.constant 0 : index
    %c0_299 = arith.constant 0 : index
    %396 = vector.load %arg10[%c0_296, %c0_297, %c0_298, %c0_299] : memref<2x2x1x16xf32, #tpu.memory_space<vmem>>, vector<1x1x1x16xf32>
    %397 = vector.shape_cast %396 : vector<1x1x1x16xf32> to vector<1x16xf32>
    %398 = vector.broadcast %397 : vector<1x16xf32> to vector<5x16xf32>
    %399 = arith.addf %395, %398 : vector<5x16xf32>
    %cst_300 = arith.constant dense<0.000000e+00> : vector<5x5xf32>
    %400 = tpu.matmul %385, %392, %cst_300 {dimension_numbers = #tpu.dot_dimension_numbers<[1], [1], [0], [0], [0, 0, 1, 0], [], []>} : vector<5x16xf32>, vector<5x16xf32>, vector<5x5xf32> -> vector<5x5xf32>
    %cst_301 = arith.constant dense<0xFF800000> : vector<5xf32>
    %401 = vector.multi_reduction <maximumf>, %400, %cst_301 [1] : vector<5x5xf32> to vector<5xf32>
    %402 = vector.shape_cast %401 : vector<5xf32> to vector<5x1xf32>
    %403 = vector.broadcast %402 : vector<5x1xf32> to vector<5x5xf32>
    %404 = arith.subf %400, %403 : vector<5x5xf32>
    %405 = math.exp %404 : vector<5x5xf32>
    %cst_302 = arith.constant dense<0.000000e+00> : vector<5xf32>
    %406 = vector.multi_reduction <add>, %405, %cst_302 [1] : vector<5x5xf32> to vector<5xf32>
    %407 = vector.shape_cast %406 : vector<5xf32> to vector<5x1xf32>
    %408 = tpu.reciprocal %407 {approx = true} : vector<5x1xf32> -> vector<5x1xf32>
    %409 = vector.broadcast %408 : vector<5x1xf32> to vector<5x5xf32>
    %410 = arith.mulf %405, %409 : vector<5x5xf32>
    %cst_303 = arith.constant dense<0.000000e+00> : vector<5x16xf32>
    %411 = tpu.matmul %410, %399, %cst_303 {dimension_numbers = #tpu.dot_dimension_numbers<[1], [0], [0], [1], [0, 0, 1, 1], [], []>} : vector<5x5xf32>, vector<5x16xf32>, vector<5x16xf32> -> vector<5x16xf32>
    %c0_304 = arith.constant 0 : index
    %c0_305 = arith.constant 0 : index
    %c0_306 = arith.constant 0 : index
    %c0_307 = arith.constant 0 : index
    %412 = vector.load %arg11[%c0_304, %c0_305, %c0_306, %c0_307] : memref<2x2x16x32xf32, #tpu.memory_space<vmem>>, vector<1x1x16x32xf32>
    %413 = vector.shape_cast %412 : vector<1x1x16x32xf32> to vector<16x32xf32>
    %cst_308 = arith.constant dense<0.000000e+00> : vector<5x32xf32>
    %414 = tpu.matmul %411, %413, %cst_308 {dimension_numbers = #tpu.dot_dimension_numbers<[1], [0], [0], [1], [0, 0, 1, 1], [], []>} : vector<5x16xf32>, vector<16x32xf32>, vector<5x32xf32> -> vector<5x32xf32>
    %415 = arith.addf %378, %414 : vector<5x32xf32>
    %c0_309 = arith.constant 0 : index
    %c1_310 = arith.constant 1 : index
    %c0_311 = arith.constant 0 : index
    %c0_312 = arith.constant 0 : index
    %416 = vector.load %arg5[%c0_309, %c1_310, %c0_311, %c0_312] : memref<2x2x32x16xf32, #tpu.memory_space<vmem>>, vector<1x1x32x16xf32>
    %417 = vector.shape_cast %416 : vector<1x1x32x16xf32> to vector<32x16xf32>
    %cst_313 = arith.constant dense<0.000000e+00> : vector<5x16xf32>
    %418 = tpu.matmul %377, %417, %cst_313 {dimension_numbers = #tpu.dot_dimension_numbers<[1], [0], [0], [1], [0, 0, 1, 1], [], []>} : vector<5x32xf32>, vector<32x16xf32>, vector<5x16xf32> -> vector<5x16xf32>
    %c0_314 = arith.constant 0 : index
    %c1_315 = arith.constant 1 : index
    %c0_316 = arith.constant 0 : index
    %c0_317 = arith.constant 0 : index
    %419 = vector.load %arg6[%c0_314, %c1_315, %c0_316, %c0_317] : memref<2x2x1x16xf32, #tpu.memory_space<vmem>>, vector<1x1x1x16xf32>
    %420 = vector.shape_cast %419 : vector<1x1x1x16xf32> to vector<1x16xf32>
    %421 = vector.broadcast %420 : vector<1x16xf32> to vector<5x16xf32>
    %422 = arith.addf %418, %421 : vector<5x16xf32>
    %c0_318 = arith.constant 0 : index
    %c1_319 = arith.constant 1 : index
    %c0_320 = arith.constant 0 : index
    %c0_321 = arith.constant 0 : index
    %423 = vector.load %arg7[%c0_318, %c1_319, %c0_320, %c0_321] : memref<2x2x32x16xf32, #tpu.memory_space<vmem>>, vector<1x1x32x16xf32>
    %424 = vector.shape_cast %423 : vector<1x1x32x16xf32> to vector<32x16xf32>
    %cst_322 = arith.constant dense<0.000000e+00> : vector<5x16xf32>
    %425 = tpu.matmul %377, %424, %cst_322 {dimension_numbers = #tpu.dot_dimension_numbers<[1], [0], [0], [1], [0, 0, 1, 1], [], []>} : vector<5x32xf32>, vector<32x16xf32>, vector<5x16xf32> -> vector<5x16xf32>
    %c0_323 = arith.constant 0 : index
    %c1_324 = arith.constant 1 : index
    %c0_325 = arith.constant 0 : index
    %c0_326 = arith.constant 0 : index
    %426 = vector.load %arg8[%c0_323, %c1_324, %c0_325, %c0_326] : memref<2x2x1x16xf32, #tpu.memory_space<vmem>>, vector<1x1x1x16xf32>
    %427 = vector.shape_cast %426 : vector<1x1x1x16xf32> to vector<1x16xf32>
    %428 = vector.broadcast %427 : vector<1x16xf32> to vector<5x16xf32>
    %429 = arith.addf %425, %428 : vector<5x16xf32>
    %c0_327 = arith.constant 0 : index
    %c1_328 = arith.constant 1 : index
    %c0_329 = arith.constant 0 : index
    %c0_330 = arith.constant 0 : index
    %430 = vector.load %arg9[%c0_327, %c1_328, %c0_329, %c0_330] : memref<2x2x32x16xf32, #tpu.memory_space<vmem>>, vector<1x1x32x16xf32>
    %431 = vector.shape_cast %430 : vector<1x1x32x16xf32> to vector<32x16xf32>
    %cst_331 = arith.constant dense<0.000000e+00> : vector<5x16xf32>
    %432 = tpu.matmul %377, %431, %cst_331 {dimension_numbers = #tpu.dot_dimension_numbers<[1], [0], [0], [1], [0, 0, 1, 1], [], []>} : vector<5x32xf32>, vector<32x16xf32>, vector<5x16xf32> -> vector<5x16xf32>
    %c0_332 = arith.constant 0 : index
    %c1_333 = arith.constant 1 : index
    %c0_334 = arith.constant 0 : index
    %c0_335 = arith.constant 0 : index
    %433 = vector.load %arg10[%c0_332, %c1_333, %c0_334, %c0_335] : memref<2x2x1x16xf32, #tpu.memory_space<vmem>>, vector<1x1x1x16xf32>
    %434 = vector.shape_cast %433 : vector<1x1x1x16xf32> to vector<1x16xf32>
    %435 = vector.broadcast %434 : vector<1x16xf32> to vector<5x16xf32>
    %436 = arith.addf %432, %435 : vector<5x16xf32>
    %cst_336 = arith.constant dense<0.000000e+00> : vector<5x5xf32>
    %437 = tpu.matmul %422, %429, %cst_336 {dimension_numbers = #tpu.dot_dimension_numbers<[1], [1], [0], [0], [0, 0, 1, 0], [], []>} : vector<5x16xf32>, vector<5x16xf32>, vector<5x5xf32> -> vector<5x5xf32>
    %cst_337 = arith.constant dense<0xFF800000> : vector<5xf32>
    %438 = vector.multi_reduction <maximumf>, %437, %cst_337 [1] : vector<5x5xf32> to vector<5xf32>
    %439 = vector.shape_cast %438 : vector<5xf32> to vector<5x1xf32>
    %440 = vector.broadcast %439 : vector<5x1xf32> to vector<5x5xf32>
    %441 = arith.subf %437, %440 : vector<5x5xf32>
    %442 = math.exp %441 : vector<5x5xf32>
    %cst_338 = arith.constant dense<0.000000e+00> : vector<5xf32>
    %443 = vector.multi_reduction <add>, %442, %cst_338 [1] : vector<5x5xf32> to vector<5xf32>
    %444 = vector.shape_cast %443 : vector<5xf32> to vector<5x1xf32>
    %445 = tpu.reciprocal %444 {approx = true} : vector<5x1xf32> -> vector<5x1xf32>
    %446 = vector.broadcast %445 : vector<5x1xf32> to vector<5x5xf32>
    %447 = arith.mulf %442, %446 : vector<5x5xf32>
    %cst_339 = arith.constant dense<0.000000e+00> : vector<5x16xf32>
    %448 = tpu.matmul %447, %436, %cst_339 {dimension_numbers = #tpu.dot_dimension_numbers<[1], [0], [0], [1], [0, 0, 1, 1], [], []>} : vector<5x5xf32>, vector<5x16xf32>, vector<5x16xf32> -> vector<5x16xf32>
    %c0_340 = arith.constant 0 : index
    %c1_341 = arith.constant 1 : index
    %c0_342 = arith.constant 0 : index
    %c0_343 = arith.constant 0 : index
    %449 = vector.load %arg11[%c0_340, %c1_341, %c0_342, %c0_343] : memref<2x2x16x32xf32, #tpu.memory_space<vmem>>, vector<1x1x16x32xf32>
    %450 = vector.shape_cast %449 : vector<1x1x16x32xf32> to vector<16x32xf32>
    %cst_344 = arith.constant dense<0.000000e+00> : vector<5x32xf32>
    %451 = tpu.matmul %448, %450, %cst_344 {dimension_numbers = #tpu.dot_dimension_numbers<[1], [0], [0], [1], [0, 0, 1, 1], [], []>} : vector<5x16xf32>, vector<16x32xf32>, vector<5x32xf32> -> vector<5x32xf32>
    %452 = arith.addf %415, %451 : vector<5x32xf32>
    %453 = arith.addf %353, %452 : vector<5x32xf32>
    %c0_345 = arith.constant 0 : index
    %c0_346 = arith.constant 0 : index
    %c0_347 = arith.constant 0 : index
    %454 = vector.load %arg12[%c0_345, %c0_346, %c0_347] : memref<2x1x32xf32, #tpu.memory_space<vmem>>, vector<1x1x32xf32>
    %455 = vector.shape_cast %454 : vector<1x1x32xf32> to vector<1x32xf32>
    %456 = vector.broadcast %455 : vector<1x32xf32> to vector<5x32xf32>
    %457 = arith.addf %453, %456 : vector<5x32xf32>
    %c0_348 = arith.constant 0 : index
    %c0_349 = arith.constant 0 : index
    %c0_350 = arith.constant 0 : index
    %458 = vector.load %arg13[%c0_348, %c0_349, %c0_350] : memref<2x1x32xf32, #tpu.memory_space<vmem>>, vector<1x1x32xf32>
    %459 = vector.shape_cast %458 : vector<1x1x32xf32> to vector<1x32xf32>
    %c0_351 = arith.constant 0 : index
    %c0_352 = arith.constant 0 : index
    %c0_353 = arith.constant 0 : index
    %460 = vector.load %arg14[%c0_351, %c0_352, %c0_353] : memref<2x1x32xf32, #tpu.memory_space<vmem>>, vector<1x1x32xf32>
    %461 = vector.shape_cast %460 : vector<1x1x32xf32> to vector<1x32xf32>
    %cst_354 = arith.constant dense<0.000000e+00> : vector<5xf32>
    %462 = vector.multi_reduction <add>, %457, %cst_354 [1] : vector<5x32xf32> to vector<5xf32>
    %463 = vector.shape_cast %462 : vector<5xf32> to vector<5x1xf32>
    %cst_355 = arith.constant 3.125000e-02 : f32
    %464 = vector.broadcast %cst_355 : f32 to vector<5x1xf32>
    %465 = arith.mulf %463, %464 : vector<5x1xf32>
    %466 = vector.broadcast %465 : vector<5x1xf32> to vector<5x32xf32>
    %467 = arith.subf %457, %466 : vector<5x32xf32>
    %468 = arith.mulf %467, %467 : vector<5x32xf32>
    %cst_356 = arith.constant dense<0.000000e+00> : vector<5xf32>
    %469 = vector.multi_reduction <add>, %468, %cst_356 [1] : vector<5x32xf32> to vector<5xf32>
    %470 = vector.shape_cast %469 : vector<5xf32> to vector<5x1xf32>
    %cst_357 = arith.constant 3.125000e-02 : f32
    %471 = vector.broadcast %cst_357 : f32 to vector<5x1xf32>
    %472 = arith.mulf %470, %471 : vector<5x1xf32>
    %cst_358 = arith.constant 9.99999974E-6 : f32
    %473 = vector.broadcast %cst_358 : f32 to vector<5x1xf32>
    %474 = arith.addf %472, %473 : vector<5x1xf32>
    %475 = math.rsqrt %474 : vector<5x1xf32>
    %476 = vector.broadcast %475 : vector<5x1xf32> to vector<5x32xf32>
    %477 = arith.mulf %467, %476 : vector<5x32xf32>
    %478 = vector.broadcast %459 : vector<1x32xf32> to vector<5x32xf32>
    %479 = arith.mulf %477, %478 : vector<5x32xf32>
    %480 = vector.broadcast %461 : vector<1x32xf32> to vector<5x32xf32>
    %481 = arith.addf %479, %480 : vector<5x32xf32>
    %c0_359 = arith.constant 0 : index
    %c0_360 = arith.constant 0 : index
    %c0_361 = arith.constant 0 : index
    %482 = vector.load %arg15[%c0_359, %c0_360, %c0_361] : memref<2x32x64xf32, #tpu.memory_space<vmem>>, vector<1x32x64xf32>
    %483 = vector.shape_cast %482 : vector<1x32x64xf32> to vector<32x64xf32>
    %cst_362 = arith.constant dense<0.000000e+00> : vector<5x64xf32>
    %484 = tpu.matmul %481, %483, %cst_362 {dimension_numbers = #tpu.dot_dimension_numbers<[1], [0], [0], [1], [0, 0, 1, 1], [], []>} : vector<5x32xf32>, vector<32x64xf32>, vector<5x64xf32> -> vector<5x64xf32>
    %c0_363 = arith.constant 0 : index
    %c0_364 = arith.constant 0 : index
    %c0_365 = arith.constant 0 : index
    %485 = vector.load %arg16[%c0_363, %c0_364, %c0_365] : memref<2x1x64xf32, #tpu.memory_space<vmem>>, vector<1x1x64xf32>
    %486 = vector.shape_cast %485 : vector<1x1x64xf32> to vector<1x64xf32>
    %487 = vector.broadcast %486 : vector<1x64xf32> to vector<5x64xf32>
    %488 = arith.addf %484, %487 : vector<5x64xf32>
    %cst_366 = arith.constant 5.000000e-01 : f32
    %489 = vector.broadcast %cst_366 : f32 to vector<5x64xf32>
    %490 = arith.mulf %489, %488 : vector<5x64xf32>
    %cst_367 = arith.constant 4.471500e-02 : f32
    %491 = vector.broadcast %cst_367 : f32 to vector<5x64xf32>
    %492 = arith.mulf %491, %488 : vector<5x64xf32>
    %493 = arith.mulf %492, %488 : vector<5x64xf32>
    %494 = arith.mulf %493, %488 : vector<5x64xf32>
    %495 = arith.addf %488, %494 : vector<5x64xf32>
    %cst_368 = arith.constant 0.797884583 : f32
    %496 = vector.broadcast %cst_368 : f32 to vector<5x64xf32>
    %497 = arith.mulf %496, %495 : vector<5x64xf32>
    %498 = math.tanh %497 : vector<5x64xf32>
    %cst_369 = arith.constant 1.000000e+00 : f32
    %499 = vector.broadcast %cst_369 : f32 to vector<5x64xf32>
    %500 = arith.addf %499, %498 : vector<5x64xf32>
    %501 = arith.mulf %490, %500 : vector<5x64xf32>
    %c0_370 = arith.constant 0 : index
    %c0_371 = arith.constant 0 : index
    %c0_372 = arith.constant 0 : index
    %502 = vector.load %arg17[%c0_370, %c0_371, %c0_372] : memref<2x64x32xf32, #tpu.memory_space<vmem>>, vector<1x64x32xf32>
    %503 = vector.shape_cast %502 : vector<1x64x32xf32> to vector<64x32xf32>
    %cst_373 = arith.constant dense<0.000000e+00> : vector<5x32xf32>
    %504 = tpu.matmul %501, %503, %cst_373 {dimension_numbers = #tpu.dot_dimension_numbers<[1], [0], [0], [1], [0, 0, 1, 1], [], []>} : vector<5x64xf32>, vector<64x32xf32>, vector<5x32xf32> -> vector<5x32xf32>
    %505 = arith.addf %457, %504 : vector<5x32xf32>
    %c0_374 = arith.constant 0 : index
    %c0_375 = arith.constant 0 : index
    %c0_376 = arith.constant 0 : index
    %506 = vector.load %arg18[%c0_374, %c0_375, %c0_376] : memref<2x1x32xf32, #tpu.memory_space<vmem>>, vector<1x1x32xf32>
    %507 = vector.shape_cast %506 : vector<1x1x32xf32> to vector<1x32xf32>
    %508 = vector.broadcast %507 : vector<1x32xf32> to vector<5x32xf32>
    %509 = arith.addf %505, %508 : vector<5x32xf32>
    %c1_377 = arith.constant 1 : index
    %c0_378 = arith.constant 0 : index
    %c0_379 = arith.constant 0 : index
    %510 = vector.load %arg3[%c1_377, %c0_378, %c0_379] : memref<2x1x32xf32, #tpu.memory_space<vmem>>, vector<1x1x32xf32>
    %511 = vector.shape_cast %510 : vector<1x1x32xf32> to vector<1x32xf32>
    %c1_380 = arith.constant 1 : index
    %c0_381 = arith.constant 0 : index
    %c0_382 = arith.constant 0 : index
    %512 = vector.load %arg4[%c1_380, %c0_381, %c0_382] : memref<2x1x32xf32, #tpu.memory_space<vmem>>, vector<1x1x32xf32>
    %513 = vector.shape_cast %512 : vector<1x1x32xf32> to vector<1x32xf32>
    %cst_383 = arith.constant dense<0.000000e+00> : vector<5xf32>
    %514 = vector.multi_reduction <add>, %509, %cst_383 [1] : vector<5x32xf32> to vector<5xf32>
    %515 = vector.shape_cast %514 : vector<5xf32> to vector<5x1xf32>
    %cst_384 = arith.constant 3.125000e-02 : f32
    %516 = vector.broadcast %cst_384 : f32 to vector<5x1xf32>
    %517 = arith.mulf %515, %516 : vector<5x1xf32>
    %518 = vector.broadcast %517 : vector<5x1xf32> to vector<5x32xf32>
    %519 = arith.subf %509, %518 : vector<5x32xf32>
    %520 = arith.mulf %519, %519 : vector<5x32xf32>
    %cst_385 = arith.constant dense<0.000000e+00> : vector<5xf32>
    %521 = vector.multi_reduction <add>, %520, %cst_385 [1] : vector<5x32xf32> to vector<5xf32>
    %522 = vector.shape_cast %521 : vector<5xf32> to vector<5x1xf32>
    %cst_386 = arith.constant 3.125000e-02 : f32
    %523 = vector.broadcast %cst_386 : f32 to vector<5x1xf32>
    %524 = arith.mulf %522, %523 : vector<5x1xf32>
    %cst_387 = arith.constant 9.99999974E-6 : f32
    %525 = vector.broadcast %cst_387 : f32 to vector<5x1xf32>
    %526 = arith.addf %524, %525 : vector<5x1xf32>
    %527 = math.rsqrt %526 : vector<5x1xf32>
    %528 = vector.broadcast %527 : vector<5x1xf32> to vector<5x32xf32>
    %529 = arith.mulf %519, %528 : vector<5x32xf32>
    %530 = vector.broadcast %511 : vector<1x32xf32> to vector<5x32xf32>
    %531 = arith.mulf %529, %530 : vector<5x32xf32>
    %532 = vector.broadcast %513 : vector<1x32xf32> to vector<5x32xf32>
    %533 = arith.addf %531, %532 : vector<5x32xf32>
    %cst_388 = arith.constant 0.000000e+00 : f32
    %534 = vector.broadcast %cst_388 : f32 to vector<5x32xf32>
    %c1_389 = arith.constant 1 : index
    %c0_390 = arith.constant 0 : index
    %c0_391 = arith.constant 0 : index
    %c0_392 = arith.constant 0 : index
    %535 = vector.load %arg5[%c1_389, %c0_390, %c0_391, %c0_392] : memref<2x2x32x16xf32, #tpu.memory_space<vmem>>, vector<1x1x32x16xf32>
    %536 = vector.shape_cast %535 : vector<1x1x32x16xf32> to vector<32x16xf32>
    %cst_393 = arith.constant dense<0.000000e+00> : vector<5x16xf32>
    %537 = tpu.matmul %533, %536, %cst_393 {dimension_numbers = #tpu.dot_dimension_numbers<[1], [0], [0], [1], [0, 0, 1, 1], [], []>} : vector<5x32xf32>, vector<32x16xf32>, vector<5x16xf32> -> vector<5x16xf32>
    %c1_394 = arith.constant 1 : index
    %c0_395 = arith.constant 0 : index
    %c0_396 = arith.constant 0 : index
    %c0_397 = arith.constant 0 : index
    %538 = vector.load %arg6[%c1_394, %c0_395, %c0_396, %c0_397] : memref<2x2x1x16xf32, #tpu.memory_space<vmem>>, vector<1x1x1x16xf32>
    %539 = vector.shape_cast %538 : vector<1x1x1x16xf32> to vector<1x16xf32>
    %540 = vector.broadcast %539 : vector<1x16xf32> to vector<5x16xf32>
    %541 = arith.addf %537, %540 : vector<5x16xf32>
    %c1_398 = arith.constant 1 : index
    %c0_399 = arith.constant 0 : index
    %c0_400 = arith.constant 0 : index
    %c0_401 = arith.constant 0 : index
    %542 = vector.load %arg7[%c1_398, %c0_399, %c0_400, %c0_401] : memref<2x2x32x16xf32, #tpu.memory_space<vmem>>, vector<1x1x32x16xf32>
    %543 = vector.shape_cast %542 : vector<1x1x32x16xf32> to vector<32x16xf32>
    %cst_402 = arith.constant dense<0.000000e+00> : vector<5x16xf32>
    %544 = tpu.matmul %533, %543, %cst_402 {dimension_numbers = #tpu.dot_dimension_numbers<[1], [0], [0], [1], [0, 0, 1, 1], [], []>} : vector<5x32xf32>, vector<32x16xf32>, vector<5x16xf32> -> vector<5x16xf32>
    %c1_403 = arith.constant 1 : index
    %c0_404 = arith.constant 0 : index
    %c0_405 = arith.constant 0 : index
    %c0_406 = arith.constant 0 : index
    %545 = vector.load %arg8[%c1_403, %c0_404, %c0_405, %c0_406] : memref<2x2x1x16xf32, #tpu.memory_space<vmem>>, vector<1x1x1x16xf32>
    %546 = vector.shape_cast %545 : vector<1x1x1x16xf32> to vector<1x16xf32>
    %547 = vector.broadcast %546 : vector<1x16xf32> to vector<5x16xf32>
    %548 = arith.addf %544, %547 : vector<5x16xf32>
    %c1_407 = arith.constant 1 : index
    %c0_408 = arith.constant 0 : index
    %c0_409 = arith.constant 0 : index
    %c0_410 = arith.constant 0 : index
    %549 = vector.load %arg9[%c1_407, %c0_408, %c0_409, %c0_410] : memref<2x2x32x16xf32, #tpu.memory_space<vmem>>, vector<1x1x32x16xf32>
    %550 = vector.shape_cast %549 : vector<1x1x32x16xf32> to vector<32x16xf32>
    %cst_411 = arith.constant dense<0.000000e+00> : vector<5x16xf32>
    %551 = tpu.matmul %533, %550, %cst_411 {dimension_numbers = #tpu.dot_dimension_numbers<[1], [0], [0], [1], [0, 0, 1, 1], [], []>} : vector<5x32xf32>, vector<32x16xf32>, vector<5x16xf32> -> vector<5x16xf32>
    %c1_412 = arith.constant 1 : index
    %c0_413 = arith.constant 0 : index
    %c0_414 = arith.constant 0 : index
    %c0_415 = arith.constant 0 : index
    %552 = vector.load %arg10[%c1_412, %c0_413, %c0_414, %c0_415] : memref<2x2x1x16xf32, #tpu.memory_space<vmem>>, vector<1x1x1x16xf32>
    %553 = vector.shape_cast %552 : vector<1x1x1x16xf32> to vector<1x16xf32>
    %554 = vector.broadcast %553 : vector<1x16xf32> to vector<5x16xf32>
    %555 = arith.addf %551, %554 : vector<5x16xf32>
    %cst_416 = arith.constant dense<0.000000e+00> : vector<5x5xf32>
    %556 = tpu.matmul %541, %548, %cst_416 {dimension_numbers = #tpu.dot_dimension_numbers<[1], [1], [0], [0], [0, 0, 1, 0], [], []>} : vector<5x16xf32>, vector<5x16xf32>, vector<5x5xf32> -> vector<5x5xf32>
    %cst_417 = arith.constant dense<0xFF800000> : vector<5xf32>
    %557 = vector.multi_reduction <maximumf>, %556, %cst_417 [1] : vector<5x5xf32> to vector<5xf32>
    %558 = vector.shape_cast %557 : vector<5xf32> to vector<5x1xf32>
    %559 = vector.broadcast %558 : vector<5x1xf32> to vector<5x5xf32>
    %560 = arith.subf %556, %559 : vector<5x5xf32>
    %561 = math.exp %560 : vector<5x5xf32>
    %cst_418 = arith.constant dense<0.000000e+00> : vector<5xf32>
    %562 = vector.multi_reduction <add>, %561, %cst_418 [1] : vector<5x5xf32> to vector<5xf32>
    %563 = vector.shape_cast %562 : vector<5xf32> to vector<5x1xf32>
    %564 = tpu.reciprocal %563 {approx = true} : vector<5x1xf32> -> vector<5x1xf32>
    %565 = vector.broadcast %564 : vector<5x1xf32> to vector<5x5xf32>
    %566 = arith.mulf %561, %565 : vector<5x5xf32>
    %cst_419 = arith.constant dense<0.000000e+00> : vector<5x16xf32>
    %567 = tpu.matmul %566, %555, %cst_419 {dimension_numbers = #tpu.dot_dimension_numbers<[1], [0], [0], [1], [0, 0, 1, 1], [], []>} : vector<5x5xf32>, vector<5x16xf32>, vector<5x16xf32> -> vector<5x16xf32>
    %c1_420 = arith.constant 1 : index
    %c0_421 = arith.constant 0 : index
    %c0_422 = arith.constant 0 : index
    %c0_423 = arith.constant 0 : index
    %568 = vector.load %arg11[%c1_420, %c0_421, %c0_422, %c0_423] : memref<2x2x16x32xf32, #tpu.memory_space<vmem>>, vector<1x1x16x32xf32>
    %569 = vector.shape_cast %568 : vector<1x1x16x32xf32> to vector<16x32xf32>
    %cst_424 = arith.constant dense<0.000000e+00> : vector<5x32xf32>
    %570 = tpu.matmul %567, %569, %cst_424 {dimension_numbers = #tpu.dot_dimension_numbers<[1], [0], [0], [1], [0, 0, 1, 1], [], []>} : vector<5x16xf32>, vector<16x32xf32>, vector<5x32xf32> -> vector<5x32xf32>
    %571 = arith.addf %534, %570 : vector<5x32xf32>
    %c1_425 = arith.constant 1 : index
    %c1_426 = arith.constant 1 : index
    %c0_427 = arith.constant 0 : index
    %c0_428 = arith.constant 0 : index
    %572 = vector.load %arg5[%c1_425, %c1_426, %c0_427, %c0_428] : memref<2x2x32x16xf32, #tpu.memory_space<vmem>>, vector<1x1x32x16xf32>
    %573 = vector.shape_cast %572 : vector<1x1x32x16xf32> to vector<32x16xf32>
    %cst_429 = arith.constant dense<0.000000e+00> : vector<5x16xf32>
    %574 = tpu.matmul %533, %573, %cst_429 {dimension_numbers = #tpu.dot_dimension_numbers<[1], [0], [0], [1], [0, 0, 1, 1], [], []>} : vector<5x32xf32>, vector<32x16xf32>, vector<5x16xf32> -> vector<5x16xf32>
    %c1_430 = arith.constant 1 : index
    %c1_431 = arith.constant 1 : index
    %c0_432 = arith.constant 0 : index
    %c0_433 = arith.constant 0 : index
    %575 = vector.load %arg6[%c1_430, %c1_431, %c0_432, %c0_433] : memref<2x2x1x16xf32, #tpu.memory_space<vmem>>, vector<1x1x1x16xf32>
    %576 = vector.shape_cast %575 : vector<1x1x1x16xf32> to vector<1x16xf32>
    %577 = vector.broadcast %576 : vector<1x16xf32> to vector<5x16xf32>
    %578 = arith.addf %574, %577 : vector<5x16xf32>
    %c1_434 = arith.constant 1 : index
    %c1_435 = arith.constant 1 : index
    %c0_436 = arith.constant 0 : index
    %c0_437 = arith.constant 0 : index
    %579 = vector.load %arg7[%c1_434, %c1_435, %c0_436, %c0_437] : memref<2x2x32x16xf32, #tpu.memory_space<vmem>>, vector<1x1x32x16xf32>
    %580 = vector.shape_cast %579 : vector<1x1x32x16xf32> to vector<32x16xf32>
    %cst_438 = arith.constant dense<0.000000e+00> : vector<5x16xf32>
    %581 = tpu.matmul %533, %580, %cst_438 {dimension_numbers = #tpu.dot_dimension_numbers<[1], [0], [0], [1], [0, 0, 1, 1], [], []>} : vector<5x32xf32>, vector<32x16xf32>, vector<5x16xf32> -> vector<5x16xf32>
    %c1_439 = arith.constant 1 : index
    %c1_440 = arith.constant 1 : index
    %c0_441 = arith.constant 0 : index
    %c0_442 = arith.constant 0 : index
    %582 = vector.load %arg8[%c1_439, %c1_440, %c0_441, %c0_442] : memref<2x2x1x16xf32, #tpu.memory_space<vmem>>, vector<1x1x1x16xf32>
    %583 = vector.shape_cast %582 : vector<1x1x1x16xf32> to vector<1x16xf32>
    %584 = vector.broadcast %583 : vector<1x16xf32> to vector<5x16xf32>
    %585 = arith.addf %581, %584 : vector<5x16xf32>
    %c1_443 = arith.constant 1 : index
    %c1_444 = arith.constant 1 : index
    %c0_445 = arith.constant 0 : index
    %c0_446 = arith.constant 0 : index
    %586 = vector.load %arg9[%c1_443, %c1_444, %c0_445, %c0_446] : memref<2x2x32x16xf32, #tpu.memory_space<vmem>>, vector<1x1x32x16xf32>
    %587 = vector.shape_cast %586 : vector<1x1x32x16xf32> to vector<32x16xf32>
    %cst_447 = arith.constant dense<0.000000e+00> : vector<5x16xf32>
    %588 = tpu.matmul %533, %587, %cst_447 {dimension_numbers = #tpu.dot_dimension_numbers<[1], [0], [0], [1], [0, 0, 1, 1], [], []>} : vector<5x32xf32>, vector<32x16xf32>, vector<5x16xf32> -> vector<5x16xf32>
    %c1_448 = arith.constant 1 : index
    %c1_449 = arith.constant 1 : index
    %c0_450 = arith.constant 0 : index
    %c0_451 = arith.constant 0 : index
    %589 = vector.load %arg10[%c1_448, %c1_449, %c0_450, %c0_451] : memref<2x2x1x16xf32, #tpu.memory_space<vmem>>, vector<1x1x1x16xf32>
    %590 = vector.shape_cast %589 : vector<1x1x1x16xf32> to vector<1x16xf32>
    %591 = vector.broadcast %590 : vector<1x16xf32> to vector<5x16xf32>
    %592 = arith.addf %588, %591 : vector<5x16xf32>
    %cst_452 = arith.constant dense<0.000000e+00> : vector<5x5xf32>
    %593 = tpu.matmul %578, %585, %cst_452 {dimension_numbers = #tpu.dot_dimension_numbers<[1], [1], [0], [0], [0, 0, 1, 0], [], []>} : vector<5x16xf32>, vector<5x16xf32>, vector<5x5xf32> -> vector<5x5xf32>
    %cst_453 = arith.constant dense<0xFF800000> : vector<5xf32>
    %594 = vector.multi_reduction <maximumf>, %593, %cst_453 [1] : vector<5x5xf32> to vector<5xf32>
    %595 = vector.shape_cast %594 : vector<5xf32> to vector<5x1xf32>
    %596 = vector.broadcast %595 : vector<5x1xf32> to vector<5x5xf32>
    %597 = arith.subf %593, %596 : vector<5x5xf32>
    %598 = math.exp %597 : vector<5x5xf32>
    %cst_454 = arith.constant dense<0.000000e+00> : vector<5xf32>
    %599 = vector.multi_reduction <add>, %598, %cst_454 [1] : vector<5x5xf32> to vector<5xf32>
    %600 = vector.shape_cast %599 : vector<5xf32> to vector<5x1xf32>
    %601 = tpu.reciprocal %600 {approx = true} : vector<5x1xf32> -> vector<5x1xf32>
    %602 = vector.broadcast %601 : vector<5x1xf32> to vector<5x5xf32>
    %603 = arith.mulf %598, %602 : vector<5x5xf32>
    %cst_455 = arith.constant dense<0.000000e+00> : vector<5x16xf32>
    %604 = tpu.matmul %603, %592, %cst_455 {dimension_numbers = #tpu.dot_dimension_numbers<[1], [0], [0], [1], [0, 0, 1, 1], [], []>} : vector<5x5xf32>, vector<5x16xf32>, vector<5x16xf32> -> vector<5x16xf32>
    %c1_456 = arith.constant 1 : index
    %c1_457 = arith.constant 1 : index
    %c0_458 = arith.constant 0 : index
    %c0_459 = arith.constant 0 : index
    %605 = vector.load %arg11[%c1_456, %c1_457, %c0_458, %c0_459] : memref<2x2x16x32xf32, #tpu.memory_space<vmem>>, vector<1x1x16x32xf32>
    %606 = vector.shape_cast %605 : vector<1x1x16x32xf32> to vector<16x32xf32>
    %cst_460 = arith.constant dense<0.000000e+00> : vector<5x32xf32>
    %607 = tpu.matmul %604, %606, %cst_460 {dimension_numbers = #tpu.dot_dimension_numbers<[1], [0], [0], [1], [0, 0, 1, 1], [], []>} : vector<5x16xf32>, vector<16x32xf32>, vector<5x32xf32> -> vector<5x32xf32>
    %608 = arith.addf %571, %607 : vector<5x32xf32>
    %609 = arith.addf %509, %608 : vector<5x32xf32>
    %c1_461 = arith.constant 1 : index
    %c0_462 = arith.constant 0 : index
    %c0_463 = arith.constant 0 : index
    %610 = vector.load %arg12[%c1_461, %c0_462, %c0_463] : memref<2x1x32xf32, #tpu.memory_space<vmem>>, vector<1x1x32xf32>
    %611 = vector.shape_cast %610 : vector<1x1x32xf32> to vector<1x32xf32>
    %612 = vector.broadcast %611 : vector<1x32xf32> to vector<5x32xf32>
    %613 = arith.addf %609, %612 : vector<5x32xf32>
    %c1_464 = arith.constant 1 : index
    %c0_465 = arith.constant 0 : index
    %c0_466 = arith.constant 0 : index
    %614 = vector.load %arg13[%c1_464, %c0_465, %c0_466] : memref<2x1x32xf32, #tpu.memory_space<vmem>>, vector<1x1x32xf32>
    %615 = vector.shape_cast %614 : vector<1x1x32xf32> to vector<1x32xf32>
    %c1_467 = arith.constant 1 : index
    %c0_468 = arith.constant 0 : index
    %c0_469 = arith.constant 0 : index
    %616 = vector.load %arg14[%c1_467, %c0_468, %c0_469] : memref<2x1x32xf32, #tpu.memory_space<vmem>>, vector<1x1x32xf32>
    %617 = vector.shape_cast %616 : vector<1x1x32xf32> to vector<1x32xf32>
    %cst_470 = arith.constant dense<0.000000e+00> : vector<5xf32>
    %618 = vector.multi_reduction <add>, %613, %cst_470 [1] : vector<5x32xf32> to vector<5xf32>
    %619 = vector.shape_cast %618 : vector<5xf32> to vector<5x1xf32>
    %cst_471 = arith.constant 3.125000e-02 : f32
    %620 = vector.broadcast %cst_471 : f32 to vector<5x1xf32>
    %621 = arith.mulf %619, %620 : vector<5x1xf32>
    %622 = vector.broadcast %621 : vector<5x1xf32> to vector<5x32xf32>
    %623 = arith.subf %613, %622 : vector<5x32xf32>
    %624 = arith.mulf %623, %623 : vector<5x32xf32>
    %cst_472 = arith.constant dense<0.000000e+00> : vector<5xf32>
    %625 = vector.multi_reduction <add>, %624, %cst_472 [1] : vector<5x32xf32> to vector<5xf32>
    %626 = vector.shape_cast %625 : vector<5xf32> to vector<5x1xf32>
    %cst_473 = arith.constant 3.125000e-02 : f32
    %627 = vector.broadcast %cst_473 : f32 to vector<5x1xf32>
    %628 = arith.mulf %626, %627 : vector<5x1xf32>
    %cst_474 = arith.constant 9.99999974E-6 : f32
    %629 = vector.broadcast %cst_474 : f32 to vector<5x1xf32>
    %630 = arith.addf %628, %629 : vector<5x1xf32>
    %631 = math.rsqrt %630 : vector<5x1xf32>
    %632 = vector.broadcast %631 : vector<5x1xf32> to vector<5x32xf32>
    %633 = arith.mulf %623, %632 : vector<5x32xf32>
    %634 = vector.broadcast %615 : vector<1x32xf32> to vector<5x32xf32>
    %635 = arith.mulf %633, %634 : vector<5x32xf32>
    %636 = vector.broadcast %617 : vector<1x32xf32> to vector<5x32xf32>
    %637 = arith.addf %635, %636 : vector<5x32xf32>
    %c1_475 = arith.constant 1 : index
    %c0_476 = arith.constant 0 : index
    %c0_477 = arith.constant 0 : index
    %638 = vector.load %arg15[%c1_475, %c0_476, %c0_477] : memref<2x32x64xf32, #tpu.memory_space<vmem>>, vector<1x32x64xf32>
    %639 = vector.shape_cast %638 : vector<1x32x64xf32> to vector<32x64xf32>
    %cst_478 = arith.constant dense<0.000000e+00> : vector<5x64xf32>
    %640 = tpu.matmul %637, %639, %cst_478 {dimension_numbers = #tpu.dot_dimension_numbers<[1], [0], [0], [1], [0, 0, 1, 1], [], []>} : vector<5x32xf32>, vector<32x64xf32>, vector<5x64xf32> -> vector<5x64xf32>
    %c1_479 = arith.constant 1 : index
    %c0_480 = arith.constant 0 : index
    %c0_481 = arith.constant 0 : index
    %641 = vector.load %arg16[%c1_479, %c0_480, %c0_481] : memref<2x1x64xf32, #tpu.memory_space<vmem>>, vector<1x1x64xf32>
    %642 = vector.shape_cast %641 : vector<1x1x64xf32> to vector<1x64xf32>
    %643 = vector.broadcast %642 : vector<1x64xf32> to vector<5x64xf32>
    %644 = arith.addf %640, %643 : vector<5x64xf32>
    %cst_482 = arith.constant 5.000000e-01 : f32
    %645 = vector.broadcast %cst_482 : f32 to vector<5x64xf32>
    %646 = arith.mulf %645, %644 : vector<5x64xf32>
    %cst_483 = arith.constant 4.471500e-02 : f32
    %647 = vector.broadcast %cst_483 : f32 to vector<5x64xf32>
    %648 = arith.mulf %647, %644 : vector<5x64xf32>
    %649 = arith.mulf %648, %644 : vector<5x64xf32>
    %650 = arith.mulf %649, %644 : vector<5x64xf32>
    %651 = arith.addf %644, %650 : vector<5x64xf32>
    %cst_484 = arith.constant 0.797884583 : f32
    %652 = vector.broadcast %cst_484 : f32 to vector<5x64xf32>
    %653 = arith.mulf %652, %651 : vector<5x64xf32>
    %654 = math.tanh %653 : vector<5x64xf32>
    %cst_485 = arith.constant 1.000000e+00 : f32
    %655 = vector.broadcast %cst_485 : f32 to vector<5x64xf32>
    %656 = arith.addf %655, %654 : vector<5x64xf32>
    %657 = arith.mulf %646, %656 : vector<5x64xf32>
    %c1_486 = arith.constant 1 : index
    %c0_487 = arith.constant 0 : index
    %c0_488 = arith.constant 0 : index
    %658 = vector.load %arg17[%c1_486, %c0_487, %c0_488] : memref<2x64x32xf32, #tpu.memory_space<vmem>>, vector<1x64x32xf32>
    %659 = vector.shape_cast %658 : vector<1x64x32xf32> to vector<64x32xf32>
    %cst_489 = arith.constant dense<0.000000e+00> : vector<5x32xf32>
    %660 = tpu.matmul %657, %659, %cst_489 {dimension_numbers = #tpu.dot_dimension_numbers<[1], [0], [0], [1], [0, 0, 1, 1], [], []>} : vector<5x64xf32>, vector<64x32xf32>, vector<5x32xf32> -> vector<5x32xf32>
    %661 = arith.addf %613, %660 : vector<5x32xf32>
    %c1_490 = arith.constant 1 : index
    %c0_491 = arith.constant 0 : index
    %c0_492 = arith.constant 0 : index
    %662 = vector.load %arg18[%c1_490, %c0_491, %c0_492] : memref<2x1x32xf32, #tpu.memory_space<vmem>>, vector<1x1x32xf32>
    %663 = vector.shape_cast %662 : vector<1x1x32xf32> to vector<1x32xf32>
    %664 = vector.broadcast %663 : vector<1x32xf32> to vector<5x32xf32>
    %665 = arith.addf %661, %664 : vector<5x32xf32>
    %c0_493 = arith.constant 0 : index
    %c0_494 = arith.constant 0 : index
    %666 = vector.load %arg19[%c0_493, %c0_494] : memref<1x32xf32, #tpu.memory_space<vmem>>, vector<1x32xf32>
    %c0_495 = arith.constant 0 : index
    %c0_496 = arith.constant 0 : index
    %667 = vector.load %arg20[%c0_495, %c0_496] : memref<1x32xf32, #tpu.memory_space<vmem>>, vector<1x32xf32>
    %cst_497 = arith.constant dense<0.000000e+00> : vector<5xf32>
    %668 = vector.multi_reduction <add>, %665, %cst_497 [1] : vector<5x32xf32> to vector<5xf32>
    %669 = vector.shape_cast %668 : vector<5xf32> to vector<5x1xf32>
    %cst_498 = arith.constant 3.125000e-02 : f32
    %670 = vector.broadcast %cst_498 : f32 to vector<5x1xf32>
    %671 = arith.mulf %669, %670 : vector<5x1xf32>
    %672 = vector.broadcast %671 : vector<5x1xf32> to vector<5x32xf32>
    %673 = arith.subf %665, %672 : vector<5x32xf32>
    %674 = arith.mulf %673, %673 : vector<5x32xf32>
    %cst_499 = arith.constant dense<0.000000e+00> : vector<5xf32>
    %675 = vector.multi_reduction <add>, %674, %cst_499 [1] : vector<5x32xf32> to vector<5xf32>
    %676 = vector.shape_cast %675 : vector<5xf32> to vector<5x1xf32>
    %cst_500 = arith.constant 3.125000e-02 : f32
    %677 = vector.broadcast %cst_500 : f32 to vector<5x1xf32>
    %678 = arith.mulf %676, %677 : vector<5x1xf32>
    %cst_501 = arith.constant 9.99999974E-6 : f32
    %679 = vector.broadcast %cst_501 : f32 to vector<5x1xf32>
    %680 = arith.addf %678, %679 : vector<5x1xf32>
    %681 = math.rsqrt %680 : vector<5x1xf32>
    %682 = vector.broadcast %681 : vector<5x1xf32> to vector<5x32xf32>
    %683 = arith.mulf %673, %682 : vector<5x32xf32>
    %684 = vector.broadcast %666 : vector<1x32xf32> to vector<5x32xf32>
    %685 = arith.mulf %683, %684 : vector<5x32xf32>
    %686 = vector.broadcast %667 : vector<1x32xf32> to vector<5x32xf32>
    %687 = arith.addf %685, %686 : vector<5x32xf32>
    %cst_502 = arith.constant dense<0.000000e+00> : vector<4x5xf32>
    %688 = tpu.matmul %2, %687, %cst_502 {dimension_numbers = #tpu.dot_dimension_numbers<[1], [1], [0], [0], [0, 0, 1, 0], [], []>} : vector<4x32xf32>, vector<5x32xf32>, vector<4x5xf32> -> vector<4x5xf32>
    %cst_503 = arith.constant dense<0.000000e+00> : vector<4x256xf32>
    %689 = tpu.matmul %688, %4, %cst_503 {dimension_numbers = #tpu.dot_dimension_numbers<[1], [0], [0], [1], [0, 0, 1, 1], [], []>} : vector<4x5xf32>, vector<5x256xf32>, vector<4x256xf32> -> vector<4x256xf32>
    %690 = vector.broadcast %3 : vector<4x1xf32> to vector<4x256xf32>
    %691 = arith.addf %689, %690 : vector<4x256xf32>
    %c1_504 = arith.constant 1 : index
    %c0_505 = arith.constant 0 : index
    %c0_506 = arith.constant 0 : index
    %692 = vector.load %arg24[%c1_504, %c0_505, %c0_506] : memref<2x4x256xf32, #tpu.memory_space<vmem>>, vector<1x4x256xf32>
    %693 = vector.shape_cast %692 : vector<1x4x256xf32> to vector<4x256xf32>
    %694 = vector.shape_cast %691 : vector<4x256xf32> to vector<1x4x256xf32>
    tpu.vector_store %arg24[%c1_504, %c0_505, %c0_506], %694 {strides = array<i32>} : memref<2x4x256xf32, #tpu.memory_space<vmem>>, vector<1x4x256xf32>,
    return
  }
}

</mosaic_0001>

<bundles_post_ra>
// kernel: segmenter_forward.1
= control target key start
LH: loop header
LB: loop body
LE: loop exit
PB: predicated region body
PF: predicated region fallthrough
CT: control target
= control target key end

     0   :  { %v6965_v0 = vmov 0.0|0.0   ;;  %vm108_vm0 = vcmask 523264   ;;  %vm184_vm1 = vcmask 258048   ;;  %vm6966_vm2 = vmmov 0   ;;  %s8351_s1 = inlined_call_operand.vmem [shape: f32[192,32], index: 1, kind: input, shape index: {}]   ;;  %s8352_s0 = inlined_call_operand.vmem [shape: f32[2,5,192], index: 0, kind: input, shape index: {}]   ;;  %s8353_s2 = inlined_call_operand.vmem [shape: f32[5,32], index: 2, kind: input, shape index: {}]   ;;  %s8354_s5 = inlined_call_operand.vmem [shape: f32[2,2,32,16], index: 5, kind: input, shape index: {}]   ;;  %s8355_s9 = inlined_call_operand.vmem [shape: f32[2,2,32,16], index: 9, kind: input, shape index: {}]   ;;  %s8356_s3 = inlined_call_operand.vmem [shape: f32[2,1,32], index: 3, kind: input, shape index: {}]   ;;  %s8357_s7 = inlined_call_operand.vmem [shape: f32[2,2,32,16], index: 7, kind: input, shape index: {}]   ;;  %s8358_s4 = inlined_call_operand.vmem [shape: f32[2,1,32], index: 4, kind: input, shape index: {}]   ;;  %s8359_s8 = inlined_call_operand.vmem [shape: f32[2,2,1,16], index: 8, kind: input, shape index: {}]   ;;  %s8360_s6 = inlined_call_operand.vmem [shape: f32[2,2,1,16], index: 6, kind: input, shape index: {}]   ;;  %s8361_s10 = inlined_call_operand.vmem [shape: f32[2,2,1,16], index: 10, kind: input, shape index: {}]   ;;  %s8362_s11 = inlined_call_operand.vmem [shape: f32[2,2,16,32], index: 11, kind: input, shape index: {}]   ;;  %s8363_s12 = inlined_call_operand.vmem [shape: f32[2,1,32], index: 12, kind: input, shape index: {}]   ;;  %s8364_s15 = inlined_call_operand.vmem [shape: f32[2,32,64], index: 15, kind: input, shape index: {}]   ;;  %s8365_s13 = inlined_call_operand.vmem [shape: f32[2,1,32], index: 13, kind: input, shape index: {}]   ;;  %s8366_s14 = inlined_call_operand.vmem [shape: f32[2,1,32], index: 14, kind: input, shape index: {}]   ;;  %s8367_s17 = inlined_call_operand.vmem [shape: f32[2,64,32], index: 17, kind: input, shape index: {}]   ;;  %s8368_s16 = inlined_call_operand.vmem [shape: f32[2,1,64], index: 16, kind: input, shape index: {}]   ;;  %s8369_s18 = inlined_call_operand.vmem [shape: f32[2,1,32], index: 18, kind: input, shape index: {}]   ;;  %s8370_s19 = inlined_call_operand.vmem [shape: f32[1,32], index: 19, kind: input, shape index: {}]   ;;  %s8371_s20 = inlined_call_operand.vmem [shape: f32[1,32], index: 20, kind: input, shape index: {}]   ;;  %s8372_s23 = inlined_call_operand.vmem [shape: f32[5,256], index: 23, kind: input, shape index: {}]   ;;  %s8373_s21 = inlined_call_operand.vmem [shape: f32[4,32], index: 21, kind: input, shape index: {}]   ;;  %s8374_s22 = inlined_call_operand.vmem [shape: f32[4,1], index: 22, kind: input, shape index: {}]   ;;  %s8375_s24 = inlined_call_operand.vmem [shape: f32[2,4,256], index: 24, kind: output, shape index: {}]  }
   0x1   :  { %8387 = sst [smem:[#allocation2_spill]] %s8351_s1  ;;  %6584 = vmatprep.subr.bf16.mxu0 %v6965_v0  ;;  %6620 = vmatprep.subr.bf16.mxu1 %v6965_v0  ;;  %v6967_v61 = vmov 0.0   ;;  %vm223_vm3 = vcmask 261120   ;;  %vm459_vm4 = vcmask 130048   ;;  %vm552_vm5 = vcmask 1044480  }
   0x2   :  { %8388 = sst [smem:[#allocation3_spill]] %s8352_s0  ;;  %s8398_s27 = sld [smem:[#allocation2_spill]]  ;;  %6062 = vmatprep.mubr.msk.f32.mxu1 %vm6966_vm2, %v6967_v61  ;;  %vm536_vm6 = vcmask 36864   ;;  %vm548_vm7 = vcmask 39936  }
   0x3   :  { %8389 = sst [smem:[#allocation4_spill]] %s8353_s2  ;;  %s8399_s2 = sld [smem:[#allocation3_spill]] }
   0x4   :  { %8390 = sst [smem:[#allocation5_spill]] %s8354_s5  ;;  %s8400_s26 = sld [smem:[#allocation4_spill]] }
   0x5   :  { %8391 = sst [smem:[#allocation6_spill]] %s8355_s9 }
   0x6   :  { %8392 = sst [smem:[#allocation7_spill]] %s8356_s3  ;;  %s8402_s5 = sld [smem:[#allocation6_spill]] }
   0x7   :  { %8393 = sst [smem:[#allocation8_spill]] %s8357_s7  ;;  %s8401_s7 = sld [smem:[#allocation5_spill]] }
   0x8   :  { %8394 = sst [smem:[#allocation9_spill]] %s8358_s4  ;;  %v77_v1 = vld [vmem:[%s8398_s27] sm:$0xff]  ;;  %v78_v2 = vld [vmem:[%s8398_s27 + $0x8] sm:$0xff]  ;;  %v79_v3 = vld [vmem:[%s8398_s27 + $0x10] sm:$0xff]  ;;  %s8404_s3 = sld [smem:[#allocation8_spill]] }
   0x9   :  { %8395 = sst [smem:[#allocation10_spill]] %s8359_s8  ;;  %v7105_v4 = vpack.c.bf16 %v78_v2, %v77_v1  ;;  %v80_v5 = vld [vmem:[%s8398_s27 + $0x18] sm:$0xff]  ;;  %v81_v7 = vld [vmem:[%s8398_s27 + $0x20] sm:$0xff]  ;;  %v82_v8 = vld [vmem:[%s8398_s27 + $0x28] sm:$0xff]  ;;  %s8403_s8 = sld [smem:[#allocation7_spill]] }
   0xa   :  { %8396 = sst [smem:[#allocation11_spill]] %s8374_s22  ;;  %v7111_v6 = vpack.c.bf16 %v80_v5, %v79_v3  ;;  %v7121_v9 = vpack.c.bf16 %v82_v8, %v81_v7  ;;  %v83_v10 = vld [vmem:[%s8398_s27 + $0x30] sm:$0xff]  ;;  %v84_v11 = vld [vmem:[%s8398_s27 + $0x38] sm:$0xff]  ;;  %v107_v12 = vld [vmem:[%s8399_s2 + $0x8] sm:$0x1f]  ;;  %s8405_s4 = sld [smem:[#allocation9_spill]] }
   0xb   :  { %8397 = sst [smem:[#allocation12_spill]] %s8375_s24  ;;  %6586 = vmatpush1.bf16.msra.mxu0 %v7105_v4  ;;  %5535 = vmatprep.mubr.msk.f32.mxu0 %vm108_vm0, %v107_v12  ;;  %v7135_v13 = vpack.c.bf16 %v84_v11, %v83_v10  ;;  %v85_v14 = vld [vmem:[%s8398_s27 + $0x40] sm:$0xff]  ;;  %v86_v15 = vld [vmem:[%s8398_s27 + $0x48] sm:$0xff]  ;;  %v87_v17 = vld [vmem:[%s8398_s27 + $0x50] sm:$0xff]  ;;  %s8407_s28 = sld [smem:[#allocation7_spill]] }
   0xc   :  { %6587 = vmatprep.subr.bf16.mxu0 %v6965_v0  ;;  %v7145_v16 = vpack.c.bf16 %v86_v15, %v85_v14  ;;  %v88_v18 = vld [vmem:[%s8398_s27 + $0x58] sm:$0xff]  ;;  %v89_v20 = vld [vmem:[%s8398_s27 + $0x60] sm:$0xff]  ;;  %v90_v21 = vld [vmem:[%s8398_s27 + $0x68] sm:$0xff]  ;;  %s8408_s9 = sld [smem:[#allocation11_spill]]  ;;  %s8409_s22 = sld [smem:[#allocation12_spill]] }
   0xd   :  { %v7155_v19 = vpack.c.bf16 %v88_v18, %v87_v17  ;;  %v7165_v22 = vpack.c.bf16 %v90_v21, %v89_v20  ;;  %v91_v23 = vld [vmem:[%s8398_s27 + $0x70] sm:$0xff]  ;;  %v92_v24 = vld [vmem:[%s8398_s27 + $0x78] sm:$0xff]  ;;  %v93_v26 = vld [vmem:[%s8398_s27 + $0x80] sm:$0xff] }
   0xe   :  { %v7175_v25 = vpack.c.bf16 %v92_v24, %v91_v23  ;;  %v94_v27 = vld [vmem:[%s8398_s27 + $0x88] sm:$0xff]  ;;  %v95_v29 = vld [vmem:[%s8398_s27 + $0x90] sm:$0xff]  ;;  %v96_v30 = vld [vmem:[%s8398_s27 + $0x98] sm:$0xff] }
   0xf   :  { %6589 = vmatpush1.bf16.msra.mxu0 %v7111_v6  ;;  %v7185_v28 = vpack.c.bf16 %v94_v27, %v93_v26  ;;  %v7195_v31 = vpack.c.bf16 %v96_v30, %v95_v29  ;;  %v97_v32 = vld [vmem:[%s8398_s27 + $0xa0] sm:$0xff]  ;;  %v98_v33 = vld [vmem:[%s8398_s27 + $0xa8] sm:$0xff]  ;;  %v99_v35 = vld [vmem:[%s8398_s27 + $0xb0] sm:$0xff] }
  0x10   :  { %6590 = vmatprep.subr.bf16.mxu0 %v6965_v0  ;;  %v7205_v34 = vpack.c.bf16 %v98_v33, %v97_v32  ;;  %v100_v36 = vld [vmem:[%s8398_s27 + $0xb8] sm:$0xff]  ;;  %v106_v38 = vld [vmem:[%s8399_s2] sm:$0x1f]  ;;  %v213_v50 = vld [vmem:[%s8401_s7 + $0x8] sm:$0xff]  ;;  %s8406_s27 = sld [smem:[#allocation10_spill]] }
  0x11   :  { %v7215_v37 = vpack.c.bf16 %v100_v36, %v99_v35  ;;  %v101_v39 = vld [vmem:[%s8400_s26] sm:$0x1f]  ;;  %v5563_v53 = vld [vmem:[%s8402_s5 + $0x28] sm:$0xff]  ;;  %v214_v55 = vld [vmem:[%s8401_s7 + $0x10] sm:$0xff] }
  0x12   :  { %v212_v49 = vld [vmem:[%s8401_s7] sm:$0xff]  ;;  %v215_v56 = vld [vmem:[%s8401_s7 + $0x18] sm:$0xff]  ;;  %v5564_v58 = vld [vmem:[%s8402_s5 + $0x30] sm:$0xff] }
  0x13   :  { %6592 = vmatpush1.bf16.msra.mxu0 %v7121_v9  ;;  %v6621_v51 = vpack.c.bf16 %v213_v50, %v212_v49  ;;  %v5562_v52 = vld [vmem:[%s8402_s5 + $0x20] sm:$0xff]  ;;  %v6624_v57 = vpack.c.bf16 %v215_v56, %v214_v55  ;;  %v5565_v59 = vld [vmem:[%s8402_s5 + $0x38] sm:$0xff]  ;;  %v298_v8 = vld [vmem:[%s8404_s3 + $0x8] sm:$0xff] }
  0x14   :  { %6593 = vmatprep.subr.bf16.mxu0 %v6965_v0  ;;  %v6651_v54 = vpack.c.bf16 %v5563_v53, %v5562_v52  ;;  %v6654_v60 = vpack.c.bf16 %v5565_v59, %v5564_v58  ;;  %v5536_v3 = vld [vmem:[%s8403_s8] ss:$0 sm:$0xff]  ;;  %v299_v15 = vld [vmem:[%s8404_s3 + $0x10] sm:$0xff]  ;;  %v300_v17 = vld [vmem:[%s8404_s3 + $0x18] sm:$0xff] }
  0x15   :  { %6622 = vmatpush3.bf16.msra.mxu1 %v6621_v51  ;;  %v297_v7 = vld [vmem:[%s8404_s3] sm:$0xff]  ;;  %v6630_v18 = vpack.c.bf16 %v300_v17, %v299_v15  ;;  %v379_v21 = vld [vmem:[%s8402_s5 + $0x8] sm:$0xff]  ;;  %v380_v24 = vld [vmem:[%s8402_s5 + $0x10] sm:$0xff] }
  0x16   :  { %6623 = vmatprep.subr.bf16.mxu1 %v6965_v0  ;;  %v5537_v10 = vld [vmem:[%s8405_s4] ss:$0 sm:$0xff]  ;;  %v6627_v12 = vpack.c.bf16 %v298_v8, %v297_v7  ;;  %v381_v26 = vld [vmem:[%s8402_s5 + $0x18] sm:$0xff]  ;;  %v5557_v7 = vld [vmem:[%s8404_s3 + $0x30] sm:$0xff] }
  0x17   :  { %6595 = vmatpush1.bf16.msra.mxu0 %v7135_v13  ;;  %v378_v20 = vld [vmem:[%s8402_s5] sm:$0xff]  ;;  %v6636_v27 = vpack.c.bf16 %v381_v26, %v380_v24  ;;  %v5558_v8 = vld [vmem:[%s8404_s3 + $0x38] sm:$0xff] }
  0x18   :  { %6596 = vmatprep.subr.bf16.mxu0 %v6965_v0  ;;  %v6633_v23 = vpack.c.bf16 %v379_v21, %v378_v20  ;;  %v5540_v35 = vld [vmem:[%s8406_s27] ss:$0 sm:$0xff]  ;;  %v5553_v21 = vld [vmem:[%s8360_s6 + $0x1] ss:$0 sm:$0xff] }
  0x19   :  { %6625 = vmatpush3.bf16.msra.mxu1 %v6624_v57  ;;  %v5548_v56 = vld [vmem:[%s8401_s7 + $0x20] sm:$0xff]  ;;  %v5549_v57 = vld [vmem:[%s8401_s7 + $0x28] sm:$0xff] }
  0x1a   :  { %6626 = vmatprep.subr.bf16.mxu1 %v6965_v0  ;;  %v6639_v59 = vpack.c.bf16 %v5549_v57, %v5548_v56  ;;  %v5577_v57 = vld [vmem:[%s8363_s12] ss:$0 sm:$0xff] }
  0x1b   :  { %6598 = vmatpush1.bf16.msra.mxu0 %v7145_v16 }
  0x1c   :  { %6599 = vmatprep.subr.bf16.mxu0 %v6965_v0 }
  0x1f   :  { %6601 = vmatpush1.bf16.msra.mxu0 %v7155_v19 }
  0x20   :  { %6602 = vmatprep.subr.bf16.mxu0 %v6965_v0 }
  0x23   :  { %6604 = vmatpush1.bf16.msra.mxu0 %v7165_v22 }
  0x24   :  { %6605 = vmatprep.subr.bf16.mxu0 %v6965_v0 }
  0x27   :  { %6607 = vmatpush1.bf16.msra.mxu0 %v7175_v25 }
  0x28   :  { %6608 = vmatprep.subr.bf16.mxu0 %v6965_v0 }
  0x2b   :  { %6610 = vmatpush1.bf16.msra.mxu0 %v7185_v28 }
  0x2c   :  { %6611 = vmatprep.subr.bf16.mxu0 %v6965_v0 }
  0x2f   :  { %6613 = vmatpush1.bf16.msra.mxu0 %v7195_v31 }
  0x30   :  { %6614 = vmatprep.subr.bf16.mxu0 %v6965_v0 }
  0x33   :  { %6616 = vmatpush1.bf16.msra.mxu0 %v7205_v34 }
  0x34   :  { %6617 = vmatprep.subr.bf16.mxu0 %v6965_v0 }
  0x37   :  { %6619 = vmatpush1.bf16.msra.mxu0 %v7215_v37 }
  0x38   :  { %6650 = vmatprep.subr.bf16.mxu0 %v6965_v0 }
  0x3a   :  { %177 = vmatmul.mubr.f32.vlgmr.msra.gmra.mrb[0].mxu0 %v106_v38  ;;  %v5538_v38 = vld [vmem:[%s8360_s6] ss:$0 sm:$0xff] }
  0x3b   :  { %6652 = vmatpush3.bf16.msra.mxu0 %v6651_v54  ;;  %6127 = vmatprep.mubr.msk.f32.mxu0 %vm6966_vm2, %v6967_v61 }
  0x3c   :  { %6653 = vmatprep.subr.bf16.mxu0 %v6965_v0 }
  0x3f   :  { %6655 = vmatpush3.bf16.msra.mxu0 %v6654_v60 }
  0x40   :  { %6656 = vmatprep.subr.bf16.mxu0 %v6965_v0 }
 0x10d   :  { %v178_v40 = vpop.f32.mrb[0].mxu0 }
 0x10e   :  { %v7226_v41 = vadd.f32 %v178_v40, %v101_v39  ;;  %v180_v42 = vpop.f32.mrb[1].mxu0 }
 0x110   :  { %v185_v43 = vsel %vm184_vm1, %v7226_v41, 0.0 }
 0x111   :  { %186 = vadd.xlane.f32.xlu0 %v185_v43  ;;  %v5542_v43 = vld [vmem:[%s8361_s10] ss:$0 sm:$0xff] }
 0x19e   :  { %v187_v44 = vpop.xlane.xlu0 %186 }
 0x19f   :  { %v188_v45 = vmul.f32 0.03125, %v187_v44 }
 0x1a1   :  { %v189_v46 = vsub.f32 %v7226_v41, %v188_v45 }
 0x1a3   :  { %v190_v47 = vmul.f32 %v189_v46, %v189_v46 }
 0x1a5   :  { %v191_v48 = vsel %vm184_vm1, %v190_v47, 0.0 }
 0x1a6   :  { %192 = vadd.xlane.f32.xlu0 %v191_v48 }
 0x233   :  { %v193_v62 = vpop.xlane.xlu0 %192 }
 0x234   :  { %v194_v63 = vmul.f32 0.03125, %v193_v62  ;;  %v5550_v62 = vld [vmem:[%s8401_s7 + $0x30] sm:$0xff] }
 0x236   :  { %v195_v1 = vadd.f32 1e-05, %v194_v63  ;;  %v5551_v63 = vld [vmem:[%s8401_s7 + $0x38] sm:$0xff] }
 0x238   :  { %6901 = vrsqrt.f32 %v195_v1  ;;  %v6642_v1 = vpack.c.bf16 %v5551_v63, %v5550_v62 }
 0x242   :  { %v6902_v2 = vpop.eup %6901 }
 0x243   :  { %v197_v5 = vmul.f32 %v6902_v2, %v189_v46  ;;  %v5555_v2 = vld [vmem:[%s8404_s3 + $0x20] sm:$0xff] }
 0x245   :  { %v204_v11 = vmul.f32 %v5536_v3, %v197_v5  ;;  %v5556_v3 = vld [vmem:[%s8404_s3 + $0x28] sm:$0xff] }
 0x246   :  { %v6645_v5 = vpack.c.bf16 %v5556_v3, %v5555_v2 }
 0x247   :  { %v7276_v14 = vadd.f32 %v5537_v10, %v204_v11  ;;  %v6648_v10 = vpack.c.bf16 %v5558_v8, %v5557_v7  ;;  %v1229_v8 = vld [vmem:[%s8364_s15 + $0x10] sm:$0xff] }
 0x249   :  { %6063 = vmatmul.mubr.msk.f32.vlgmr.msra.gmra.mrb[0].mxu1 %vm223_vm3, %v7276_v14  ;;  %6128 = vmatmul.mubr.msk.f32.vlgmr.msra.gmra.mrb[2].mxu0 %vm223_vm3, %v7276_v14 }
 0x24a   :  { %6628 = vmatpush3.bf16.msra.mxu1 %v6627_v12  ;;  %6073 = vmatprep.mubr.msk.f32.mxu1 %vm6966_vm2, %v6967_v61 }
 0x24b   :  { %6629 = vmatprep.subr.bf16.mxu1 %v6965_v0  ;;  %6144 = vmatprep.mubr.msk.f32.mxu0 %vm6966_vm2, %v6967_v61 }
 0x24e   :  { %6631 = vmatpush3.bf16.msra.mxu1 %v6630_v18  ;;  %v5560_v18 = vld [vmem:[%s8406_s27 + $0x1] ss:$0 sm:$0xff] }
 0x24f   :  { %6632 = vmatprep.subr.bf16.mxu1 %v6965_v0 }
 0x251   :  { %6074 = vmatmul.mubr.msk.f32.vlgmr.msra.gmra.mrb[2].mxu1 %vm223_vm3, %v7276_v14 }
 0x252   :  { %6634 = vmatpush3.bf16.msra.mxu1 %v6633_v23  ;;  %6084 = vmatprep.mubr.msk.f32.mxu1 %vm6966_vm2, %v6967_v61 }
 0x253   :  { %6635 = vmatprep.subr.bf16.mxu1 %v6965_v0 }
 0x256   :  { %6637 = vmatpush3.bf16.msra.mxu1 %v6636_v27 }
 0x257   :  { %6087 = vmatprep.subr.mxu1 %v6967_v61 }
 0x259   :  { %6085 = vmatmul.mubr.msk.f32.vlgmr.msra.gmra.mrb[4].mxu1 %vm223_vm3, %v7276_v14 }
 0x25a   :  { %6089 = vmatprep.mubr.msk.f32.mxu1 %vm6966_vm2, %v6967_v61 }
 0x31c   :  { %v293_v29 = vpop.f32.mrb[0].mxu1  ;;  %v7316_v30 = vpop.f32.mrb[2].mxu0 }
 0x31d   :  { %v6064_v32 = vpop.f32.mrb[1].mxu1  ;;  %v6129_v33 = vpop.f32.mrb[3].mxu0  ;;  %v294_v42 = vadd.f32 %v5538_v38, %v293_v29 }
 0x324   :  { %v374_v36 = vpop.f32.mrb[2].mxu1 }
 0x325   :  { %v375_v39 = vadd.f32 %v5540_v35, %v374_v36  ;;  %v6075_v40 = vpop.f32.mrb[3].mxu1 }
 0x326   :  { %v5573_v40 = vld [vmem:[%s8362_s11 + $0x10] sm:$0xff] }
 0x327   :  { %6088 = vmatpush3.xpose.msk.msra.mxu1 %vm459_vm4, %v375_v39 }
 0x328   :  { %6092 = vmatprep.subr.mxu1 %v6967_v61 }
 0x32a   :  { %6090 = vmatmul.mubr.msk.f32.vlgmr.msra.gmra.mrb[6].mxu1 %vm459_vm4, %v294_v42  ;;  %v5574_v42 = vld [vmem:[%s8362_s11 + $0x18] sm:$0xff] }
 0x32b   :  { %6094 = vmatprep.mubr.msk.f32.mxu1 %vm6966_vm2, %v6967_v61 }
 0x32c   :  { %v455_v44 = vpop.f32.mrb[4].mxu1 }
 0x32d   :  { %v456_v45 = vadd.f32 %v5542_v43, %v455_v44  ;;  %v6086_v46 = vpop.f32.mrb[5].mxu1  ;;  %v6657_v43 = vpack.c.bf16 %v5574_v42, %v5573_v40  ;;  %v1327_v40 = vld [vmem:[%s8367_s17 + $0x38] sm:$0xff] }
 0x32e   :  { %v627_v46 = vld [vmem:[%s8362_s11 + $0x8] sm:$0xff] }
 0x32f   :  { %6093 = vmatpush3.msk.msra.mxu1 %vm552_vm5, %v456_v45  ;;  %6658 = vmatpush3.bf16.msra.mxu0 %v6657_v43  ;;  %v626_v45 = vld [vmem:[%s8362_s11] sm:$0xff] }
 0x330   :  { %6638 = vmatprep.subr.bf16.mxu1 %v6965_v0  ;;  %6662 = vmatprep.subr.bf16.mxu0 %v6965_v0  ;;  %v5580_v43 = vld [vmem:[%s8368_s16] ss:$0 sm:$0xff] }
 0x3fd   :  { %v532_v47 = vpop.f32.mrb[6].mxu1 }
 0x3fe   :  { %v6091_v48 = vpop.f32.mrb[7].mxu1  ;;  %v537_v49 = vsel %vm536_vm6, %v532_v47, -inf }
 0x3ff   :  { %538 = vmax.xlane.f32.xlu1 %v537_v49  ;;  %v6660_v48 = vpack.c.bf16 %v627_v46, %v626_v45 }
 0x48c   :  { %v539_v50 = vpop.xlane.xlu1 %538 }
 0x48d   :  { %v540_v51 = vsub.f32 %v532_v47, %v539_v50 }
 0x48f   :  { %v541_v52 = vmul.f32 1.442695, %v540_v51 }
 0x491   :  { %6903 = vpow2.f32 %v541_v52 }
 0x49b   :  { %v6904_v53 = vpop.eup %6903 }
 0x49c   :  { %v543_v54 = vsel %vm536_vm6, %v6904_v53, 0.0 }
 0x49d   :  { %544 = vadd.xlane.f32.xlu1 %v543_v54 }
 0x52a   :  { %v545_v55 = vpop.xlane.xlu1 %544 }
 0x52b   :  { %6905 = vrcp.f32 %v545_v55 }
 0x535   :  { %v6906_v58 = vpop.eup %6905 }
 0x536   :  { %v547_v60 = vmul.f32 %v6906_v58, %v6904_v53 }
 0x538   :  { %6095 = vmatmul.mubr.msk.f32.vlgmr.msra.gmra.mrb[8].mxu1 %vm548_vm7, %v547_v60 }
 0x539   :  { %6640 = vmatpush3.bf16.msra.mxu1 %v6639_v59  ;;  %6105 = vmatprep.mubr.msk.f32.mxu1 %vm6966_vm2, %v6967_v61 }
 0x53a   :  { %6641 = vmatprep.subr.bf16.mxu1 %v6965_v0 }
 0x53d   :  { %6643 = vmatpush3.bf16.msra.mxu1 %v6642_v1 }
 0x53e   :  { %6644 = vmatprep.subr.bf16.mxu1 %v6965_v0 }
 0x540   :  { %6106 = vmatmul.mubr.msk.f32.vlgmr.msra.gmra.mrb[10].mxu1 %vm223_vm3, %v7276_v14 }
 0x541   :  { %6646 = vmatpush3.bf16.msra.mxu1 %v6645_v5  ;;  %6116 = vmatprep.mubr.msk.f32.mxu1 %vm6966_vm2, %v6967_v61  ;;  %v1227_v5 = vld [vmem:[%s8364_s15] sm:$0xff] }
 0x542   :  { %6647 = vmatprep.subr.bf16.mxu1 %v6965_v0 }
 0x545   :  { %6649 = vmatpush3.bf16.msra.mxu1 %v6648_v10  ;;  %v1230_v10 = vld [vmem:[%s8364_s15 + $0x18] sm:$0xff] }
 0x546   :  { %6130 = vmatprep.subr.mxu1 %v6967_v61 }
 0x548   :  { %6117 = vmatmul.mubr.msk.f32.vlgmr.msra.gmra.mrb[12].mxu1 %vm223_vm3, %v7276_v14  ;;  %v5567_v14 = vld [vmem:[%s8361_s10 + $0x1] ss:$0 sm:$0xff] }
 0x549   :  { %6132 = vmatprep.mubr.msk.f32.mxu1 %vm6966_vm2, %v6967_v61  ;;  %v874_v27 = vadd.f32 %v5567_v14, %v7316_v30 }
 0x60b   :  { %v622_v11 = vpop.f32.mrb[8].mxu1 }
 0x60c   :  { %v6096_v12 = vpop.f32.mrb[9].mxu1 }
 0x613   :  { %v707_v15 = vpop.f32.mrb[10].mxu1 }
 0x614   :  { %v6107_v17 = vpop.f32.mrb[11].mxu1  ;;  %v708_v26 = vadd.f32 %v5553_v21, %v707_v15 }
 0x61b   :  { %v790_v20 = vpop.f32.mrb[12].mxu1 }
 0x61c   :  { %v791_v23 = vadd.f32 %v5560_v18, %v790_v20  ;;  %v6118_v24 = vpop.f32.mrb[13].mxu1  ;;  %v5578_v20 = vld [vmem:[%s8365_s13] ss:$0 sm:$0xff] }
 0x61e   :  { %6131 = vmatpush3.xpose.msk.msra.mxu1 %vm459_vm4, %v791_v23  ;;  %v5579_v23 = vld [vmem:[%s8366_s14] ss:$0 sm:$0xff] }
 0x61f   :  { %6135 = vmatprep.subr.mxu1 %v6967_v61 }
 0x621   :  { %6133 = vmatmul.mubr.msk.f32.vlgmr.msra.gmra.mrb[14].mxu1 %vm459_vm4, %v708_v26  ;;  %v1320_v26 = vld [vmem:[%s8367_s17] sm:$0xff] }
 0x622   :  { %6136 = vmatpush3.msk.msra.mxu1 %vm552_vm5, %v874_v27  ;;  %6137 = vmatprep.mubr.msk.f32.mxu1 %vm6966_vm2, %v6967_v61  ;;  %v1321_v27 = vld [vmem:[%s8367_s17 + $0x8] sm:$0xff] }
 0x623   :  { %6659 = vmatprep.subr.bf16.mxu1 %v6965_v0 }
 0x6f4   :  { %v949_v29 = vpop.f32.mrb[14].mxu1 }
 0x6f5   :  { %v6134_v32 = vpop.f32.mrb[15].mxu1  ;;  %v953_v33 = vsel %vm536_vm6, %v949_v29, -inf }
 0x6f6   :  { %954 = vmax.xlane.f32.xlu0 %v953_v33  ;;  %v1322_v32 = vld [vmem:[%s8367_s17 + $0x10] sm:$0xff]  ;;  %v1323_v33 = vld [vmem:[%s8367_s17 + $0x18] sm:$0xff] }
 0x783   :  { %v955_v35 = vpop.xlane.xlu0 %954 }
 0x784   :  { %v956_v36 = vsub.f32 %v949_v29, %v955_v35  ;;  %v6669_v29 = vpack.c.bf16 %v1321_v27, %v1320_v26  ;;  %v6672_v35 = vpack.c.bf16 %v1323_v33, %v1322_v32  ;;  %v5595_v33 = vld [vmem:[%s8404_s3 + $0x40] sm:$0xff] }
 0x786   :  { %v957_v38 = vmul.f32 1.442695, %v956_v36  ;;  %v1324_v36 = vld [vmem:[%s8367_s17 + $0x20] sm:$0xff] }
 0x788   :  { %6907 = vpow2.f32 %v957_v38  ;;  %v1325_v38 = vld [vmem:[%s8367_s17 + $0x28] sm:$0xff] }
 0x792   :  { %v6908_v39 = vpop.eup %6907 }
 0x793   :  { %v959_v30 = vsel %vm536_vm6, %v6908_v39, 0.0 }
 0x794   :  { %960 = vadd.xlane.f32.xlu1 %v959_v30  ;;  %v1326_v30 = vld [vmem:[%s8367_s17 + $0x30] sm:$0xff] }
 0x795   :  { %v6678_v42 = vpack.c.bf16 %v1327_v40, %v1326_v30  ;;  %v5597_v40 = vld [vmem:[%s8404_s3 + $0x50] sm:$0xff] }
 0x821   :  { %v961_v44 = vpop.xlane.xlu1 %960 }
 0x822   :  { %6909 = vrcp.f32 %v961_v44 }
 0x82c   :  { %v6910_v47 = vpop.eup %6909 }
 0x82d   :  { %v963_v49 = vmul.f32 %v6910_v47, %v6908_v39  ;;  %v6675_v39 = vpack.c.bf16 %v1325_v38, %v1324_v36  ;;  %v5587_v36 = vld [vmem:[%s8405_s4 + $0x1] ss:$0 sm:$0xff] }
 0x82f   :  { %6138 = vmatmul.mubr.msk.f32.vlgmr.msra.gmra.mrb[16].mxu1 %vm548_vm7, %v963_v49 }
 0x830   :  { %6661 = vmatpush3.bf16.msra.mxu1 %v6660_v48  ;;  %6151 = vmatprep.mubr.msk.f32.mxu1 %vm6966_vm2, %v6967_v61 }
 0x831   :  { %6668 = vmatprep.subr.bf16.mxu1 %v6965_v0 }
 0x833   :  { %6152 = vmatmul.mubr.msk.f32.vlgmr.msra.gmra.mrb[18].mxu1 %vm459_vm4, %v622_v11  ;;  %v6666_v11 = vpack.c.bf16 %v1230_v10, %v1229_v8  ;;  %v5602_v10 = vld [vmem:[%s8402_s5 + $0x40] sm:$0xff] }
 0x834   :  { %6181 = vmatprep.mubr.msk.f32.mxu1 %vm6966_vm2, %v6967_v61  ;;  %6670 = vmatpush3.bf16.msra.mxu1 %v6669_v29  ;;  %v5586_v29 = vld [vmem:[%s8403_s8 + $0x1] ss:$0 sm:$0xff] }
 0x835   :  { %6671 = vmatprep.subr.bf16.mxu1 %v6965_v0 }
 0x838   :  { %6673 = vmatpush3.bf16.msra.mxu1 %v6672_v35  ;;  %v5596_v35 = vld [vmem:[%s8404_s3 + $0x48] sm:$0xff] }
 0x839   :  { %6674 = vmatprep.subr.bf16.mxu1 %v6965_v0 }
 0x83c   :  { %6676 = vmatpush3.bf16.msra.mxu1 %v6675_v39  ;;  %v6687_v39 = vpack.c.bf16 %v5596_v35, %v5595_v33 }
 0x83d   :  { %6677 = vmatprep.subr.bf16.mxu1 %v6965_v0 }
 0x840   :  { %6679 = vmatpush3.bf16.msra.mxu1 %v6678_v42  ;;  %v5598_v42 = vld [vmem:[%s8404_s3 + $0x58] sm:$0xff] }
 0x841   :  { %6692 = vmatprep.subr.bf16.mxu1 %v6965_v0 }
 0x902   :  { %v1036_v50 = vpop.f32.mrb[16].mxu1 }
 0x903   :  { %v6139_v51 = vpop.f32.mrb[17].mxu1  ;;  %6145 = vmatmul.mubr.msk.f32.vlgmr.msra.gmra.mrb[4].mxu0 %vm459_vm4, %v1036_v50 }
 0x904   :  { %6162 = vmatprep.mubr.msk.f32.mxu0 %vm6966_vm2, %v6967_v61 }
 0x906   :  { %v1185_v52 = vpop.f32.mrb[18].mxu1 }
 0x907   :  { %v6153_v53 = vpop.f32.mrb[19].mxu1 }
 0x9d6   :  { %v1112_v54 = vpop.f32.mrb[4].mxu0 }
 0x9d7   :  { %v1186_v55 = vadd.f32 %v1185_v52, %v1112_v54  ;;  %v6146_v56 = vpop.f32.mrb[5].mxu0 }
 0x9d9   :  { %v1189_v58 = vadd.f32 %v1186_v55, %v7226_v41  ;;  %v1228_v41 = vld [vmem:[%s8364_s15 + $0x8] sm:$0xff] }
 0x9da   :  { %v6663_v7 = vpack.c.bf16 %v1228_v41, %v1227_v5 }
 0x9db   :  { %v7421_v59 = vadd.f32 %v5577_v57, %v1189_v58  ;;  %v5583_v57 = vld [vmem:[%s8369_s18] ss:$0 sm:$0xff] }
 0x9dc   :  { %6664 = vmatpush3.bf16.msra.mxu0 %v6663_v7  ;;  %v5588_v7 = vld [vmem:[%s8401_s7 + $0x40] sm:$0xff] }
 0x9dd   :  { %v1200_v60 = vsel %vm184_vm1, %v7421_v59, 0.0  ;;  %6665 = vmatprep.subr.bf16.mxu0 %v6965_v0 }
 0x9de   :  { %1201 = vadd.xlane.f32.xlu0 %v1200_v60 }
 0x9e0   :  { %6667 = vmatpush3.bf16.msra.mxu0 %v6666_v11  ;;  %v5603_v11 = vld [vmem:[%s8402_s5 + $0x48] sm:$0xff] }
 0x9e1   :  { %6680 = vmatprep.subr.bf16.mxu0 %v6965_v0 }
 0xa6b   :  { %v1202_v62 = vpop.xlane.xlu0 %1201 }
 0xa6c   :  { %v1203_v63 = vmul.f32 0.03125, %v1202_v62 }
 0xa6e   :  { %v1204_v1 = vsub.f32 %v7421_v59, %v1203_v63 }
 0xa70   :  { %v1205_v2 = vmul.f32 %v1204_v1, %v1204_v1 }
 0xa72   :  { %v1206_v3 = vsel %vm184_vm1, %v1205_v2, 0.0 }
 0xa73   :  { %1207 = vadd.xlane.f32.xlu1 %v1206_v3 }
 0xb00   :  { %v1208_v12 = vpop.xlane.xlu1 %1207 }
 0xb01   :  { %v1209_v15 = vmul.f32 0.03125, %v1208_v12  ;;  %v6693_v12 = vpack.c.bf16 %v5603_v11, %v5602_v10 }
 0xb03   :  { %v1210_v17 = vadd.f32 1e-05, %v1209_v15  ;;  %v5590_v15 = vld [vmem:[%s8401_s7 + $0x50] sm:$0xff] }
 0xb05   :  { %6911 = vrsqrt.f32 %v1210_v17  ;;  %v5591_v17 = vld [vmem:[%s8401_s7 + $0x58] sm:$0xff] }
 0xb0f   :  { %v6912_v18 = vpop.eup %6911 }
 0xb10   :  { %v1212_v21 = vmul.f32 %v6912_v18, %v1204_v1  ;;  %v6684_v18 = vpack.c.bf16 %v5591_v17, %v5590_v15 }
 0xb12   :  { %v1219_v24 = vmul.f32 %v5578_v20, %v1212_v21  ;;  %v5604_v20 = vld [vmem:[%s8402_s5 + $0x50] sm:$0xff]  ;;  %v5605_v21 = vld [vmem:[%s8402_s5 + $0x58] sm:$0xff] }
 0xb14   :  { %v1226_v14 = vadd.f32 %v5579_v23, %v1219_v24  ;;  %v6696_v23 = vpack.c.bf16 %v5605_v21, %v5604_v20 }
 0xb16   :  { %6163 = vmatmul.mubr.msk.f32.vlgmr.msra.gmra.mrb[6].mxu0 %vm223_vm3, %v1226_v14 }
 0xb17   :  { %6192 = vmatprep.mubr.msk.f32.mxu0 %vm6966_vm2, %v6967_v61 }
 0xbe9   :  { %v1307_v44 = vpop.f32.mrb[6].mxu0 }
 0xbea   :  { %v1308_v45 = vadd.f32 %v5580_v43, %v1307_v44  ;;  %v6164_v46 = vpop.f32.mrb[7].mxu0  ;;  %v6690_v43 = vpack.c.bf16 %v5598_v42, %v5597_v40  ;;  %v5607_v44 = vld [vmem:[%s8361_s10 + $0x2] ss:$0 sm:$0xff] }
 0xbec   :  { %v1312_v47 = vmul.f32 0.044715, %v1308_v45  ;;  %v1311_v53 = vmul.f32 0.5, %v1308_v45 }
 0xbee   :  { %v1313_v48 = vmul.f32 %v1312_v47, %v1308_v45 }
 0xbf0   :  { %v1314_v49 = vmul.f32 %v1313_v48, %v1308_v45 }
 0xbf2   :  { %v1315_v50 = vadd.f32 %v1314_v49, %v1308_v45 }
 0xbf4   :  { %v1316_v51 = vmul.f32 0.7978846, %v1315_v50  ;;  %v5600_v50 = vld [vmem:[%s8406_s27 + $0x2] ss:$0 sm:$0xff] }
 0xbf6   :  { %6913 = vtanh.f32 %v1316_v51 }
 0xc00   :  { %v6914_v52 = vpop.eup %6913 }
 0xc01   :  { %v1318_v54 = vadd.f32 1.0, %v6914_v52  ;;  %v5615_v52 = vld [vmem:[%s8401_s7 + $0x60] sm:$0xff] }
 0xc03   :  { %v1319_v55 = vmul.f32 %v1318_v54, %v1311_v53  ;;  %v5616_v53 = vld [vmem:[%s8401_s7 + $0x68] sm:$0xff]  ;;  %v5593_v54 = vld [vmem:[%s8360_s6 + $0x2] ss:$0 sm:$0xff] }
 0xc05   :  { %6182 = vmatmul.mubr.msk.f32.vlgmr.msra.gmra.mrb[20].mxu1 %vm108_vm0, %v1319_v55 }
 0xc06   :  { %6214 = vmatprep.mubr.msk.f32.mxu1 %vm6966_vm2, %v6967_v61  ;;  %6694 = vmatpush3.bf16.msra.mxu1 %v6693_v12 }
 0xc07   :  { %6695 = vmatprep.subr.bf16.mxu1 %v6965_v0 }
 0xc0a   :  { %6697 = vmatpush3.bf16.msra.mxu1 %v6696_v23 }
 0xc0b   :  { %6222 = vmatprep.subr.mxu1 %v6967_v61 }
 0xcd8   :  { %v1397_v56 = vpop.f32.mrb[20].mxu1 }
 0xcd9   :  { %v1401_v58 = vadd.f32 %v1397_v56, %v7421_v59  ;;  %v6183_v60 = vpop.f32.mrb[21].mxu1  ;;  %v5589_v59 = vld [vmem:[%s8401_s7 + $0x48] sm:$0xff] }
 0xcda   :  { %v6681_v8 = vpack.c.bf16 %v5589_v59, %v5588_v7  ;;  %v5617_v60 = vld [vmem:[%s8401_s7 + $0x70] sm:$0xff]  ;;  %v5632_v7 = vld [vmem:[%s8402_s5 + $0x78] sm:$0xff] }
 0xcdb   :  { %v7488_v62 = vadd.f32 %v5583_v57, %v1401_v58  ;;  %v6699_v57 = vpack.c.bf16 %v5616_v53, %v5615_v52 }
 0xcdc   :  { %6682 = vmatpush3.bf16.msra.mxu0 %v6681_v8 }
 0xcdd   :  { %v1414_v63 = vsel %vm184_vm1, %v7488_v62, 0.0  ;;  %6683 = vmatprep.subr.bf16.mxu0 %v6965_v0 }
 0xcde   :  { %1415 = vadd.xlane.f32.xlu0 %v1414_v63  ;;  %v5618_v63 = vld [vmem:[%s8401_s7 + $0x78] sm:$0xff] }
 0xce0   :  { %6685 = vmatpush3.bf16.msra.mxu0 %v6684_v18 }
 0xce1   :  { %6686 = vmatprep.subr.bf16.mxu0 %v6965_v0 }
 0xd6b   :  { %v1416_v1 = vpop.xlane.xlu0 %1415 }
 0xd6c   :  { %v1417_v2 = vmul.f32 0.03125, %v1416_v1  ;;  %v6702_v1 = vpack.c.bf16 %v5618_v63, %v5617_v60  ;;  %v5641_v60 = vld [vmem:[%s8362_s11 + $0x38] sm:$0xff] }
 0xd6e   :  { %v1418_v3 = vsub.f32 %v7488_v62, %v1417_v2  ;;  %v5629_v2 = vld [vmem:[%s8402_s5 + $0x60] sm:$0xff] }
 0xd70   :  { %v1419_v5 = vmul.f32 %v1418_v3, %v1418_v3 }
 0xd72   :  { %v1420_v41 = vsel %vm184_vm1, %v1419_v5, 0.0 }
 0xd73   :  { %1421 = vadd.xlane.f32.xlu1 %v1420_v41  ;;  %v5631_v41 = vld [vmem:[%s8402_s5 + $0x70] sm:$0xff] }
 0xd74   :  { %v6714_v59 = vpack.c.bf16 %v5632_v7, %v5631_v41 }
 0xe00   :  { %v1422_v24 = vpop.xlane.xlu1 %1421 }
 0xe01   :  { %v1423_v14 = vmul.f32 0.03125, %v1422_v24 }
 0xe03   :  { %v1424_v26 = vadd.f32 1e-05, %v1423_v14 }
 0xe05   :  { %6915 = vrsqrt.f32 %v1424_v26 }
 0xe0f   :  { %v6916_v27 = vpop.eup %6915 }
 0xe10   :  { %v1426_v32 = vmul.f32 %v6916_v27, %v1418_v3  ;;  %v5630_v3 = vld [vmem:[%s8402_s5 + $0x68] sm:$0xff]  ;;  %v5622_v27 = vld [vmem:[%s8404_s3 + $0x60] sm:$0xff] }
 0xe11   :  { %v6711_v5 = vpack.c.bf16 %v5630_v3, %v5629_v2  ;;  %v5613_v2 = vld [vmem:[%s8362_s11 + $0x20] sm:$0xff]  ;;  %v5614_v3 = vld [vmem:[%s8362_s11 + $0x28] sm:$0xff] }
 0xe12   :  { %v1433_v38 = vmul.f32 %v5586_v29, %v1426_v32  ;;  %v5623_v29 = vld [vmem:[%s8404_s3 + $0x68] sm:$0xff]  ;;  %v6720_v41 = vpack.c.bf16 %v5614_v3, %v5613_v2 }
 0xe13   :  { %v6705_v33 = vpack.c.bf16 %v5623_v29, %v5622_v27 }
 0xe14   :  { %v7534_v30 = vadd.f32 %v5587_v36, %v1433_v38  ;;  %v5624_v36 = vld [vmem:[%s8404_s3 + $0x70] sm:$0xff]  ;;  %v5625_v38 = vld [vmem:[%s8404_s3 + $0x78] sm:$0xff] }
 0xe16   :  { %6193 = vmatmul.mubr.msk.f32.vlgmr.msra.gmra.mrb[8].mxu0 %vm223_vm3, %v7534_v30  ;;  %6215 = vmatmul.mubr.msk.f32.vlgmr.msra.gmra.mrb[22].mxu1 %vm223_vm3, %v7534_v30 }
 0xe17   :  { %6688 = vmatpush3.bf16.msra.mxu0 %v6687_v39  ;;  %6203 = vmatprep.mubr.msk.f32.mxu0 %vm6966_vm2, %v6967_v61  ;;  %v6708_v39 = vpack.c.bf16 %v5625_v38, %v5624_v36  ;;  %v5653_v36 = vld [vmem:[%s8364_s15 + $0x38] sm:$0xff] }
 0xe18   :  { %6689 = vmatprep.subr.bf16.mxu0 %v6965_v0  ;;  %6224 = vmatprep.mubr.msk.f32.mxu1 %vm6966_vm2, %v6967_v61 }
 0xe1b   :  { %6691 = vmatpush3.bf16.msra.mxu0 %v6690_v43  ;;  %v5627_v43 = vld [vmem:[%s8406_s27 + $0x3] ss:$0 sm:$0xff] }
 0xe1c   :  { %6217 = vmatprep.subr.mxu0 %v6967_v61 }
 0xe1e   :  { %6204 = vmatmul.mubr.msk.f32.vlgmr.msra.gmra.mrb[10].mxu0 %vm223_vm3, %v7534_v30 }
 0xe1f   :  { %6219 = vmatprep.mubr.msk.f32.mxu0 %vm6966_vm2, %v6967_v61 }
 0xee9   :  { %v1523_v45 = vpop.f32.mrb[8].mxu0  ;;  %v1689_v46 = vpop.f32.mrb[22].mxu1 }
 0xeea   :  { %v1690_v47 = vadd.f32 %v5607_v44, %v1689_v46  ;;  %v6194_v48 = vpop.f32.mrb[9].mxu0  ;;  %v6216_v49 = vpop.f32.mrb[23].mxu1  ;;  %v1524_v58 = vadd.f32 %v5593_v54, %v1523_v45  ;;  %v5620_v45 = vld [vmem:[%s8360_s6 + $0x3] ss:$0 sm:$0xff] }
 0xeec   :  { %6223 = vmatpush3.msk.msra.mxu1 %vm552_vm5, %v1690_v47 }
 0xeed   :  { %6704 = vmatprep.subr.bf16.mxu1 %v6965_v0 }
 0xef1   :  { %v1606_v51 = vpop.f32.mrb[10].mxu0 }
 0xef2   :  { %v1607_v55 = vadd.f32 %v5600_v50, %v1606_v51  ;;  %v6205_v56 = vpop.f32.mrb[11].mxu0 }
 0xef4   :  { %6218 = vmatpush3.xpose.msk.msra.mxu0 %vm459_vm4, %v1607_v55 }
 0xef5   :  { %6698 = vmatprep.subr.bf16.mxu0 %v6965_v0 }
 0xef7   :  { %6220 = vmatmul.mubr.msk.f32.vlgmr.msra.gmra.mrb[12].mxu0 %vm459_vm4, %v1524_v58  ;;  %v5640_v58 = vld [vmem:[%s8362_s11 + $0x30] sm:$0xff] }
 0xef8   :  { %6700 = vmatpush3.bf16.msra.mxu0 %v6699_v57  ;;  %6235 = vmatprep.mubr.msk.f32.mxu0 %vm6966_vm2, %v6967_v61  ;;  %v6717_v63 = vpack.c.bf16 %v5641_v60, %v5640_v58  ;;  %v5664_v58 = vld [vmem:[%s8367_s17 + $0x78] sm:$0xff] }
 0xef9   :  { %6701 = vmatprep.subr.bf16.mxu0 %v6965_v0 }
 0xefc   :  { %6703 = vmatpush3.bf16.msra.mxu0 %v6702_v1 }
 0xefd   :  { %6710 = vmatprep.subr.bf16.mxu0 %v6965_v0 }
 0xeff   :  { %6236 = vmatmul.mubr.msk.f32.vlgmr.msra.gmra.mrb[14].mxu0 %vm223_vm3, %v7534_v30 }
 0xf00   :  { %6712 = vmatpush3.bf16.msra.mxu0 %v6711_v5  ;;  %6257 = vmatprep.mubr.msk.f32.mxu0 %vm6966_vm2, %v6967_v61 }
 0xf01   :  { %6713 = vmatprep.subr.bf16.mxu0 %v6965_v0 }
 0xf04   :  { %6715 = vmatpush3.bf16.msra.mxu0 %v6714_v59 }
 0xf05   :  { %6716 = vmatprep.subr.bf16.mxu0 %v6965_v0 }
 0xf07   :  { %6258 = vmatmul.mubr.msk.f32.vlgmr.msra.gmra.mrb[16].mxu0 %vm223_vm3, %v7534_v30 }
 0xf08   :  { %6274 = vmatprep.mubr.msk.f32.mxu0 %vm6966_vm2, %v6967_v61  ;;  %6718 = vmatpush3.bf16.msra.mxu0 %v6717_v63  ;;  %v5655_v63 = vld [vmem:[%s8368_s16 + $0x1] ss:$0 sm:$0xff] }
 0xf09   :  { %6722 = vmatprep.subr.bf16.mxu0 %v6965_v0 }
 0xfca   :  { %v1765_v8 = vpop.f32.mrb[12].mxu0 }
 0xfcb   :  { %v6221_v10 = vpop.f32.mrb[13].mxu0  ;;  %v1769_v11 = vsel %vm536_vm6, %v1765_v8, -inf }
 0xfcc   :  { %1770 = vmax.xlane.f32.xlu0 %v1769_v11 }
 0xfd2   :  { %v1938_v12 = vpop.f32.mrb[14].mxu0 }
 0xfd3   :  { %v6237_v15 = vpop.f32.mrb[15].mxu0  ;;  %v1939_v48 = vadd.f32 %v5620_v45, %v1938_v12 }
 0xfda   :  { %v2104_v17 = vpop.f32.mrb[16].mxu0 }
 0xfdb   :  { %v6259_v18 = vpop.f32.mrb[17].mxu0 }
 0xfdc   :  { %v5645_v18 = vld [vmem:[%s8363_s12 + $0x1] ss:$0 sm:$0xff] }
0x1059   :  { %v1771_v20 = vpop.xlane.xlu0 %1770 }
0x105a   :  { %v1772_v21 = vsub.f32 %v1765_v8, %v1771_v20 }
0x105c   :  { %v1773_v23 = vmul.f32 1.442695, %v1772_v21 }
0x105e   :  { %6917 = vpow2.f32 %v1773_v23 }
0x1068   :  { %v6918_v24 = vpop.eup %6917 }
0x1069   :  { %v1775_v14 = vsel %vm536_vm6, %v6918_v24, 0.0 }
0x106a   :  { %1776 = vadd.xlane.f32.xlu1 %v1775_v14 }
0x10f7   :  { %v1777_v26 = vpop.xlane.xlu1 %1776 }
0x10f8   :  { %6919 = vrcp.f32 %v1777_v26 }
0x1102   :  { %v6920_v32 = vpop.eup %6919 }
0x1103   :  { %v1779_v35 = vmul.f32 %v6920_v32, %v6918_v24  ;;  %v5650_v32 = vld [vmem:[%s8364_s15 + $0x20] sm:$0xff] }
0x1105   :  { %6225 = vmatmul.mubr.msk.f32.vlgmr.msra.gmra.mrb[24].mxu1 %vm548_vm7, %v1779_v35  ;;  %v5652_v35 = vld [vmem:[%s8364_s15 + $0x30] sm:$0xff] }
0x1106   :  { %6706 = vmatpush3.bf16.msra.mxu1 %v6705_v33  ;;  %6246 = vmatprep.mubr.msk.f32.mxu1 %vm6966_vm2, %v6967_v61  ;;  %v6726_v38 = vpack.c.bf16 %v5653_v36, %v5652_v35 }
0x1107   :  { %6707 = vmatprep.subr.bf16.mxu1 %v6965_v0 }
0x110a   :  { %6709 = vmatpush3.bf16.msra.mxu1 %v6708_v39 }
0x110b   :  { %6260 = vmatprep.subr.mxu1 %v6967_v61 }
0x110d   :  { %6247 = vmatmul.mubr.msk.f32.vlgmr.msra.gmra.mrb[26].mxu1 %vm223_vm3, %v7534_v30  ;;  %v5634_v30 = vld [vmem:[%s8361_s10 + $0x3] ss:$0 sm:$0xff] }
0x110e   :  { %6262 = vmatprep.mubr.msk.f32.mxu1 %vm6966_vm2, %v6967_v61  ;;  %v2105_v49 = vadd.f32 %v5634_v30, %v2104_v17 }
0x11d8   :  { %v1852_v40 = vpop.f32.mrb[24].mxu1 }
0x11d9   :  { %v6226_v42 = vpop.f32.mrb[25].mxu1 }
0x11e0   :  { %v2021_v44 = vpop.f32.mrb[26].mxu1 }
0x11e1   :  { %v2022_v46 = vadd.f32 %v5627_v43, %v2021_v44  ;;  %v6248_v47 = vpop.f32.mrb[27].mxu1  ;;  %v5648_v44 = vld [vmem:[%s8365_s13 + $0x1] ss:$0 sm:$0xff] }
0x11e3   :  { %6261 = vmatpush3.xpose.msk.msra.mxu1 %vm459_vm4, %v2022_v46  ;;  %v5649_v46 = vld [vmem:[%s8366_s14 + $0x1] ss:$0 sm:$0xff] }
0x11e4   :  { %6265 = vmatprep.subr.mxu1 %v6967_v61 }
0x11e6   :  { %6263 = vmatmul.mubr.msk.f32.vlgmr.msra.gmra.mrb[28].mxu1 %vm459_vm4, %v1939_v48  ;;  %v5657_v48 = vld [vmem:[%s8367_s17 + $0x40] sm:$0xff] }
0x11e7   :  { %6266 = vmatpush3.msk.msra.mxu1 %vm552_vm5, %v2105_v49  ;;  %6267 = vmatprep.mubr.msk.f32.mxu1 %vm6966_vm2, %v6967_v61  ;;  %v5658_v49 = vld [vmem:[%s8367_s17 + $0x48] sm:$0xff] }
0x11e8   :  { %6719 = vmatprep.subr.bf16.mxu1 %v6965_v0 }
0x12b9   :  { %v2180_v50 = vpop.f32.mrb[28].mxu1 }
0x12ba   :  { %v6264_v51 = vpop.f32.mrb[29].mxu1  ;;  %v2184_v52 = vsel %vm536_vm6, %v2180_v50, -inf }
0x12bb   :  { %2185 = vmax.xlane.f32.xlu0 %v2184_v52  ;;  %v5659_v51 = vld [vmem:[%s8367_s17 + $0x50] sm:$0xff]  ;;  %v5660_v52 = vld [vmem:[%s8367_s17 + $0x58] sm:$0xff] }
0x1348   :  { %v2186_v53 = vpop.xlane.xlu0 %2185 }
0x1349   :  { %v2187_v54 = vsub.f32 %v2180_v50, %v2186_v53  ;;  %v6729_v50 = vpack.c.bf16 %v5658_v49, %v5657_v48  ;;  %v6732_v53 = vpack.c.bf16 %v5660_v52, %v5659_v51  ;;  %v2949_v51 = vld [vmem:[%s8401_s7 + $0x8] sm:$0xff] }
0x134b   :  { %v2188_v55 = vmul.f32 1.442695, %v2187_v54  ;;  %v5661_v54 = vld [vmem:[%s8367_s17 + $0x60] sm:$0xff] }
0x134d   :  { %6921 = vpow2.f32 %v2188_v55  ;;  %v5662_v55 = vld [vmem:[%s8367_s17 + $0x68] sm:$0xff] }
0x1357   :  { %v6922_v56 = vpop.eup %6921 }
0x1358   :  { %v2190_v57 = vsel %vm536_vm6, %v6922_v56, 0.0 }
0x1359   :  { %2191 = vadd.xlane.f32.xlu1 %v2190_v57  ;;  %v5663_v57 = vld [vmem:[%s8367_s17 + $0x70] sm:$0xff] }
0x135a   :  { %v6738_v60 = vpack.c.bf16 %v5664_v58, %v5663_v57  ;;  %v2951_v57 = vld [vmem:[%s8401_s7 + $0x18] sm:$0xff] }
0x13e6   :  { %v2192_v1 = vpop.xlane.xlu1 %2191 }
0x13e7   :  { %6923 = vrcp.f32 %v2192_v1 }
0x13f1   :  { %v6924_v5 = vpop.eup %6923 }
0x13f2   :  { %v2194_v7 = vmul.f32 %v6924_v5, %v6922_v56  ;;  %v6735_v56 = vpack.c.bf16 %v5662_v55, %v5661_v54  ;;  %v5705_v54 = vld [vmem:[%s8402_s5 + $0x28] sm:$0xff] }
0x13f4   :  { %6268 = vmatmul.mubr.msk.f32.vlgmr.msra.gmra.mrb[30].mxu1 %vm548_vm7, %v2194_v7 }
0x13f5   :  { %6721 = vmatpush3.bf16.msra.mxu1 %v6720_v41  ;;  %6281 = vmatprep.mubr.msk.f32.mxu1 %vm6966_vm2, %v6967_v61 }
0x13f6   :  { %6728 = vmatprep.subr.bf16.mxu1 %v6965_v0 }
0x13f8   :  { %6282 = vmatmul.mubr.msk.f32.vlgmr.msra.gmra.mrb[32].mxu1 %vm459_vm4, %v1852_v40 }
0x13f9   :  { %6311 = vmatprep.mubr.msk.f32.mxu1 %vm6966_vm2, %v6967_v61  ;;  %6730 = vmatpush3.bf16.msra.mxu1 %v6729_v50  ;;  %v2948_v50 = vld [vmem:[%s8401_s7] sm:$0xff] }
0x13fa   :  { %6731 = vmatprep.subr.bf16.mxu1 %v6965_v0  ;;  %v6777_v52 = vpack.c.bf16 %v2949_v51, %v2948_v50 }
0x13fd   :  { %6733 = vmatpush3.bf16.msra.mxu1 %v6732_v53  ;;  %v5704_v53 = vld [vmem:[%s8402_s5 + $0x20] sm:$0xff] }
0x13fe   :  { %6734 = vmatprep.subr.bf16.mxu1 %v6965_v0  ;;  %v6807_v55 = vpack.c.bf16 %v5705_v54, %v5704_v53  ;;  %v5693_v53 = vld [vmem:[%s8401_s7 + $0x38] sm:$0xff] }
0x1401   :  { %6736 = vmatpush3.bf16.msra.mxu1 %v6735_v56  ;;  %v2950_v56 = vld [vmem:[%s8401_s7 + $0x10] sm:$0xff] }
0x1402   :  { %6737 = vmatprep.subr.bf16.mxu1 %v6965_v0  ;;  %v6780_v58 = vpack.c.bf16 %v2951_v57, %v2950_v56  ;;  %v5698_v56 = vld [vmem:[%s8404_s3 + $0x28] sm:$0xff] }
0x1405   :  { %6739 = vmatpush3.bf16.msra.mxu1 %v6738_v60  ;;  %v5706_v60 = vld [vmem:[%s8402_s5 + $0x30] sm:$0xff] }
0x1406   :  { %6776 = vmatprep.subr.bf16.mxu1 %v6965_v0 }
0x14c7   :  { %v2267_v59 = vpop.f32.mrb[30].mxu1 }
0x14c8   :  { %v6269_v8 = vpop.f32.mrb[31].mxu1  ;;  %6275 = vmatmul.mubr.msk.f32.vlgmr.msra.gmra.mrb[18].mxu0 %vm459_vm4, %v2267_v59 }
0x14c9   :  { %6292 = vmatprep.mubr.msk.f32.mxu0 %vm6966_vm2, %v6967_v61 }
0x14cb   :  { %v2416_v10 = vpop.f32.mrb[32].mxu1 }
0x14cc   :  { %v6283_v11 = vpop.f32.mrb[33].mxu1 }
0x159b   :  { %v2343_v12 = vpop.f32.mrb[18].mxu0 }
0x159c   :  { %v2417_v15 = vadd.f32 %v2416_v10, %v2343_v12  ;;  %v6276_v17 = vpop.f32.mrb[19].mxu0 }
0x159e   :  { %v2420_v20 = vadd.f32 %v2417_v15, %v7488_v62  ;;  %v5651_v62 = vld [vmem:[%s8364_s15 + $0x28] sm:$0xff] }
0x159f   :  { %v6723_v33 = vpack.c.bf16 %v5651_v62, %v5650_v32 }
0x15a0   :  { %v7676_v21 = vadd.f32 %v5645_v18, %v2420_v20  ;;  %v5667_v18 = vld [vmem:[%s8369_s18 + $0x1] ss:$0 sm:$0xff] }
0x15a1   :  { %6724 = vmatpush3.bf16.msra.mxu0 %v6723_v33 }
0x15a2   :  { %v2434_v23 = vsel %vm184_vm1, %v7676_v21, 0.0  ;;  %6725 = vmatprep.subr.bf16.mxu0 %v6965_v0 }
0x15a3   :  { %2435 = vadd.xlane.f32.xlu0 %v2434_v23 }
0x15a5   :  { %6727 = vmatpush3.bf16.msra.mxu0 %v6726_v38 }
0x15a6   :  { %6314 = vmatprep.subr.mxu0 %v6967_v61 }
0x1630   :  { %v2436_v24 = vpop.xlane.xlu0 %2435 }
0x1631   :  { %v2437_v14 = vmul.f32 0.03125, %v2436_v24 }
0x1633   :  { %v2438_v26 = vsub.f32 %v7676_v21, %v2437_v14 }
0x1635   :  { %v2439_v27 = vmul.f32 %v2438_v26, %v2438_v26 }
0x1637   :  { %v2440_v29 = vsel %vm184_vm1, %v2439_v27, 0.0 }
0x1638   :  { %2441 = vadd.xlane.f32.xlu1 %v2440_v29 }
0x16c5   :  { %v2442_v39 = vpop.xlane.xlu1 %2441 }
0x16c6   :  { %v2443_v40 = vmul.f32 0.03125, %v2442_v39 }
0x16c8   :  { %v2444_v42 = vadd.f32 1e-05, %v2443_v40  ;;  %v5669_v40 = vld [vmem:[%s8371_s20] ss:$0 sm:$0xff] }
0x16ca   :  { %6925 = vrsqrt.f32 %v2444_v42 }
0x16d4   :  { %v6926_v43 = vpop.eup %6925 }
0x16d5   :  { %v2446_v45 = vmul.f32 %v6926_v43, %v2438_v26 }
0x16d7   :  { %v2453_v47 = vmul.f32 %v5648_v44, %v2446_v45  ;;  %v105_v44 = vld [vmem:[%s8372_s23 + $0x8] sm:$0x1f]  ;;  %v102_v45 = vld [vmem:[%s8373_s21] sm:$0xf] }
0x16d9   :  { %v2460_v30 = vadd.f32 %v5649_v46, %v2453_v47  ;;  %v104_v46 = vld [vmem:[%s8372_s23] sm:$0x1f]  ;;  %v5676_v47 = vld [vmem:[%s8399_s2 + $0x18] sm:$0x1f] }
0x16db   :  { %6293 = vmatmul.mubr.msk.f32.vlgmr.msra.gmra.mrb[20].mxu0 %vm223_vm3, %v2460_v30 }
0x16dc   :  { %6316 = vmatprep.mubr.msk.f32.mxu0 %vm6966_vm2, %v6967_v61 }
0x17ae   :  { %v2543_v1 = vpop.f32.mrb[20].mxu0 }
0x17af   :  { %v2544_v2 = vadd.f32 %v5655_v63, %v2543_v1  ;;  %v6294_v3 = vpop.f32.mrb[21].mxu0  ;;  %v5707_v63 = vld [vmem:[%s8402_s5 + $0x38] sm:$0xff] }
0x17b0   :  { %v6810_v1 = vpack.c.bf16 %v5707_v63, %v5706_v60  ;;  %v5700_v60 = vld [vmem:[%s8404_s3 + $0x38] sm:$0xff] }
0x17b1   :  { %v2548_v5 = vmul.f32 0.044715, %v2544_v2  ;;  %v2547_v11 = vmul.f32 0.5, %v2544_v2 }
0x17b3   :  { %v2549_v41 = vmul.f32 %v2548_v5, %v2544_v2 }
0x17b5   :  { %v2550_v7 = vmul.f32 %v2549_v41, %v2544_v2 }
0x17b7   :  { %v2551_v59 = vadd.f32 %v2550_v7, %v2544_v2  ;;  %v5678_v7 = vld [vmem:[%s8407_s28] ss:$0 sm:$0xff] }
0x17b9   :  { %v2552_v8 = vmul.f32 0.7978846, %v2551_v59 }
0x17bb   :  { %6927 = vtanh.f32 %v2552_v8  ;;  %v3032_v8 = vld [vmem:[%s8404_s3] sm:$0xff] }
0x17c5   :  { %v6928_v10 = vpop.eup %6927 }
0x17c6   :  { %v2554_v12 = vadd.f32 1.0, %v6928_v10  ;;  %v3033_v10 = vld [vmem:[%s8404_s3 + $0x8] sm:$0xff] }
0x17c8   :  { %v2555_v15 = vmul.f32 %v2554_v12, %v2547_v11  ;;  %v5679_v11 = vld [vmem:[%s8405_s4] ss:$0 sm:$0xff] }
0x17ca   :  { %6312 = vmatmul.mubr.msk.f32.vlgmr.msra.gmra.mrb[34].mxu1 %vm108_vm0, %v2555_v15  ;;  %v6783_v15 = vpack.c.bf16 %v3033_v10, %v3032_v8 }
0x17cb   :  { %6327 = vmatprep.mubr.msk.f32.mxu1 %vm6966_vm2, %v6967_v61  ;;  %6778 = vmatpush3.bf16.msra.mxu1 %v6777_v52  ;;  %v5692_v52 = vld [vmem:[%s8401_s7 + $0x30] sm:$0xff] }
0x17cc   :  { %6779 = vmatprep.subr.bf16.mxu1 %v6965_v0  ;;  %v6798_v54 = vpack.c.bf16 %v5693_v53, %v5692_v52 }
0x17cf   :  { %6781 = vmatpush3.bf16.msra.mxu1 %v6780_v58  ;;  %v5699_v58 = vld [vmem:[%s8404_s3 + $0x30] sm:$0xff] }
0x17d0   :  { %6782 = vmatprep.subr.bf16.mxu1 %v6965_v0  ;;  %v6804_v63 = vpack.c.bf16 %v5700_v60, %v5699_v58  ;;  %v5721_v58 = vld [vmem:[%s8366_s14] ss:$0 sm:$0xff] }
0x189d   :  { %v2634_v17 = vpop.f32.mrb[34].mxu1 }
0x189e   :  { %v2638_v20 = vadd.f32 %v2634_v17, %v7676_v21  ;;  %v6313_v23 = vpop.f32.mrb[35].mxu1  ;;  %v5668_v21 = vld [vmem:[%s8370_s19] ss:$0 sm:$0xff] }
0x18a0   :  { %v2647_v24 = vadd.f32 %v5667_v18, %v2638_v20  ;;  %v3034_v18 = vld [vmem:[%s8404_s3 + $0x10] sm:$0xff]  ;;  %v3035_v20 = vld [vmem:[%s8404_s3 + $0x18] sm:$0xff] }
0x18a1   :  { %v6786_v23 = vpack.c.bf16 %v3035_v20, %v3034_v18 }
0x18a2   :  { %v2650_v14 = vsel %vm184_vm1, %v2647_v24, 0.0 }
0x18a3   :  { %2651 = vadd.xlane.f32.xlu0 %v2650_v14  ;;  %v3114_v14 = vld [vmem:[%s8402_s5 + $0x8] sm:$0xff] }
0x1930   :  { %v2652_v26 = vpop.xlane.xlu0 %2651 }
0x1931   :  { %v2653_v27 = vmul.f32 0.03125, %v2652_v26 }
0x1933   :  { %v2654_v29 = vsub.f32 %v2647_v24, %v2653_v27  ;;  %v3113_v24 = vld [vmem:[%s8402_s5] sm:$0xff]  ;;  %v3115_v27 = vld [vmem:[%s8402_s5 + $0x10] sm:$0xff] }
0x1934   :  { %v6789_v26 = vpack.c.bf16 %v3114_v14, %v3113_v24 }
0x1935   :  { %v2655_v32 = vmul.f32 %v2654_v29, %v2654_v29 }
0x1937   :  { %v2656_v62 = vsel %vm184_vm1, %v2655_v32, 0.0 }
0x1938   :  { %2657 = vadd.xlane.f32.xlu1 %v2656_v62 }
0x19c5   :  { %v2658_v33 = vpop.xlane.xlu1 %2657 }
0x19c6   :  { %v2659_v35 = vmul.f32 0.03125, %v2658_v33 }
0x19c8   :  { %v2660_v36 = vadd.f32 1e-05, %v2659_v35 }
0x19ca   :  { %6929 = vrsqrt.f32 %v2660_v36 }
0x19d4   :  { %v6930_v38 = vpop.eup %6929 }
0x19d5   :  { %v2662_v39 = vmul.f32 %v6930_v38, %v2654_v29  ;;  %v3116_v29 = vld [vmem:[%s8402_s5 + $0x18] sm:$0xff]  ;;  %v5682_v38 = vld [vmem:[%s8406_s27] ss:$0 sm:$0xff] }
0x19d6   :  { %v6792_v32 = vpack.c.bf16 %v3116_v29, %v3115_v27  ;;  %v5715_v29 = vld [vmem:[%s8362_s11 + $0x10] sm:$0xff] }
0x19d7   :  { %v2669_v42 = vmul.f32 %v5668_v21, %v2662_v39  ;;  %v5680_v39 = vld [vmem:[%s8360_s6] ss:$0 sm:$0xff] }
0x19d9   :  { %v2676_v43 = vadd.f32 %v5669_v40, %v2669_v42 }
0x19db   :  { %6315 = vmatpush3.xpose.msk.msra.mxu0 %vm223_vm3, %v2676_v43 }
0x19dc   :  { %5672 = vmatprep.subr.msk.mxu0 %vm552_vm5, %v105_v44  ;;  %v5684_v44 = vld [vmem:[%s8361_s10] ss:$0 sm:$0xff] }
0x19de   :  { %6317 = vmatmul.mubr.msk.f32.vlgmr.msra.gmra.mrb[22].mxu0 %vm223_vm3, %v102_v45 }
0x19df   :  { %5673 = vmatpush1.msk.msra.mxu0 %vm552_vm5, %v104_v46  ;;  %2831 = vmatprep.mubr.f32.mxu0 %v6967_v61 }
0x19e0   :  { %6740 = vmatprep.subr.bf16.mxu0 %v6965_v0 }
0x1ab1   :  { %v2749_v30 = vpop.f32.mrb[22].mxu0 }
0x1ab2   :  { %v6318_v48 = vpop.f32.mrb[23].mxu0  ;;  %5674 = vmatmul.mubr.msk.f32.vlgmr.msra.gmra.mrb[24].mxu0 %vm548_vm7, %v2749_v30 }
0x1ab3   :  { %6742 = vmatpush1.bf16.msra.mxu0 %v7105_v4  ;;  %5677 = vmatprep.mubr.msk.f32.mxu0 %vm108_vm0, %v5676_v47  ;;  %v5675_v4 = vld [vmem:[%s8399_s2 + $0x10] sm:$0x1f] }
0x1ab4   :  { %6743 = vmatprep.subr.bf16.mxu0 %v6965_v0 }
0x1ab7   :  { %6745 = vmatpush1.bf16.msra.mxu0 %v7111_v6 }
0x1ab8   :  { %6746 = vmatprep.subr.bf16.mxu0 %v6965_v0 }
0x1abb   :  { %6748 = vmatpush1.bf16.msra.mxu0 %v7121_v9 }
0x1abc   :  { %6749 = vmatprep.subr.bf16.mxu0 %v6965_v0 }
0x1abf   :  { %6751 = vmatpush1.bf16.msra.mxu0 %v7135_v13 }
0x1ac0   :  { %6752 = vmatprep.subr.bf16.mxu0 %v6965_v0 }
0x1ac3   :  { %6754 = vmatpush1.bf16.msra.mxu0 %v7145_v16  ;;  %v6961_v16 = vld [vmem:[%s8400_s26] sm:$0x1f] }
0x1ac4   :  { %6755 = vmatprep.subr.bf16.mxu0 %v6965_v0 }
0x1ac7   :  { %6757 = vmatpush1.bf16.msra.mxu0 %v7155_v19 }
0x1ac8   :  { %6758 = vmatprep.subr.bf16.mxu0 %v6965_v0 }
0x1acb   :  { %6760 = vmatpush1.bf16.msra.mxu0 %v7165_v22 }
0x1acc   :  { %6761 = vmatprep.subr.bf16.mxu0 %v6965_v0 }
0x1acf   :  { %6763 = vmatpush1.bf16.msra.mxu0 %v7175_v25 }
0x1ad0   :  { %6764 = vmatprep.subr.bf16.mxu0 %v6965_v0 }
0x1ad3   :  { %6766 = vmatpush1.bf16.msra.mxu0 %v7185_v28 }
0x1ad4   :  { %6767 = vmatprep.subr.bf16.mxu0 %v6965_v0 }
0x1ad7   :  { %6769 = vmatpush1.bf16.msra.mxu0 %v7195_v31 }
0x1ad8   :  { %6770 = vmatprep.subr.bf16.mxu0 %v6965_v0 }
0x1adb   :  { %6772 = vmatpush1.bf16.msra.mxu0 %v7205_v34 }
0x1adc   :  { %6773 = vmatprep.subr.bf16.mxu0 %v6965_v0 }
0x1adf   :  { %6775 = vmatpush1.bf16.msra.mxu0 %v7215_v37 }
0x1ae0   :  { %6806 = vmatprep.subr.bf16.mxu0 %v6965_v0 }
0x1ae2   :  { %2914 = vmatmul.mubr.f32.vlgmr.msra.gmra.mrb[26].mxu0 %v5675_v4 }
0x1ae3   :  { %6392 = vmatprep.mubr.msk.f32.mxu0 %vm6966_vm2, %v6967_v61  ;;  %6808 = vmatpush3.bf16.msra.mxu0 %v6807_v55  ;;  %v5697_v55 = vld [vmem:[%s8404_s3 + $0x20] sm:$0xff] }
0x1ae4   :  { %6809 = vmatprep.subr.bf16.mxu0 %v6965_v0  ;;  %v6801_v57 = vpack.c.bf16 %v5698_v56, %v5697_v55  ;;  %v5720_v56 = vld [vmem:[%s8365_s13] ss:$0 sm:$0xff] }
0x1ae7   :  { %6811 = vmatpush3.bf16.msra.mxu0 %v6810_v1 }
0x1ae8   :  { %6812 = vmatprep.subr.bf16.mxu0 %v6965_v0 }
0x1b85   :  { %v7800_v6 = vpop.f32.mrb[24].mxu0 }
0x1b86   :  { %v7802_v9 = vpop.f32.mrb[25].mxu0 }
0x1bb5   :  { %v2915_v13 = vpop.f32.mrb[26].mxu0 }
0x1bb6   :  { %v7807_v19 = vadd.f32 %v6961_v16, %v2915_v13  ;;  %v2917_v22 = vpop.f32.mrb[27].mxu0 }
0x1bb8   :  { %v2921_v25 = vsel %vm184_vm1, %v7807_v19, 0.0 }
0x1bb9   :  { %2922 = vadd.xlane.f32.xlu0 %v2921_v25 }
0x1c46   :  { %v2923_v28 = vpop.xlane.xlu0 %2922 }
0x1c47   :  { %v2924_v31 = vmul.f32 0.03125, %v2923_v28 }
0x1c49   :  { %v2925_v34 = vsub.f32 %v7807_v19, %v2924_v31 }
0x1c4b   :  { %v2926_v37 = vmul.f32 %v2925_v34, %v2925_v34 }
0x1c4d   :  { %v2927_v49 = vsel %vm184_vm1, %v2926_v37, 0.0  ;;  %v5691_v37 = vld [vmem:[%s8401_s7 + $0x28] sm:$0xff] }
0x1c4e   :  { %2928 = vadd.xlane.f32.xlu1 %v2927_v49 }
0x1cdb   :  { %v2929_v2 = vpop.xlane.xlu1 %2928 }
0x1cdc   :  { %v2930_v3 = vmul.f32 0.03125, %v2929_v2 }
0x1cde   :  { %v2931_v5 = vadd.f32 1e-05, %v2930_v3 }
0x1ce0   :  { %6931 = vrsqrt.f32 %v2931_v5 }
0x1cea   :  { %v6932_v41 = vpop.eup %6931 }
0x1ceb   :  { %v2933_v59 = vmul.f32 %v6932_v41, %v2925_v34  ;;  %v5690_v34 = vld [vmem:[%s8401_s7 + $0x20] sm:$0xff] }
0x1cec   :  { %v6795_v50 = vpack.c.bf16 %v5691_v37, %v5690_v34  ;;  %v5702_v41 = vld [vmem:[%s8406_s27 + $0x1] ss:$0 sm:$0xff] }
0x1ced   :  { %v2940_v12 = vmul.f32 %v5678_v7, %v2933_v59  ;;  %v5695_v59 = vld [vmem:[%s8360_s6 + $0x1] ss:$0 sm:$0xff] }
0x1cee   :  { %v3951_v34 = vld [vmem:[%s8364_s15] sm:$0xff] }
0x1cef   :  { %v7853_v17 = vadd.f32 %v5679_v11, %v2940_v12  ;;  %v5709_v11 = vld [vmem:[%s8361_s10 + $0x1] ss:$0 sm:$0xff] }
0x1cf1   :  { %6328 = vmatmul.mubr.msk.f32.vlgmr.msra.gmra.mrb[36].mxu1 %vm223_vm3, %v7853_v17  ;;  %6393 = vmatmul.mubr.msk.f32.vlgmr.msra.gmra.mrb[28].mxu0 %vm223_vm3, %v7853_v17 }
0x1cf2   :  { %6784 = vmatpush3.bf16.msra.mxu1 %v6783_v15  ;;  %6338 = vmatprep.mubr.msk.f32.mxu1 %vm6966_vm2, %v6967_v61 }
0x1cf3   :  { %6785 = vmatprep.subr.bf16.mxu1 %v6965_v0  ;;  %6409 = vmatprep.mubr.msk.f32.mxu0 %vm6966_vm2, %v6967_v61 }
0x1cf6   :  { %6787 = vmatpush3.bf16.msra.mxu1 %v6786_v23 }
0x1cf7   :  { %6788 = vmatprep.subr.bf16.mxu1 %v6965_v0 }
0x1cf9   :  { %6339 = vmatmul.mubr.msk.f32.vlgmr.msra.gmra.mrb[38].mxu1 %vm223_vm3, %v7853_v17 }
0x1cfa   :  { %6790 = vmatpush3.bf16.msra.mxu1 %v6789_v26  ;;  %6349 = vmatprep.mubr.msk.f32.mxu1 %vm6966_vm2, %v6967_v61 }
0x1cfb   :  { %6791 = vmatprep.subr.bf16.mxu1 %v6965_v0 }
0x1cfe   :  { %6793 = vmatpush3.bf16.msra.mxu1 %v6792_v32  ;;  %v5716_v32 = vld [vmem:[%s8362_s11 + $0x18] sm:$0xff] }
0x1cff   :  { %6352 = vmatprep.subr.mxu1 %v6967_v61 }
0x1d01   :  { %6350 = vmatmul.mubr.msk.f32.vlgmr.msra.gmra.mrb[40].mxu1 %vm223_vm3, %v7853_v17 }
0x1d02   :  { %6354 = vmatprep.mubr.msk.f32.mxu1 %vm6966_vm2, %v6967_v61 }
0x1dc4   :  { %v3028_v62 = vpop.f32.mrb[36].mxu1  ;;  %v7893_v33 = vpop.f32.mrb[28].mxu0 }
0x1dc5   :  { %v6329_v35 = vpop.f32.mrb[37].mxu1  ;;  %v6394_v36 = vpop.f32.mrb[29].mxu0  ;;  %v3029_v43 = vadd.f32 %v5680_v39, %v3028_v62  ;;  %v3599_v15 = vadd.f32 %v5709_v11, %v7893_v33  ;;  %v6813_v62 = vpack.c.bf16 %v5716_v32, %v5715_v29  ;;  %v4050_v11 = vld [vmem:[%s8367_s17 + $0x30] sm:$0xff] }
0x1dc6   :  { %v3357_v35 = vld [vmem:[%s8362_s11] sm:$0xff]  ;;  %v3358_v36 = vld [vmem:[%s8362_s11 + $0x8] sm:$0xff] }
0x1dc7   :  { %6814 = vmatpush3.bf16.msra.mxu0 %v6813_v62 }
0x1dc8   :  { %6818 = vmatprep.subr.bf16.mxu0 %v6965_v0 }
0x1dcc   :  { %v3109_v21 = vpop.f32.mrb[38].mxu1 }
0x1dcd   :  { %v3110_v40 = vadd.f32 %v5682_v38, %v3109_v21  ;;  %v6340_v42 = vpop.f32.mrb[39].mxu1  ;;  %v6816_v21 = vpack.c.bf16 %v3358_v36, %v3357_v35 }
0x1dcf   :  { %6353 = vmatpush3.xpose.msk.msra.mxu1 %vm459_vm4, %v3110_v40 }
0x1dd0   :  { %6357 = vmatprep.subr.mxu1 %v6967_v61 }
0x1dd2   :  { %6355 = vmatmul.mubr.msk.f32.vlgmr.msra.gmra.mrb[42].mxu1 %vm459_vm4, %v3029_v43 }
0x1dd3   :  { %6359 = vmatprep.mubr.msk.f32.mxu1 %vm6966_vm2, %v6967_v61 }
0x1dd4   :  { %v3190_v45 = vpop.f32.mrb[40].mxu1 }
0x1dd5   :  { %v3191_v46 = vadd.f32 %v5684_v44, %v3190_v45  ;;  %v6351_v47 = vpop.f32.mrb[41].mxu1 }
0x1dd7   :  { %6358 = vmatpush3.msk.msra.mxu1 %vm552_vm5, %v3191_v46 }
0x1dd8   :  { %6794 = vmatprep.subr.bf16.mxu1 %v6965_v0 }
0x1ea5   :  { %v3266_v30 = vpop.f32.mrb[42].mxu1 }
0x1ea6   :  { %v6356_v48 = vpop.f32.mrb[43].mxu1  ;;  %v3270_v4 = vsel %vm536_vm6, %v3266_v30, -inf }
0x1ea7   :  { %3271 = vmax.xlane.f32.xlu0 %v3270_v4 }
0x1f34   :  { %v3272_v13 = vpop.xlane.xlu0 %3271 }
0x1f35   :  { %v3273_v16 = vsub.f32 %v3266_v30, %v3272_v13  ;;  %v5719_v30 = vld [vmem:[%s8363_s12] ss:$0 sm:$0xff] }
0x1f37   :  { %v3274_v22 = vmul.f32 1.442695, %v3273_v16 }
0x1f39   :  { %6933 = vpow2.f32 %v3274_v22 }
0x1f43   :  { %v6934_v25 = vpop.eup %6933 }
0x1f44   :  { %v3276_v28 = vsel %vm536_vm6, %v6934_v25, 0.0 }
0x1f45   :  { %3277 = vadd.xlane.f32.xlu1 %v3276_v28 }
0x1fd2   :  { %v3278_v31 = vpop.xlane.xlu1 %3277 }
0x1fd3   :  { %6935 = vrcp.f32 %v3278_v31 }
0x1fdd   :  { %v6936_v49 = vpop.eup %6935 }
0x1fde   :  { %v3280_v51 = vmul.f32 %v6936_v49, %v6934_v25  ;;  %v3953_v49 = vld [vmem:[%s8364_s15 + $0x10] sm:$0xff] }
0x1fe0   :  { %6360 = vmatmul.mubr.msk.f32.vlgmr.msra.gmra.mrb[44].mxu1 %vm548_vm7, %v3280_v51 }
0x1fe1   :  { %6796 = vmatpush3.bf16.msra.mxu1 %v6795_v50  ;;  %6370 = vmatprep.mubr.msk.f32.mxu1 %vm6966_vm2, %v6967_v61  ;;  %v3954_v50 = vld [vmem:[%s8364_s15 + $0x18] sm:$0xff] }
0x1fe2   :  { %6797 = vmatprep.subr.bf16.mxu1 %v6965_v0  ;;  %v6822_v51 = vpack.c.bf16 %v3954_v50, %v3953_v49 }
0x1fe5   :  { %6799 = vmatpush3.bf16.msra.mxu1 %v6798_v54 }
0x1fe6   :  { %6800 = vmatprep.subr.bf16.mxu1 %v6965_v0 }
0x1fe8   :  { %6371 = vmatmul.mubr.msk.f32.vlgmr.msra.gmra.mrb[46].mxu1 %vm223_vm3, %v7853_v17 }
0x1fe9   :  { %6802 = vmatpush3.bf16.msra.mxu1 %v6801_v57  ;;  %6381 = vmatprep.mubr.msk.f32.mxu1 %vm6966_vm2, %v6967_v61 }
0x1fea   :  { %6803 = vmatprep.subr.bf16.mxu1 %v6965_v0 }
0x1fed   :  { %6805 = vmatpush3.bf16.msra.mxu1 %v6804_v63 }
0x1fee   :  { %6395 = vmatprep.subr.mxu1 %v6967_v61 }
0x1ff0   :  { %6382 = vmatmul.mubr.msk.f32.vlgmr.msra.gmra.mrb[48].mxu1 %vm223_vm3, %v7853_v17 }
0x1ff1   :  { %6397 = vmatprep.mubr.msk.f32.mxu1 %vm6966_vm2, %v6967_v61 }
0x20b3   :  { %v3353_v1 = vpop.f32.mrb[44].mxu1 }
0x20b4   :  { %v6361_v2 = vpop.f32.mrb[45].mxu1 }
0x20b5   :  { %v4045_v2 = vld [vmem:[%s8367_s17 + $0x8] sm:$0xff] }
0x20bb   :  { %v3436_v3 = vpop.f32.mrb[46].mxu1 }
0x20bc   :  { %v6372_v5 = vpop.f32.mrb[47].mxu1  ;;  %v3437_v12 = vadd.f32 %v5695_v59, %v3436_v3  ;;  %v4048_v59 = vld [vmem:[%s8367_s17 + $0x20] sm:$0xff] }
0x20bd   :  { %v4046_v5 = vld [vmem:[%s8367_s17 + $0x10] sm:$0xff] }
0x20c3   :  { %v3517_v7 = vpop.f32.mrb[48].mxu1 }
0x20c4   :  { %v3518_v8 = vadd.f32 %v5702_v41, %v3517_v7  ;;  %v6383_v10 = vpop.f32.mrb[49].mxu1  ;;  %v4047_v41 = vld [vmem:[%s8367_s17 + $0x18] sm:$0xff] }
0x20c5   :  { %v6828_v7 = vpack.c.bf16 %v4047_v41, %v4046_v5  ;;  %v5749_v5 = vld [vmem:[%s8361_s10 + $0x2] ss:$0 sm:$0xff] }
0x20c6   :  { %6396 = vmatpush3.xpose.msk.msra.mxu1 %vm459_vm4, %v3518_v8  ;;  %v4049_v8 = vld [vmem:[%s8367_s17 + $0x28] sm:$0xff] }
0x20c7   :  { %6400 = vmatprep.subr.mxu1 %v6967_v61  ;;  %v6831_v10 = vpack.c.bf16 %v4049_v8, %v4048_v59 }
0x20c9   :  { %6398 = vmatmul.mubr.msk.f32.vlgmr.msra.gmra.mrb[50].mxu1 %vm459_vm4, %v3437_v12  ;;  %v4051_v12 = vld [vmem:[%s8367_s17 + $0x38] sm:$0xff] }
0x20ca   :  { %6401 = vmatpush3.msk.msra.mxu1 %vm552_vm5, %v3599_v15  ;;  %6402 = vmatprep.mubr.msk.f32.mxu1 %vm6966_vm2, %v6967_v61  ;;  %v6834_v15 = vpack.c.bf16 %v4051_v12, %v4050_v11  ;;  %v5742_v11 = vld [vmem:[%s8406_s27 + $0x2] ss:$0 sm:$0xff] }
0x20cb   :  { %6815 = vmatprep.subr.bf16.mxu1 %v6965_v0 }
0x219c   :  { %v3674_v17 = vpop.f32.mrb[50].mxu1 }
0x219d   :  { %v6399_v18 = vpop.f32.mrb[51].mxu1  ;;  %v3678_v20 = vsel %vm536_vm6, %v3674_v17, -inf }
0x219e   :  { %3679 = vmax.xlane.f32.xlu0 %v3678_v20 }
0x222b   :  { %v3680_v23 = vpop.xlane.xlu0 %3679 }
0x222c   :  { %v3681_v24 = vsub.f32 %v3674_v17, %v3680_v23  ;;  %v5722_v17 = vld [vmem:[%s8368_s16] ss:$0 sm:$0xff] }
0x222e   :  { %v3682_v14 = vmul.f32 1.442695, %v3681_v24 }
0x2230   :  { %6937 = vpow2.f32 %v3682_v14 }
0x223a   :  { %v6938_v26 = vpop.eup %6937 }
0x223b   :  { %v3684_v27 = vsel %vm536_vm6, %v6938_v26, 0.0 }
0x223c   :  { %3685 = vadd.xlane.f32.xlu1 %v3684_v27 }
0x22c9   :  { %v3686_v33 = vpop.xlane.xlu1 %3685 }
0x22ca   :  { %6939 = vrcp.f32 %v3686_v33 }
0x22d4   :  { %v6940_v38 = vpop.eup %6939 }
0x22d5   :  { %v3688_v39 = vmul.f32 %v6940_v38, %v6938_v26  ;;  %v5725_v38 = vld [vmem:[%s8369_s18] ss:$0 sm:$0xff] }
0x22d7   :  { %6403 = vmatmul.mubr.msk.f32.vlgmr.msra.gmra.mrb[52].mxu1 %vm548_vm7, %v3688_v39 }
0x22d8   :  { %6817 = vmatpush3.bf16.msra.mxu1 %v6816_v21  ;;  %6416 = vmatprep.mubr.msk.f32.mxu1 %vm6966_vm2, %v6967_v61 }
0x22d9   :  { %6824 = vmatprep.subr.bf16.mxu1 %v6965_v0 }
0x22db   :  { %6417 = vmatmul.mubr.msk.f32.vlgmr.msra.gmra.mrb[54].mxu1 %vm459_vm4, %v3353_v1  ;;  %v4044_v1 = vld [vmem:[%s8367_s17] sm:$0xff] }
0x22dc   :  { %6446 = vmatprep.mubr.msk.f32.mxu1 %vm6966_vm2, %v6967_v61  ;;  %v6825_v3 = vpack.c.bf16 %v4045_v2, %v4044_v1  ;;  %v5739_v1 = vld [vmem:[%s8404_s3 + $0x50] sm:$0xff]  ;;  %v5740_v2 = vld [vmem:[%s8404_s3 + $0x58] sm:$0xff] }
0x22de   :  { %6826 = vmatpush3.bf16.msra.mxu1 %v6825_v3  ;;  %v6846_v3 = vpack.c.bf16 %v5740_v2, %v5739_v1 }
0x22df   :  { %6827 = vmatprep.subr.bf16.mxu1 %v6965_v0 }
0x22e2   :  { %6829 = vmatpush3.bf16.msra.mxu1 %v6828_v7 }
0x22e3   :  { %6830 = vmatprep.subr.bf16.mxu1 %v6965_v0 }
0x22e6   :  { %6832 = vmatpush3.bf16.msra.mxu1 %v6831_v10 }
0x22e7   :  { %6833 = vmatprep.subr.bf16.mxu1 %v6965_v0 }
0x22ea   :  { %6835 = vmatpush3.bf16.msra.mxu1 %v6834_v15  ;;  %v5757_v15 = vld [vmem:[%s8401_s7 + $0x60] sm:$0xff] }
0x22eb   :  { %6848 = vmatprep.subr.bf16.mxu1 %v6965_v0 }
0x23aa   :  { %v3761_v40 = vpop.f32.mrb[52].mxu1 }
0x23ab   :  { %v6404_v42 = vpop.f32.mrb[53].mxu1  ;;  %6410 = vmatmul.mubr.msk.f32.vlgmr.msra.gmra.mrb[30].mxu0 %vm459_vm4, %v3761_v40 }
0x23ac   :  { %6427 = vmatprep.mubr.msk.f32.mxu0 %vm6966_vm2, %v6967_v61 }
0x23ae   :  { %v3909_v43 = vpop.f32.mrb[54].mxu1 }
0x23af   :  { %v6418_v44 = vpop.f32.mrb[55].mxu1 }
0x247e   :  { %v3836_v45 = vpop.f32.mrb[30].mxu0 }
0x247f   :  { %v3910_v46 = vadd.f32 %v3909_v43, %v3836_v45  ;;  %v6411_v47 = vpop.f32.mrb[31].mxu0 }
0x2481   :  { %v3913_v48 = vadd.f32 %v3910_v46, %v7807_v19  ;;  %v3952_v19 = vld [vmem:[%s8364_s15 + $0x8] sm:$0xff] }
0x2482   :  { %v6819_v37 = vpack.c.bf16 %v3952_v19, %v3951_v34  ;;  %v5746_v34 = vld [vmem:[%s8402_s5 + $0x50] sm:$0xff]  ;;  %v5747_v19 = vld [vmem:[%s8402_s5 + $0x58] sm:$0xff] }
0x2483   :  { %v7998_v4 = vadd.f32 %v5719_v30, %v3913_v48  ;;  %v5730_v30 = vld [vmem:[%s8401_s7 + $0x40] sm:$0xff]  ;;  %v5731_v48 = vld [vmem:[%s8401_s7 + $0x48] sm:$0xff] }
0x2484   :  { %6820 = vmatpush3.bf16.msra.mxu0 %v6819_v37  ;;  %v6852_v37 = vpack.c.bf16 %v5747_v19, %v5746_v34  ;;  %v5766_v19 = vld [vmem:[%s8404_s3 + $0x70] sm:$0xff] }
0x2485   :  { %v3924_v13 = vsel %vm184_vm1, %v7998_v4, 0.0  ;;  %6821 = vmatprep.subr.bf16.mxu0 %v6965_v0 }
0x2486   :  { %3925 = vadd.xlane.f32.xlu0 %v3924_v13  ;;  %v5744_v13 = vld [vmem:[%s8402_s5 + $0x40] sm:$0xff] }
0x2488   :  { %6823 = vmatpush3.bf16.msra.mxu0 %v6822_v51 }
0x2489   :  { %6836 = vmatprep.subr.bf16.mxu0 %v6965_v0 }
0x2513   :  { %v3926_v16 = vpop.xlane.xlu0 %3925 }
0x2514   :  { %v3927_v22 = vmul.f32 0.03125, %v3926_v16  ;;  %v5745_v16 = vld [vmem:[%s8402_s5 + $0x48] sm:$0xff] }
0x2516   :  { %v3928_v25 = vsub.f32 %v7998_v4, %v3927_v22  ;;  %v6849_v22 = vpack.c.bf16 %v5745_v16, %v5744_v13 }
0x2518   :  { %v3929_v28 = vmul.f32 %v3928_v25, %v3928_v25 }
0x251a   :  { %v3930_v31 = vsel %vm184_vm1, %v3929_v28, 0.0  ;;  %v5733_v28 = vld [vmem:[%s8401_s7 + $0x58] sm:$0xff] }
0x251b   :  { %3931 = vadd.xlane.f32.xlu1 %v3930_v31 }
0x25a8   :  { %v3932_v52 = vpop.xlane.xlu1 %3931 }
0x25a9   :  { %v3933_v53 = vmul.f32 0.03125, %v3932_v52 }
0x25ab   :  { %v3934_v54 = vadd.f32 1e-05, %v3933_v53  ;;  %v5728_v53 = vld [vmem:[%s8407_s28 + $0x1] ss:$0 sm:$0xff] }
0x25ad   :  { %6941 = vrsqrt.f32 %v3934_v54 }
0x25b7   :  { %v6942_v55 = vpop.eup %6941 }
0x25b8   :  { %v3936_v57 = vmul.f32 %v6942_v55, %v3928_v25  ;;  %v5732_v25 = vld [vmem:[%s8401_s7 + $0x50] sm:$0xff]  ;;  %v5737_v55 = vld [vmem:[%s8404_s3 + $0x40] sm:$0xff] }
0x25b9   :  { %v6840_v31 = vpack.c.bf16 %v5733_v28, %v5732_v25  ;;  %v5765_v25 = vld [vmem:[%s8404_s3 + $0x68] sm:$0xff] }
0x25ba   :  { %v3943_v60 = vmul.f32 %v5720_v56, %v3936_v57  ;;  %v5738_v56 = vld [vmem:[%s8404_s3 + $0x48] sm:$0xff]  ;;  %v5729_v57 = vld [vmem:[%s8405_s4 + $0x1] ss:$0 sm:$0xff] }
0x25bc   :  { %v3950_v63 = vadd.f32 %v5721_v58, %v3943_v60  ;;  %v6843_v60 = vpack.c.bf16 %v5738_v56, %v5737_v55 }
0x25be   :  { %6428 = vmatmul.mubr.msk.f32.vlgmr.msra.gmra.mrb[32].mxu0 %vm223_vm3, %v3950_v63 }
0x25bf   :  { %6457 = vmatprep.mubr.msk.f32.mxu0 %vm6966_vm2, %v6967_v61 }
0x2691   :  { %v4031_v18 = vpop.f32.mrb[32].mxu0 }
0x2692   :  { %v4032_v20 = vadd.f32 %v5722_v17, %v4031_v18  ;;  %v6429_v23 = vpop.f32.mrb[33].mxu0  ;;  %v5758_v17 = vld [vmem:[%s8401_s7 + $0x68] sm:$0xff]  ;;  %v5735_v18 = vld [vmem:[%s8360_s6 + $0x2] ss:$0 sm:$0xff] }
0x2694   :  { %v4036_v24 = vmul.f32 0.044715, %v4032_v20  ;;  %v4035_v62 = vmul.f32 0.5, %v4032_v20 }
0x2696   :  { %v4037_v14 = vmul.f32 %v4036_v24, %v4032_v20  ;;  %v6855_v24 = vpack.c.bf16 %v5758_v17, %v5757_v15  ;;  %v5755_v15 = vld [vmem:[%s8362_s11 + $0x20] sm:$0xff]  ;;  %v5756_v17 = vld [vmem:[%s8362_s11 + $0x28] sm:$0xff] }
0x2698   :  { %v4038_v26 = vmul.f32 %v4037_v14, %v4032_v20 }
0x269a   :  { %v4039_v27 = vadd.f32 %v4038_v26, %v4032_v20  ;;  %v5759_v26 = vld [vmem:[%s8401_s7 + $0x70] sm:$0xff] }
0x269c   :  { %v4040_v29 = vmul.f32 0.7978846, %v4039_v27  ;;  %v5760_v27 = vld [vmem:[%s8401_s7 + $0x78] sm:$0xff] }
0x269e   :  { %6943 = vtanh.f32 %v4040_v29  ;;  %v6858_v29 = vpack.c.bf16 %v5760_v27, %v5759_v26 }
0x26a8   :  { %v6944_v32 = vpop.eup %6943 }
0x26a9   :  { %v4042_v33 = vadd.f32 1.0, %v6944_v32  ;;  %v5771_v32 = vld [vmem:[%s8402_s5 + $0x60] sm:$0xff] }
0x26ab   :  { %v4043_v35 = vmul.f32 %v4042_v33, %v4035_v62  ;;  %v5772_v62 = vld [vmem:[%s8402_s5 + $0x68] sm:$0xff] }
0x26ac   :  { %v6867_v33 = vpack.c.bf16 %v5772_v62, %v5771_v32 }
0x26ad   :  { %6447 = vmatmul.mubr.msk.f32.vlgmr.msra.gmra.mrb[56].mxu1 %vm108_vm0, %v4043_v35  ;;  %v5773_v35 = vld [vmem:[%s8402_s5 + $0x70] sm:$0xff] }
0x26ae   :  { %6479 = vmatprep.mubr.msk.f32.mxu1 %vm6966_vm2, %v6967_v61  ;;  %6850 = vmatpush3.bf16.msra.mxu1 %v6849_v22  ;;  %v5764_v22 = vld [vmem:[%s8404_s3 + $0x60] sm:$0xff] }
0x26af   :  { %6851 = vmatprep.subr.bf16.mxu1 %v6965_v0 }
0x26b2   :  { %6853 = vmatpush3.bf16.msra.mxu1 %v6852_v37  ;;  %v5767_v37 = vld [vmem:[%s8404_s3 + $0x78] sm:$0xff] }
0x26b3   :  { %6487 = vmatprep.subr.mxu1 %v6967_v61 }
0x2780   :  { %v4121_v36 = vpop.f32.mrb[56].mxu1 }
0x2781   :  { %v4125_v21 = vadd.f32 %v4121_v36, %v7998_v4  ;;  %v6448_v39 = vpop.f32.mrb[57].mxu1  ;;  %v6837_v4 = vpack.c.bf16 %v5731_v48, %v5730_v30  ;;  %v5774_v36 = vld [vmem:[%s8402_s5 + $0x78] sm:$0xff] }
0x2783   :  { %v8065_v40 = vadd.f32 %v5725_v38, %v4125_v21  ;;  %6838 = vmatpush3.bf16.msra.mxu0 %v6837_v4  ;;  %v6870_v38 = vpack.c.bf16 %v5774_v36, %v5773_v35 }
0x2784   :  { %6839 = vmatprep.subr.bf16.mxu0 %v6965_v0 }
0x2785   :  { %v4136_v42 = vsel %vm184_vm1, %v8065_v40, 0.0 }
0x2786   :  { %4137 = vadd.xlane.f32.xlu0 %v4136_v42 }
0x2787   :  { %6841 = vmatpush3.bf16.msra.mxu0 %v6840_v31  ;;  %v6861_v31 = vpack.c.bf16 %v5765_v25, %v5764_v22  ;;  %v5790_v25 = vld [vmem:[%s8365_s13 + $0x1] ss:$0 sm:$0xff] }
0x2788   :  { %6842 = vmatprep.subr.bf16.mxu0 %v6965_v0 }
0x2813   :  { %v4138_v43 = vpop.xlane.xlu0 %4137 }
0x2814   :  { %v4139_v44 = vmul.f32 0.03125, %v4138_v43 }
0x2816   :  { %v4140_v45 = vsub.f32 %v8065_v40, %v4139_v44 }
0x2818   :  { %v4141_v46 = vmul.f32 %v4140_v45, %v4140_v45 }
0x281a   :  { %v4142_v47 = vsel %vm184_vm1, %v4141_v46, 0.0 }
0x281b   :  { %4143 = vadd.xlane.f32.xlu1 %v4142_v47 }
0x28a8   :  { %v4144_v49 = vpop.xlane.xlu1 %4143 }
0x28a9   :  { %v4145_v50 = vmul.f32 0.03125, %v4144_v49  ;;  %v6864_v49 = vpack.c.bf16 %v5767_v37, %v5766_v19  ;;  %v5799_v37 = vld [vmem:[%s8367_s17 + $0x40] sm:$0xff] }
0x28ab   :  { %v4146_v51 = vadd.f32 1e-05, %v4145_v50 }
0x28ad   :  { %6945 = vrsqrt.f32 %v4146_v51 }
0x28b7   :  { %v6946_v52 = vpop.eup %6945 }
0x28b8   :  { %v4148_v54 = vmul.f32 %v6946_v52, %v4140_v45  ;;  %v5769_v52 = vld [vmem:[%s8406_s27 + $0x3] ss:$0 sm:$0xff] }
0x28ba   :  { %v4155_v58 = vmul.f32 %v5728_v53, %v4148_v54  ;;  %v5762_v54 = vld [vmem:[%s8360_s6 + $0x3] ss:$0 sm:$0xff] }
0x28bc   :  { %v8111_v63 = vadd.f32 %v5729_v57, %v4155_v58  ;;  %v5776_v57 = vld [vmem:[%s8361_s10 + $0x3] ss:$0 sm:$0xff] }
0x28be   :  { %6458 = vmatmul.mubr.msk.f32.vlgmr.msra.gmra.mrb[34].mxu0 %vm223_vm3, %v8111_v63  ;;  %6480 = vmatmul.mubr.msk.f32.vlgmr.msra.gmra.mrb[58].mxu1 %vm223_vm3, %v8111_v63 }
0x28bf   :  { %6844 = vmatpush3.bf16.msra.mxu0 %v6843_v60  ;;  %6468 = vmatprep.mubr.msk.f32.mxu0 %vm6966_vm2, %v6967_v61 }
0x28c0   :  { %6845 = vmatprep.subr.bf16.mxu0 %v6965_v0  ;;  %6489 = vmatprep.mubr.msk.f32.mxu1 %vm6966_vm2, %v6967_v61 }
0x28c3   :  { %6847 = vmatpush3.bf16.msra.mxu0 %v6846_v3 }
0x28c4   :  { %6482 = vmatprep.subr.mxu0 %v6967_v61 }
0x28c6   :  { %6469 = vmatmul.mubr.msk.f32.vlgmr.msra.gmra.mrb[36].mxu0 %vm223_vm3, %v8111_v63 }
0x28c7   :  { %6484 = vmatprep.mubr.msk.f32.mxu0 %vm6966_vm2, %v6967_v61 }
0x2991   :  { %v4243_v41 = vpop.f32.mrb[34].mxu0  ;;  %v4405_v7 = vpop.f32.mrb[58].mxu1 }
0x2992   :  { %v4406_v59 = vadd.f32 %v5749_v5, %v4405_v7  ;;  %v6459_v8 = vpop.f32.mrb[35].mxu0  ;;  %v6481_v10 = vpop.f32.mrb[59].mxu1  ;;  %v4244_v14 = vadd.f32 %v5735_v18, %v4243_v41 }
0x2993   :  { %v5782_v8 = vld [vmem:[%s8362_s11 + $0x30] sm:$0xff]  ;;  %v5783_v10 = vld [vmem:[%s8362_s11 + $0x38] sm:$0xff] }
0x2994   :  { %6488 = vmatpush3.msk.msra.mxu1 %vm552_vm5, %v4406_v59 }
0x2995   :  { %6860 = vmatprep.subr.bf16.mxu1 %v6965_v0 }
0x2999   :  { %v4324_v12 = vpop.f32.mrb[36].mxu0 }
0x299a   :  { %v4325_v20 = vadd.f32 %v5742_v11, %v4324_v12  ;;  %v6470_v23 = vpop.f32.mrb[37].mxu0  ;;  %v6873_v11 = vpack.c.bf16 %v5783_v10, %v5782_v8 }
0x299c   :  { %6483 = vmatpush3.xpose.msk.msra.mxu0 %vm459_vm4, %v4325_v20  ;;  %v6876_v20 = vpack.c.bf16 %v5756_v17, %v5755_v15 }
0x299d   :  { %6854 = vmatprep.subr.bf16.mxu0 %v6965_v0 }
0x299f   :  { %6485 = vmatmul.mubr.msk.f32.vlgmr.msra.gmra.mrb[38].mxu0 %vm459_vm4, %v4244_v14 }
0x29a0   :  { %6856 = vmatpush3.bf16.msra.mxu0 %v6855_v24  ;;  %6500 = vmatprep.mubr.msk.f32.mxu0 %vm6966_vm2, %v6967_v61 }
0x29a1   :  { %6857 = vmatprep.subr.bf16.mxu0 %v6965_v0 }
0x29a4   :  { %6859 = vmatpush3.bf16.msra.mxu0 %v6858_v29 }
0x29a5   :  { %6866 = vmatprep.subr.bf16.mxu0 %v6965_v0 }
0x29a7   :  { %6501 = vmatmul.mubr.msk.f32.vlgmr.msra.gmra.mrb[40].mxu0 %vm223_vm3, %v8111_v63 }
0x29a8   :  { %6868 = vmatpush3.bf16.msra.mxu0 %v6867_v33  ;;  %6522 = vmatprep.mubr.msk.f32.mxu0 %vm6966_vm2, %v6967_v61  ;;  %v5787_v33 = vld [vmem:[%s8363_s12 + $0x1] ss:$0 sm:$0xff] }
0x29a9   :  { %6869 = vmatprep.subr.bf16.mxu0 %v6965_v0 }
0x29ac   :  { %6871 = vmatpush3.bf16.msra.mxu0 %v6870_v38 }
0x29ad   :  { %6872 = vmatprep.subr.bf16.mxu0 %v6965_v0 }
0x29af   :  { %6523 = vmatmul.mubr.msk.f32.vlgmr.msra.gmra.mrb[42].mxu0 %vm223_vm3, %v8111_v63 }
0x29b0   :  { %6539 = vmatprep.mubr.msk.f32.mxu0 %vm6966_vm2, %v6967_v61  ;;  %6874 = vmatpush3.bf16.msra.mxu0 %v6873_v11 }
0x29b1   :  { %6878 = vmatprep.subr.bf16.mxu0 %v6965_v0 }
0x2a72   :  { %v4481_v21 = vpop.f32.mrb[38].mxu0 }
0x2a73   :  { %v6486_v39 = vpop.f32.mrb[39].mxu0  ;;  %v4485_v42 = vsel %vm536_vm6, %v4481_v21, -inf }
0x2a74   :  { %4486 = vmax.xlane.f32.xlu0 %v4485_v42 }
0x2a7a   :  { %v4651_v43 = vpop.f32.mrb[40].mxu0 }
0x2a7b   :  { %v6502_v44 = vpop.f32.mrb[41].mxu0  ;;  %v4652_v58 = vadd.f32 %v5762_v54, %v4651_v43  ;;  %v5803_v54 = vld [vmem:[%s8367_s17 + $0x60] sm:$0xff] }
0x2a82   :  { %v4813_v45 = vpop.f32.mrb[42].mxu0 }
0x2a83   :  { %v6524_v46 = vpop.f32.mrb[43].mxu0  ;;  %v4814_v60 = vadd.f32 %v5776_v57, %v4813_v45  ;;  %v5792_v45 = vld [vmem:[%s8364_s15 + $0x20] sm:$0xff]  ;;  %v5805_v57 = vld [vmem:[%s8367_s17 + $0x70] sm:$0xff] }
0x2b01   :  { %v4487_v47 = vpop.xlane.xlu0 %4486 }
0x2b02   :  { %v4488_v30 = vsub.f32 %v4481_v21, %v4487_v47  ;;  %v5794_v47 = vld [vmem:[%s8364_s15 + $0x30] sm:$0xff] }
0x2b04   :  { %v4489_v48 = vmul.f32 1.442695, %v4488_v30  ;;  %v5795_v30 = vld [vmem:[%s8364_s15 + $0x38] sm:$0xff] }
0x2b06   :  { %6947 = vpow2.f32 %v4489_v48  ;;  %v6882_v48 = vpack.c.bf16 %v5795_v30, %v5794_v47  ;;  %v6962_v47 = vld [vmem:[%s8372_s23 + $0x8] sm:$0x1f]  ;;  %v6963_v30 = vld [vmem:[%s8373_s21] sm:$0xf] }
0x2b10   :  { %v6948_v4 = vpop.eup %6947 }
0x2b11   :  { %v4491_v13 = vsel %vm536_vm6, %v6948_v4, 0.0 }
0x2b12   :  { %4492 = vadd.xlane.f32.xlu1 %v4491_v13 }
0x2b9f   :  { %v4493_v16 = vpop.xlane.xlu1 %4492 }
0x2ba0   :  { %6949 = vrcp.f32 %v4493_v16 }
0x2baa   :  { %v6950_v28 = vpop.eup %6949 }
0x2bab   :  { %v4495_v34 = vmul.f32 %v6950_v28, %v6948_v4 }
0x2bad   :  { %6490 = vmatmul.mubr.msk.f32.vlgmr.msra.gmra.mrb[60].mxu1 %vm548_vm7, %v4495_v34 }
0x2bae   :  { %6862 = vmatpush3.bf16.msra.mxu1 %v6861_v31  ;;  %6511 = vmatprep.mubr.msk.f32.mxu1 %vm6966_vm2, %v6967_v61  ;;  %v5791_v31 = vld [vmem:[%s8366_s14 + $0x1] ss:$0 sm:$0xff] }
0x2baf   :  { %6863 = vmatprep.subr.bf16.mxu1 %v6965_v0 }
0x2bb2   :  { %6865 = vmatpush3.bf16.msra.mxu1 %v6864_v49  ;;  %v5800_v49 = vld [vmem:[%s8367_s17 + $0x48] sm:$0xff] }
0x2bb3   :  { %6525 = vmatprep.subr.mxu1 %v6967_v61 }
0x2bb5   :  { %6512 = vmatmul.mubr.msk.f32.vlgmr.msra.gmra.mrb[62].mxu1 %vm223_vm3, %v8111_v63 }
0x2bb6   :  { %6527 = vmatprep.mubr.msk.f32.mxu1 %vm6966_vm2, %v6967_v61 }
0x2c80   :  { %v4568_v50 = vpop.f32.mrb[60].mxu1 }
0x2c81   :  { %v6491_v51 = vpop.f32.mrb[61].mxu1 }
0x2c82   :  { %v5801_v51 = vld [vmem:[%s8367_s17 + $0x50] sm:$0xff] }
0x2c88   :  { %v4732_v53 = vpop.f32.mrb[62].mxu1 }
0x2c89   :  { %v4733_v55 = vadd.f32 %v5769_v52, %v4732_v53  ;;  %v6513_v56 = vpop.f32.mrb[63].mxu1  ;;  %v5802_v52 = vld [vmem:[%s8367_s17 + $0x58] sm:$0xff] }
0x2c8a   :  { %v6888_v53 = vpack.c.bf16 %v5802_v52, %v5801_v51 }
0x2c8b   :  { %6526 = vmatpush3.xpose.msk.msra.mxu1 %vm459_vm4, %v4733_v55  ;;  %v5804_v55 = vld [vmem:[%s8367_s17 + $0x68] sm:$0xff] }
0x2c8c   :  { %6530 = vmatprep.subr.mxu1 %v6967_v61  ;;  %v6891_v56 = vpack.c.bf16 %v5804_v55, %v5803_v54 }
0x2c8e   :  { %6528 = vmatmul.mubr.msk.f32.vlgmr.msra.gmra.mrb[64].mxu1 %vm459_vm4, %v4652_v58  ;;  %v5806_v58 = vld [vmem:[%s8367_s17 + $0x78] sm:$0xff] }
0x2c8f   :  { %6531 = vmatpush3.msk.msra.mxu1 %vm552_vm5, %v4814_v60  ;;  %6532 = vmatprep.mubr.msk.f32.mxu1 %vm6966_vm2, %v6967_v61  ;;  %v6894_v60 = vpack.c.bf16 %v5806_v58, %v5805_v57 }
0x2c90   :  { %6875 = vmatprep.subr.bf16.mxu1 %v6965_v0 }
0x2d61   :  { %v4889_v63 = vpop.f32.mrb[64].mxu1 }
0x2d62   :  { %v6529_v1 = vpop.f32.mrb[65].mxu1  ;;  %v4893_v2 = vsel %vm536_vm6, %v4889_v63, -inf }
0x2d63   :  { %4894 = vmax.xlane.f32.xlu0 %v4893_v2 }
0x2df0   :  { %v4895_v3 = vpop.xlane.xlu0 %4894 }
0x2df1   :  { %v4896_v5 = vsub.f32 %v4889_v63, %v4895_v3  ;;  %v5797_v63 = vld [vmem:[%s8368_s16 + $0x1] ss:$0 sm:$0xff] }
0x2df3   :  { %v4897_v41 = vmul.f32 1.442695, %v4896_v5 }
0x2df5   :  { %6951 = vpow2.f32 %v4897_v41 }
0x2dff   :  { %v6952_v7 = vpop.eup %6951 }
0x2e00   :  { %v4899_v59 = vsel %vm536_vm6, %v6952_v7, 0.0 }
0x2e01   :  { %4900 = vadd.xlane.f32.xlu1 %v4899_v59 }
0x2e8e   :  { %v4901_v12 = vpop.xlane.xlu1 %4900 }
0x2e8f   :  { %6953 = vrcp.f32 %v4901_v12 }
0x2e99   :  { %v6954_v18 = vpop.eup %6953 }
0x2e9a   :  { %v4903_v23 = vmul.f32 %v6954_v18, %v6952_v7  ;;  %v5809_v18 = vld [vmem:[%s8369_s18 + $0x1] ss:$0 sm:$0xff] }
0x2e9c   :  { %6533 = vmatmul.mubr.msk.f32.vlgmr.msra.gmra.mrb[66].mxu1 %vm548_vm7, %v4903_v23 }
0x2e9d   :  { %6877 = vmatpush3.bf16.msra.mxu1 %v6876_v20  ;;  %6546 = vmatprep.mubr.msk.f32.mxu1 %vm6966_vm2, %v6967_v61 }
0x2e9e   :  { %6884 = vmatprep.subr.bf16.mxu1 %v6965_v0 }
0x2ea0   :  { %6547 = vmatmul.mubr.msk.f32.vlgmr.msra.gmra.mrb[68].mxu1 %vm459_vm4, %v4568_v50  ;;  %v6885_v50 = vpack.c.bf16 %v5800_v49, %v5799_v37 }
0x2ea1   :  { %6576 = vmatprep.mubr.msk.f32.mxu1 %vm6966_vm2, %v6967_v61 }
0x2ea2   :  { %6886 = vmatpush3.bf16.msra.mxu1 %v6885_v50 }
0x2ea3   :  { %6887 = vmatprep.subr.bf16.mxu1 %v6965_v0 }
0x2ea6   :  { %6889 = vmatpush3.bf16.msra.mxu1 %v6888_v53 }
0x2ea7   :  { %6890 = vmatprep.subr.bf16.mxu1 %v6965_v0 }
0x2eaa   :  { %6892 = vmatpush3.bf16.msra.mxu1 %v6891_v56 }
0x2eab   :  { %6893 = vmatprep.subr.bf16.mxu1 %v6965_v0 }
0x2eae   :  { %6895 = vmatpush3.bf16.msra.mxu1 %v6894_v60 }
0x2f6f   :  { %v4976_v24 = vpop.f32.mrb[66].mxu1 }
0x2f70   :  { %v6534_v14 = vpop.f32.mrb[67].mxu1  ;;  %6540 = vmatmul.mubr.msk.f32.vlgmr.msra.gmra.mrb[44].mxu0 %vm459_vm4, %v4976_v24 }
0x2f71   :  { %6557 = vmatprep.mubr.msk.f32.mxu0 %vm6966_vm2, %v6967_v61 }
0x2f73   :  { %v5124_v26 = vpop.f32.mrb[68].mxu1 }
0x2f74   :  { %v6548_v27 = vpop.f32.mrb[69].mxu1 }
0x3043   :  { %v5051_v29 = vpop.f32.mrb[44].mxu0 }
0x3044   :  { %v5125_v32 = vadd.f32 %v5124_v26, %v5051_v29  ;;  %v6541_v62 = vpop.f32.mrb[45].mxu0  ;;  %v103_v26 = vld [vmem:[%s8408_s9] sm:$0xf] }
0x3046   :  { %v5128_v35 = vadd.f32 %v5125_v32, %v8065_v40  ;;  %v5793_v40 = vld [vmem:[%s8364_s15 + $0x28] sm:$0xff] }
0x3047   :  { %v6879_v46 = vpack.c.bf16 %v5793_v40, %v5792_v45  ;;  %v5810_v45 = vld [vmem:[%s8370_s19] ss:$0 sm:$0xff] }
0x3048   :  { %v8253_v36 = vadd.f32 %v5787_v33, %v5128_v35 }
0x3049   :  { %6880 = vmatpush3.bf16.msra.mxu0 %v6879_v46 }
0x304a   :  { %v5139_v38 = vsel %vm184_vm1, %v8253_v36, 0.0  ;;  %6881 = vmatprep.subr.bf16.mxu0 %v6965_v0  ;;  %v6968_v0 = vmov 0  }
0x304b   :  { %5140 = vadd.xlane.f32.xlu0 %v5139_v38 }
0x304c   :  { %6900 = vset.pattern.permute.xlu0 %v6968_v0 }
0x304d   :  { %6883 = vmatpush3.bf16.msra.mxu0 %v6882_v48  ;;  %v6964_v48 = vld [vmem:[%s8372_s23] sm:$0x1f] }
0x304e   :  { %6579 = vmatprep.subr.mxu0 %v6967_v61 }
0x30d8   :  { %v5141_v21 = vpop.xlane.xlu0 %5140 }
0x30d9   :  { %v5142_v39 = vmul.f32 0.03125, %v5141_v21 }
0x30db   :  { %v5143_v42 = vsub.f32 %v8253_v36, %v5142_v39 }
0x30dd   :  { %v5144_v43 = vmul.f32 %v5143_v42, %v5143_v42 }
0x30df   :  { %v5145_v44 = vsel %vm184_vm1, %v5144_v43, 0.0 }
0x30e0   :  { %5146 = vadd.xlane.f32.xlu1 %v5145_v44 }
0x316d   :  { %v5147_v4 = vpop.xlane.xlu1 %5146 }
0x316e   :  { %v5148_v13 = vmul.f32 0.03125, %v5147_v4 }
0x3170   :  { %v5149_v16 = vadd.f32 1e-05, %v5148_v13 }
0x3172   :  { %6955 = vrsqrt.f32 %v5149_v16 }
0x317c   :  { %v6956_v22 = vpop.eup %6955 }
0x317d   :  { %v5151_v28 = vmul.f32 %v6956_v22, %v5143_v42 }
0x317f   :  { %v5158_v34 = vmul.f32 %v5790_v25, %v5151_v28 }
0x3181   :  { %v5165_v19 = vadd.f32 %v5791_v31, %v5158_v34 }
0x3183   :  { %6558 = vmatmul.mubr.msk.f32.vlgmr.msra.gmra.mrb[46].mxu0 %vm223_vm3, %v5165_v19 }
0x3184   :  { %6581 = vmatprep.mubr.msk.f32.mxu0 %vm6966_vm2, %v6967_v61 }
0x3256   :  { %v5246_v1 = vpop.f32.mrb[46].mxu0 }
0x3257   :  { %v5247_v2 = vadd.f32 %v5797_v63, %v5246_v1  ;;  %v6559_v3 = vpop.f32.mrb[47].mxu0 }
0x3259   :  { %v5251_v5 = vmul.f32 0.044715, %v5247_v2  ;;  %v5250_v11 = vmul.f32 0.5, %v5247_v2 }
0x325b   :  { %v5252_v41 = vmul.f32 %v5251_v5, %v5247_v2 }
0x325d   :  { %v5253_v7 = vmul.f32 %v5252_v41, %v5247_v2 }
0x325f   :  { %v5254_v59 = vadd.f32 %v5253_v7, %v5247_v2 }
0x3261   :  { %v5255_v8 = vmul.f32 0.7978846, %v5254_v59 }
0x3263   :  { %6957 = vtanh.f32 %v5255_v8 }
0x326d   :  { %v6958_v10 = vpop.eup %6957 }
0x326e   :  { %v5257_v12 = vadd.f32 1.0, %v6958_v10 }
0x3270   :  { %v5258_v15 = vmul.f32 %v5257_v12, %v5250_v11 }
0x3272   :  { %6577 = vmatmul.mubr.msk.f32.vlgmr.msra.gmra.mrb[70].mxu1 %vm108_vm0, %v5258_v15 }
0x3345   :  { %v5336_v17 = vpop.f32.mrb[70].mxu1 }
0x3346   :  { %v5340_v20 = vadd.f32 %v5336_v17, %v8253_v36  ;;  %v6578_v23 = vpop.f32.mrb[71].mxu1 }
0x3348   :  { %v5348_v24 = vadd.f32 %v5809_v18, %v5340_v20 }
0x334a   :  { %v5351_v14 = vsel %vm184_vm1, %v5348_v24, 0.0 }
0x334b   :  { %5352 = vadd.xlane.f32.xlu0 %v5351_v14 }
0x3361   :  { %2755 = vperm.xlu0 %6900, %v103_v26  }
0x33d8   :  { %v5353_v27 = vpop.xlane.xlu0 %5352 }
0x33d9   :  { %v5354_v29 = vmul.f32 0.03125, %v5353_v27 }
0x33db   :  { %v5355_v32 = vsub.f32 %v5348_v24, %v5354_v29 }
0x33dd   :  { %v5356_v62 = vmul.f32 %v5355_v32, %v5355_v32 }
0x33df   :  { %v5357_v33 = vsel %vm184_vm1, %v5356_v62, 0.0 }
0x33e0   :  { %5358 = vadd.xlane.f32.xlu1 %v5357_v33  ;;  %v2756_v35 = vpop.permute.xlu0 %2755 }
0x33e1   :  { %v2834_v36 = vadd.f32 %v7800_v6, %v2756_v35  ;;  %v2836_v38 = vadd.f32 %v7802_v9, %v2756_v35  ;;  %v5811_v6 = vld [vmem:[%s8371_s20] ss:$0 sm:$0xff] }
0x33e3   :  { %v2840_v21 = vcombine.low %v2834_v36, %v2836_v38 }
0x33e5   :  { %2842 = vst [vmem:[%s8409_s22] sm:$0xff] %v2840_v21 }
0x346d   :  { %v5359_v39 = vpop.xlane.xlu1 %5358 }
0x346e   :  { %v5360_v42 = vmul.f32 0.03125, %v5359_v39 }
0x3470   :  { %v5361_v43 = vadd.f32 1e-05, %v5360_v42 }
0x3472   :  { %6959 = vrsqrt.f32 %v5361_v43 }
0x347c   :  { %v6960_v44 = vpop.eup %6959 }
0x347d   :  { %v5363_v40 = vmul.f32 %v6960_v44, %v5355_v32 }
0x347f   :  { %v5370_v9 = vmul.f32 %v5810_v45, %v5363_v40 }
0x3481   :  { %v5377_v46 = vadd.f32 %v5811_v6, %v5370_v9 }
0x3483   :  { %6580 = vmatpush3.xpose.msk.msra.mxu0 %vm223_vm3, %v5377_v46 }
0x3484   :  { %5814 = vmatprep.subr.msk.mxu0 %vm552_vm5, %v6962_v47 }
0x3486   :  { %6582 = vmatmul.mubr.msk.f32.vlgmr.msra.gmra.mrb[48].mxu0 %vm223_vm3, %v6963_v30 }
0x3487   :  { %5815 = vmatpush1.msk.msra.mxu0 %vm552_vm5, %v6964_v48  ;;  %5518 = vmatprep.mubr.f32.mxu0 %v6967_v61 }
0x3559   :  { %v5447_v4 = vpop.f32.mrb[48].mxu0 }
0x355a   :  { %v6583_v13 = vpop.f32.mrb[49].mxu0  ;;  %5816 = vmatmul.mubr.msk.f32.vlgmr.msra.gmra.mrb[50].mxu0 %vm548_vm7, %v5447_v4 }
0x362d   :  { %v5520_v16 = vpop.f32.mrb[50].mxu0 }
0x362e   :  { %v5521_v22 = vadd.f32 %v5520_v16, %v2756_v35  ;;  %v5522_v25 = vpop.f32.mrb[51].mxu0 }
0x362f   :  { %v5523_v28 = vadd.f32 %v5522_v25, %v2756_v35 }
0x3631   :  { %v5527_v31 = vcombine.low %v5521_v22, %v5523_v28 }
0x3633   :  { %5817 = vst [vmem:[%s8409_s22 + $0x8] sm:$0xff] %v5527_v31 }

</bundles_post_ra>
